<compile_context>
chip_gen: v7x
topology: tpu7x:2x2x1
jax: 0.10.0
libtpu: 0.0.40
codegen_flags: <defaults>
</compile_context>

<pallas_src>
import jax
import jax.numpy as jnp
from jax.experimental import pallas as pl
from jax.experimental.pallas import tpu as pltpu


_HIDDEN = (256, 64, 8)
_BN_EPS = 1e-5
_LANE = 128
_SUBLANE = 8


def _round_up(x, m):
    return (x + m - 1) // m * m


# ----------------------------------------------------------------------------
# Kernel
# ----------------------------------------------------------------------------
def _mlp_kernel(x_ref,
                w1_ref, b1_ref,
                w2_ref, b2_ref,
                w3_ref, b3_ref,
                w4_ref, b4_ref,
                o_ref):
    # Matmuls take bf16 operands and accumulate in f32 on the MXU; the folded
    # bias + ReLU epilogue stays in f32 (VPU), then the activation is cast
    # back to bf16 for the next MXU pass.
    h = jnp.dot(x_ref[...], w1_ref[...], preferred_element_type=jnp.float32)
    h = jnp.maximum(h + b1_ref[...], 0.0)

    h = jnp.dot(h.astype(jnp.bfloat16), w2_ref[...],
                preferred_element_type=jnp.float32)
    h = jnp.maximum(h + b2_ref[...], 0.0)

    h = jnp.dot(h.astype(jnp.bfloat16), w3_ref[...],
                preferred_element_type=jnp.float32)
    h = jnp.maximum(h + b3_ref[...], 0.0)

    out = jnp.dot(h.astype(jnp.bfloat16), w4_ref[...],
                  preferred_element_type=jnp.float32) + b4_ref[...]
    o_ref[...] = out.astype(o_ref.dtype)


# ----------------------------------------------------------------------------
# Wrapper
# ----------------------------------------------------------------------------
def mlp_forward(x, packed, *, batch_tile=256):
    """Fused eval-mode forward of MyModel.

    x: [B, D_in] float32.
    packed: dict from fold_and_pack_params().
    Returns [B, D_out] float32.
    """
    B, d_in = x.shape
    d_out = packed["d_out"]
    assert d_in == packed["d_in"]
    k_pad = packed["w1"].shape[0]      # D_in padded to a multiple of 128
    n_pad = packed["w4"].shape[1]      # D_out padded to a multiple of 128

    # Batch tiling: multiple of 8 sublanes; pad the batch so it divides evenly.
    tile = max(_SUBLANE, min(int(batch_tile), _round_up(B, _SUBLANE)))
    tile = _round_up(tile, _SUBLANE)
    b_pad = _round_up(B, tile)

    # Pad (zeros) and cast activations to bf16 in the wrapper so the kernel
    # streams half the bytes and every MXU pass is K/N aligned.
    xp = jnp.zeros((b_pad, k_pad), jnp.bfloat16).at[:B, :d_in].set(
        x.astype(jnp.bfloat16))

    ws = (packed["w1"], packed["b1"], packed["w2"], packed["b2"],
          packed["w3"], packed["b3"], packed["w4"], packed["b4"])

    flops = 2 * b_pad * (k_pad * 256 + 256 * 64 + 64 * 8 + 8 * n_pad)
    bytes_accessed = (int(xp.size) * 2
                      + sum(int(w.size) * w.dtype.itemsize for w in ws)
                      + b_pad * n_pad * 4)
    cost = pl.CostEstimate(flops=flops, transcendentals=0,
                           bytes_accessed=bytes_accessed)

    def run(single_buffer_weights):
        def wspec(arr):
            # All weight/bias operands are 2-D with a constant index map.
            if single_buffer_weights:
                return pl.BlockSpec(arr.shape, lambda i: (0, 0),
                                    pipeline_mode=pl.Buffered(1))
            return pl.BlockSpec(arr.shape, lambda i: (0, 0))

        grid_spec = pltpu.PrefetchScalarGridSpec(
            num_scalar_prefetch=0,
            grid=(b_pad // tile,),
            in_specs=[pl.BlockSpec((tile, k_pad), lambda i: (i, 0))]
                     + [wspec(w) for w in ws],
            out_specs=pl.BlockSpec((tile, n_pad), lambda i: (i, 0)),
        )
        return pl.pallas_call(
            _mlp_kernel,
            out_shape=jax.ShapeDtypeStruct((b_pad, n_pad), jnp.float32),
            grid_spec=grid_spec,
            compiler_params=pltpu.CompilerParams(
                dimension_semantics=("parallel",)),
            cost_estimate=cost,
        )(xp, *ws)

    try:
        out = run(single_buffer_weights=True)
    except Exception:
        # Fallback if this jax/Mosaic build rejects single-buffered
        # (pl.Buffered(1)) constant-index operands: weights are tiny, default
        # double-buffering is correct and nearly free.
        out = run(single_buffer_weights=False)

    return out[:B, :d_out]


# ----------------------------------------------------------------------------
# Parameters (PyTorch layout) + eval-mode BN folding / packing
# ----------------------------------------------------------------------------
def init_torch_params(key, d_in, d_out):
    """Parameters in PyTorch layout: Linear W [out, in], b [out];
    BatchNorm1d gamma/beta/running_mean/running_var [features]."""
    dims = (d_in,) + _HIDDEN + (d_out,)
    params = {}
    keys = iter(jax.random.split(key, 32))
    for layer in range(4):
        fan_in, fan_out = dims[layer], dims[layer + 1]
        bound = float(fan_in) ** -0.5
        params[f"W{layer}"] = jax.random.uniform(
            next(keys), (fan_out, fan_in), minval=-bound, maxval=bound,
            dtype=jnp.float32)
        params[f"bias{layer}"] = jax.random.uniform(
            next(keys), (fan_out,), minval=-bound, maxval=bound,
            dtype=jnp.float32)
        if layer < 3:  # layers 0..2 are followed by BatchNorm1d
            params[f"gamma{layer}"] = jax.random.uniform(
                next(keys), (fan_out,), minval=0.5, maxval=1.5,
                dtype=jnp.float32)
            params[f"beta{layer}"] = jax.random.uniform(
                next(keys), (fan_out,), minval=-0.5, maxval=0.5,
                dtype=jnp.float32)
            params[f"mean{layer}"] = 0.1 * jax.random.normal(
                next(keys), (fan_out,), dtype=jnp.float32)
            params[f"var{layer}"] = jax.random.uniform(
                next(keys), (fan_out,), minval=0.5, maxval=1.5,
                dtype=jnp.float32)
    return params


def fold_and_pack_params(params, d_in, d_out, eps=_BN_EPS):
    """Fold eval-mode BatchNorm1d into the preceding Linear and pack for the
    kernel:
      - weights stored [in, out] (x @ W on the MXU), bf16
      - folded bias stored [1, out], f32
      - layer-1 K (= d_in) zero-padded to a multiple of 128
      - layer-4 N (= d_out) zero-padded to a multiple of 128 (lane-dense store)
    """
    packed = {"d_in": d_in, "d_out": d_out}
    for layer in range(4):
        w = params[f"W{layer}"].T          # [in, out]
        b = params[f"bias{layer}"]
        if layer < 3:
            scale = params[f"gamma{layer}"] / jnp.sqrt(
                params[f"var{layer}"] + eps)
            shift = params[f"beta{layer}"] - params[f"mean{layer}"] * scale
            w = w * scale[None, :]
            b = b * scale + shift
        fan_in, fan_out = w.shape
        in_pad = _round_up(fan_in, _LANE) if layer == 0 else fan_in
        out_pad = _round_up(fan_out, _LANE) if layer == 3 else fan_out
        wp = jnp.zeros((in_pad, out_pad), jnp.float32)
        wp = wp.at[:fan_in, :fan_out].set(w)
        bp = jnp.zeros((1, out_pad), jnp.float32).at[0, :fan_out].set(b)
        packed[f"w{layer + 1}"] = wp.astype(jnp.bfloat16)
        packed[f"b{layer + 1}"] = bp
    return packed


# ----------------------------------------------------------------------------
# References for correctness checks
# ----------------------------------------------------------------------------
def reference_forward_f32(x, params, eps=_BN_EPS):
    """Pure-JAX f32 eval-mode forward matching the PyTorch module."""
    h = x
    for layer in range(4):
        h = h @ params[f"W{layer}"].T + params[f"bias{layer}"]
        if layer < 3:
            scale = params[f"gamma{layer}"] / jnp.sqrt(
                params[f"var{layer}"] + eps)
            h = (h - params[f"mean{layer}"]) * scale + params[f"beta{layer}"]
            h = jnp.maximum(h, 0.0)
            # Dropout(p=0.5) is identity in eval mode.
    return h


def reference_forward_bf16(x, packed):
    """Pure-JAX reference matching the kernel's bf16/f32 mixed precision."""
    d_in, d_out = packed["d_in"], packed["d_out"]
    k_pad = packed["w1"].shape[0]
    xp = jnp.zeros((x.shape[0], k_pad), jnp.bfloat16).at[:, :d_in].set(
        x.astype(jnp.bfloat16))
    h = jnp.dot(xp, packed["w1"], preferred_element_type=jnp.float32)
    h = jnp.maximum(h + packed["b1"], 0.0)
    h = jnp.dot(h.astype(jnp.bfloat16), packed["w2"],
                preferred_element_type=jnp.float32)
    h = jnp.maximum(h + packed["b2"], 0.0)
    h = jnp.dot(h.astype(jnp.bfloat16), packed["w3"],
                preferred_element_type=jnp.float32)
    h = jnp.maximum(h + packed["b3"], 0.0)
    out = jnp.dot(h.astype(jnp.bfloat16), packed["w4"],
                  preferred_element_type=jnp.float32) + packed["b4"]
    return out[:, :d_out]


if __name__ == "__main__":
    # B deliberately NOT a multiple of the batch tile to exercise ragged-tail
    # padding; shapes kept small.
    B, D_IN, D_OUT = 300, 32, 4

    key = jax.random.PRNGKey(0)
    k_x, k_p = jax.random.split(key)
    x = jax.random.normal(k_x, (B, D_IN), dtype=jnp.float32)

    torch_params = init_torch_params(k_p, D_IN, D_OUT)
    packed = fold_and_pack_params(torch_params, D_IN, D_OUT)

    out = mlp_forward(x, packed, batch_tile=256)
    out = jax.block_until_ready(out)
    assert out.shape == (B, D_OUT)

    ref_exact = reference_forward_bf16(x, packed)          # same precision path
    ref_f32 = reference_forward_f32(x, torch_params)       # full-f32 semantics
    assert jnp.allclose(out, ref_exact, atol=2e-3, rtol=2e-3), \
        "mismatch vs bf16-matched reference"
    assert jnp.allclose(out, ref_f32, atol=8e-2, rtol=8e-2), \
        "mismatch vs f32 reference"

    # TODO(synk): training-mode Dropout / batch-stat BatchNorm not implemented
    # (eval-mode semantics reproduced instead).
    print("KERNEL_OK")
</pallas_src>

<mosaic_0001>
module attributes {stable_mosaic.version = 11 : i64} {
  func.func @_mlp_kernel(%arg0: i32, %arg1: memref<256x128xbf16, #tpu.memory_space<vmem>>, %arg2: memref<128x256xbf16, #tpu.memory_space<vmem>>, %arg3: memref<1x256xf32, #tpu.memory_space<vmem>>, %arg4: memref<256x64xbf16, #tpu.memory_space<vmem>>, %arg5: memref<1x64xf32, #tpu.memory_space<vmem>>, %arg6: memref<64x8xbf16, #tpu.memory_space<vmem>>, %arg7: memref<1x8xf32, #tpu.memory_space<vmem>>, %arg8: memref<8x128xbf16, #tpu.memory_space<vmem>>, %arg9: memref<1x128xf32, #tpu.memory_space<vmem>>, %arg10: memref<256x128xf32, #tpu.memory_space<vmem>>) attributes {dimension_semantics = [#tpu.dimension_semantics<parallel>], iteration_bounds = array<i64: 2>, scalar_prefetch = 0 : i64, scratch_operands = 0 : i64, tpu.core_type = #tpu.core_type<tc>, window_params = [{transform_indices = @transform_0, window_bounds = array<i64: 256, 128>}, {pipeline_mode = #tpu.pipeline_mode<synchronous>, transform_indices = @transform_1, window_bounds = array<i64: 128, 256>}, {pipeline_mode = #tpu.pipeline_mode<synchronous>, transform_indices = @transform_2, window_bounds = array<i64: 1, 256>}, {pipeline_mode = #tpu.pipeline_mode<synchronous>, transform_indices = @transform_3, window_bounds = array<i64: 256, 64>}, {pipeline_mode = #tpu.pipeline_mode<synchronous>, transform_indices = @transform_4, window_bounds = array<i64: 1, 64>}, {pipeline_mode = #tpu.pipeline_mode<synchronous>, transform_indices = @transform_5, window_bounds = array<i64: 64, 8>}, {pipeline_mode = #tpu.pipeline_mode<synchronous>, transform_indices = @transform_6, window_bounds = array<i64: 1, 8>}, {pipeline_mode = #tpu.pipeline_mode<synchronous>, transform_indices = @transform_7, window_bounds = array<i64: 8, 128>}, {pipeline_mode = #tpu.pipeline_mode<synchronous>, transform_indices = @transform_8, window_bounds = array<i64: 1, 128>}, {transform_indices = @transform_9, window_bounds = array<i64: 256, 128>}]} {
    %c0 = arith.constant 0 : index
    %c0_0 = arith.constant 0 : index
    %0 = vector.load %arg1[%c0, %c0_0] : memref<256x128xbf16, #tpu.memory_space<vmem>>, vector<256x128xbf16>
    %c0_1 = arith.constant 0 : index
    %c0_2 = arith.constant 0 : index
    %1 = vector.load %arg2[%c0_1, %c0_2] : memref<128x256xbf16, #tpu.memory_space<vmem>>, vector<128x256xbf16>
    %cst = arith.constant dense<0.000000e+00> : vector<256x256xf32>
    %2 = tpu.matmul %0, %1, %cst {dimension_numbers = #tpu.dot_dimension_numbers<[1], [0], [0], [1], [0, 0, 1, 1], [], []>} : vector<256x128xbf16>, vector<128x256xbf16>, vector<256x256xf32> -> vector<256x256xf32>
    %c0_3 = arith.constant 0 : index
    %c0_4 = arith.constant 0 : index
    %3 = vector.load %arg3[%c0_3, %c0_4] : memref<1x256xf32, #tpu.memory_space<vmem>>, vector<1x256xf32>
    %4 = vector.broadcast %3 : vector<1x256xf32> to vector<256x256xf32>
    %5 = arith.addf %2, %4 : vector<256x256xf32>
    %cst_5 = arith.constant 0.000000e+00 : f32
    %6 = vector.broadcast %cst_5 : f32 to vector<256x256xf32>
    %7 = arith.maximumf %5, %6 : vector<256x256xf32>
    %8 = arith.truncf %7 : vector<256x256xf32> to vector<256x256xbf16>
    %c0_6 = arith.constant 0 : index
    %c0_7 = arith.constant 0 : index
    %9 = vector.load %arg4[%c0_6, %c0_7] : memref<256x64xbf16, #tpu.memory_space<vmem>>, vector<256x64xbf16>
    %cst_8 = arith.constant dense<0.000000e+00> : vector<256x64xf32>
    %10 = tpu.matmul %8, %9, %cst_8 {dimension_numbers = #tpu.dot_dimension_numbers<[1], [0], [0], [1], [0, 0, 1, 1], [], []>} : vector<256x256xbf16>, vector<256x64xbf16>, vector<256x64xf32> -> vector<256x64xf32>
    %c0_9 = arith.constant 0 : index
    %c0_10 = arith.constant 0 : index
    %11 = vector.load %arg5[%c0_9, %c0_10] : memref<1x64xf32, #tpu.memory_space<vmem>>, vector<1x64xf32>
    %12 = vector.broadcast %11 : vector<1x64xf32> to vector<256x64xf32>
    %13 = arith.addf %10, %12 : vector<256x64xf32>
    %cst_11 = arith.constant 0.000000e+00 : f32
    %14 = vector.broadcast %cst_11 : f32 to vector<256x64xf32>
    %15 = arith.maximumf %13, %14 : vector<256x64xf32>
    %16 = arith.truncf %15 : vector<256x64xf32> to vector<256x64xbf16>
    %c0_12 = arith.constant 0 : index
    %c0_13 = arith.constant 0 : index
    %17 = vector.load %arg6[%c0_12, %c0_13] : memref<64x8xbf16, #tpu.memory_space<vmem>>, vector<64x8xbf16>
    %cst_14 = arith.constant dense<0.000000e+00> : vector<256x8xf32>
    %18 = tpu.matmul %16, %17, %cst_14 {dimension_numbers = #tpu.dot_dimension_numbers<[1], [0], [0], [1], [0, 0, 1, 1], [], []>} : vector<256x64xbf16>, vector<64x8xbf16>, vector<256x8xf32> -> vector<256x8xf32>
    %c0_15 = arith.constant 0 : index
    %c0_16 = arith.constant 0 : index
    %19 = vector.load %arg7[%c0_15, %c0_16] : memref<1x8xf32, #tpu.memory_space<vmem>>, vector<1x8xf32>
    %20 = vector.broadcast %19 : vector<1x8xf32> to vector<256x8xf32>
    %21 = arith.addf %18, %20 : vector<256x8xf32>
    %cst_17 = arith.constant 0.000000e+00 : f32
    %22 = vector.broadcast %cst_17 : f32 to vector<256x8xf32>
    %23 = arith.maximumf %21, %22 : vector<256x8xf32>
    %24 = arith.truncf %23 : vector<256x8xf32> to vector<256x8xbf16>
    %c0_18 = arith.constant 0 : index
    %c0_19 = arith.constant 0 : index
    %25 = vector.load %arg8[%c0_18, %c0_19] : memref<8x128xbf16, #tpu.memory_space<vmem>>, vector<8x128xbf16>
    %cst_20 = arith.constant dense<0.000000e+00> : vector<256x128xf32>
    %26 = tpu.matmul %24, %25, %cst_20 {dimension_numbers = #tpu.dot_dimension_numbers<[1], [0], [0], [1], [0, 0, 1, 1], [], []>} : vector<256x8xbf16>, vector<8x128xbf16>, vector<256x128xf32> -> vector<256x128xf32>
    %c0_21 = arith.constant 0 : index
    %c0_22 = arith.constant 0 : index
    %27 = vector.load %arg9[%c0_21, %c0_22] : memref<1x128xf32, #tpu.memory_space<vmem>>, vector<1x128xf32>
    %28 = vector.broadcast %27 : vector<1x128xf32> to vector<256x128xf32>
    %29 = arith.addf %26, %28 : vector<256x128xf32>
    %c0_23 = arith.constant 0 : index
    %c0_24 = arith.constant 0 : index
    %30 = vector.load %arg10[%c0_23, %c0_24] : memref<256x128xf32, #tpu.memory_space<vmem>>, vector<256x128xf32>
    tpu.vector_store %arg10[%c0_23, %c0_24], %29 {strides = array<i32>} : memref<256x128xf32, #tpu.memory_space<vmem>>, vector<256x128xf32>,
    return
  }
  func.func @transform_0(%arg0: i32) -> (i32, i32) {
    %c0_i32 = arith.constant 0 : i32
    %c0_i32_0 = arith.constant 0 : i32
    return %arg0, %c0_i32 : i32, i32
  }
  func.func @transform_1(%arg0: i32) -> (i32, i32) {
    %c0_i32 = arith.constant 0 : i32
    %c0_i32_0 = arith.constant 0 : i32
    %c0_i32_1 = arith.constant 0 : i32
    return %c0_i32, %c0_i32_0 : i32, i32
  }
  func.func @transform_2(%arg0: i32) -> (i32, i32) {
    %c0_i32 = arith.constant 0 : i32
    %c0_i32_0 = arith.constant 0 : i32
    %c0_i32_1 = arith.constant 0 : i32
    return %c0_i32, %c0_i32_0 : i32, i32
  }
  func.func @transform_3(%arg0: i32) -> (i32, i32) {
    %c0_i32 = arith.constant 0 : i32
    %c0_i32_0 = arith.constant 0 : i32
    %c0_i32_1 = arith.constant 0 : i32
    return %c0_i32, %c0_i32_0 : i32, i32
  }
  func.func @transform_4(%arg0: i32) -> (i32, i32) {
    %c0_i32 = arith.constant 0 : i32
    %c0_i32_0 = arith.constant 0 : i32
    %c0_i32_1 = arith.constant 0 : i32
    return %c0_i32, %c0_i32_0 : i32, i32
  }
  func.func @transform_5(%arg0: i32) -> (i32, i32) {
    %c0_i32 = arith.constant 0 : i32
    %c0_i32_0 = arith.constant 0 : i32
    %c0_i32_1 = arith.constant 0 : i32
    return %c0_i32, %c0_i32_0 : i32, i32
  }
  func.func @transform_6(%arg0: i32) -> (i32, i32) {
    %c0_i32 = arith.constant 0 : i32
    %c0_i32_0 = arith.constant 0 : i32
    %c0_i32_1 = arith.constant 0 : i32
    return %c0_i32, %c0_i32_0 : i32, i32
  }
  func.func @transform_7(%arg0: i32) -> (i32, i32) {
    %c0_i32 = arith.constant 0 : i32
    %c0_i32_0 = arith.constant 0 : i32
    %c0_i32_1 = arith.constant 0 : i32
    return %c0_i32, %c0_i32_0 : i32, i32
  }
  func.func @transform_8(%arg0: i32) -> (i32, i32) {
    %c0_i32 = arith.constant 0 : i32
    %c0_i32_0 = arith.constant 0 : i32
    %c0_i32_1 = arith.constant 0 : i32
    return %c0_i32, %c0_i32_0 : i32, i32
  }
  func.func @transform_9(%arg0: i32) -> (i32, i32) {
    %c0_i32 = arith.constant 0 : i32
    %c0_i32_0 = arith.constant 0 : i32
    return %arg0, %c0_i32 : i32, i32
  }
}

module attributes {stable_mosaic.version = 11 : i64} {
  func.func @_mlp_kernel(%arg0: i32, %arg1: memref<256x128xbf16, #tpu.memory_space<vmem>>, %arg2: memref<128x256xbf16, #tpu.memory_space<vmem>>, %arg3: memref<1x256xf32, #tpu.memory_space<vmem>>, %arg4: memref<256x64xbf16, #tpu.memory_space<vmem>>, %arg5: memref<1x64xf32, #tpu.memory_space<vmem>>, %arg6: memref<64x8xbf16, #tpu.memory_space<vmem>>, %arg7: memref<1x8xf32, #tpu.memory_space<vmem>>, %arg8: memref<8x128xbf16, #tpu.memory_space<vmem>>, %arg9: memref<1x128xf32, #tpu.memory_space<vmem>>, %arg10: memref<256x128xf32, #tpu.memory_space<vmem>>) attributes {dimension_semantics = [#tpu.dimension_semantics<parallel>], iteration_bounds = array<i64: 2>, scalar_prefetch = 0 : i64, scratch_operands = 0 : i64, tpu.core_type = #tpu.core_type<tc>, window_params = [{transform_indices = @transform_0, window_bounds = array<i64: 256, 128>}, {pipeline_mode = #tpu.pipeline_mode<synchronous>, transform_indices = @transform_1, window_bounds = array<i64: 128, 256>}, {pipeline_mode = #tpu.pipeline_mode<synchronous>, transform_indices = @transform_2, window_bounds = array<i64: 1, 256>}, {pipeline_mode = #tpu.pipeline_mode<synchronous>, transform_indices = @transform_3, window_bounds = array<i64: 256, 64>}, {pipeline_mode = #tpu.pipeline_mode<synchronous>, transform_indices = @transform_4, window_bounds = array<i64: 1, 64>}, {pipeline_mode = #tpu.pipeline_mode<synchronous>, transform_indices = @transform_5, window_bounds = array<i64: 64, 8>}, {pipeline_mode = #tpu.pipeline_mode<synchronous>, transform_indices = @transform_6, window_bounds = array<i64: 1, 8>}, {pipeline_mode = #tpu.pipeline_mode<synchronous>, transform_indices = @transform_7, window_bounds = array<i64: 8, 128>}, {pipeline_mode = #tpu.pipeline_mode<synchronous>, transform_indices = @transform_8, window_bounds = array<i64: 1, 128>}, {transform_indices = @transform_9, window_bounds = array<i64: 256, 128>}]} {
    %c0 = arith.constant 0 : index
    %c0_0 = arith.constant 0 : index
    %0 = vector.load %arg1[%c0, %c0_0] : memref<256x128xbf16, #tpu.memory_space<vmem>>, vector<256x128xbf16>
    %c0_1 = arith.constant 0 : index
    %c0_2 = arith.constant 0 : index
    %1 = vector.load %arg2[%c0_1, %c0_2] : memref<128x256xbf16, #tpu.memory_space<vmem>>, vector<128x256xbf16>
    %cst = arith.constant dense<0.000000e+00> : vector<256x256xf32>
    %2 = tpu.matmul %0, %1, %cst {dimension_numbers = #tpu.dot_dimension_numbers<[1], [0], [0], [1], [0, 0, 1, 1], [], []>} : vector<256x128xbf16>, vector<128x256xbf16>, vector<256x256xf32> -> vector<256x256xf32>
    %c0_3 = arith.constant 0 : index
    %c0_4 = arith.constant 0 : index
    %3 = vector.load %arg3[%c0_3, %c0_4] : memref<1x256xf32, #tpu.memory_space<vmem>>, vector<1x256xf32>
    %4 = vector.broadcast %3 : vector<1x256xf32> to vector<256x256xf32>
    %5 = arith.addf %2, %4 : vector<256x256xf32>
    %cst_5 = arith.constant 0.000000e+00 : f32
    %6 = vector.broadcast %cst_5 : f32 to vector<256x256xf32>
    %7 = arith.maximumf %5, %6 : vector<256x256xf32>
    %8 = arith.truncf %7 : vector<256x256xf32> to vector<256x256xbf16>
    %c0_6 = arith.constant 0 : index
    %c0_7 = arith.constant 0 : index
    %9 = vector.load %arg4[%c0_6, %c0_7] : memref<256x64xbf16, #tpu.memory_space<vmem>>, vector<256x64xbf16>
    %cst_8 = arith.constant dense<0.000000e+00> : vector<256x64xf32>
    %10 = tpu.matmul %8, %9, %cst_8 {dimension_numbers = #tpu.dot_dimension_numbers<[1], [0], [0], [1], [0, 0, 1, 1], [], []>} : vector<256x256xbf16>, vector<256x64xbf16>, vector<256x64xf32> -> vector<256x64xf32>
    %c0_9 = arith.constant 0 : index
    %c0_10 = arith.constant 0 : index
    %11 = vector.load %arg5[%c0_9, %c0_10] : memref<1x64xf32, #tpu.memory_space<vmem>>, vector<1x64xf32>
    %12 = vector.broadcast %11 : vector<1x64xf32> to vector<256x64xf32>
    %13 = arith.addf %10, %12 : vector<256x64xf32>
    %cst_11 = arith.constant 0.000000e+00 : f32
    %14 = vector.broadcast %cst_11 : f32 to vector<256x64xf32>
    %15 = arith.maximumf %13, %14 : vector<256x64xf32>
    %16 = arith.truncf %15 : vector<256x64xf32> to vector<256x64xbf16>
    %c0_12 = arith.constant 0 : index
    %c0_13 = arith.constant 0 : index
    %17 = vector.load %arg6[%c0_12, %c0_13] : memref<64x8xbf16, #tpu.memory_space<vmem>>, vector<64x8xbf16>
    %cst_14 = arith.constant dense<0.000000e+00> : vector<256x8xf32>
    %18 = tpu.matmul %16, %17, %cst_14 {dimension_numbers = #tpu.dot_dimension_numbers<[1], [0], [0], [1], [0, 0, 1, 1], [], []>} : vector<256x64xbf16>, vector<64x8xbf16>, vector<256x8xf32> -> vector<256x8xf32>
    %c0_15 = arith.constant 0 : index
    %c0_16 = arith.constant 0 : index
    %19 = vector.load %arg7[%c0_15, %c0_16] : memref<1x8xf32, #tpu.memory_space<vmem>>, vector<1x8xf32>
    %20 = vector.broadcast %19 : vector<1x8xf32> to vector<256x8xf32>
    %21 = arith.addf %18, %20 : vector<256x8xf32>
    %cst_17 = arith.constant 0.000000e+00 : f32
    %22 = vector.broadcast %cst_17 : f32 to vector<256x8xf32>
    %23 = arith.maximumf %21, %22 : vector<256x8xf32>
    %24 = arith.truncf %23 : vector<256x8xf32> to vector<256x8xbf16>
    %c0_18 = arith.constant 0 : index
    %c0_19 = arith.constant 0 : index
    %25 = vector.load %arg8[%c0_18, %c0_19] : memref<8x128xbf16, #tpu.memory_space<vmem>>, vector<8x128xbf16>
    %cst_20 = arith.constant dense<0.000000e+00> : vector<256x128xf32>
    %26 = tpu.matmul %24, %25, %cst_20 {dimension_numbers = #tpu.dot_dimension_numbers<[1], [0], [0], [1], [0, 0, 1, 1], [], []>} : vector<256x8xbf16>, vector<8x128xbf16>, vector<256x128xf32> -> vector<256x128xf32>
    %c0_21 = arith.constant 0 : index
    %c0_22 = arith.constant 0 : index
    %27 = vector.load %arg9[%c0_21, %c0_22] : memref<1x128xf32, #tpu.memory_space<vmem>>, vector<1x128xf32>
    %28 = vector.broadcast %27 : vector<1x128xf32> to vector<256x128xf32>
    %29 = arith.addf %26, %28 : vector<256x128xf32>
    %c0_23 = arith.constant 0 : index
    %c0_24 = arith.constant 0 : index
    %30 = vector.load %arg10[%c0_23, %c0_24] : memref<256x128xf32, #tpu.memory_space<vmem>>, vector<256x128xf32>
    tpu.vector_store %arg10[%c0_23, %c0_24], %29 {strides = array<i32>} : memref<256x128xf32, #tpu.memory_space<vmem>>, vector<256x128xf32>,
    return
  }
  func.func @transform_0(%arg0: i32) -> (i32, i32) {
    %c0_i32 = arith.constant 0 : i32
    %c0_i32_0 = arith.constant 0 : i32
    return %arg0, %c0_i32 : i32, i32
  }
  func.func @transform_1(%arg0: i32) -> (i32, i32) {
    %c0_i32 = arith.constant 0 : i32
    %c0_i32_0 = arith.constant 0 : i32
    %c0_i32_1 = arith.constant 0 : i32
    return %c0_i32, %c0_i32_0 : i32, i32
  }
  func.func @transform_2(%arg0: i32) -> (i32, i32) {
    %c0_i32 = arith.constant 0 : i32
    %c0_i32_0 = arith.constant 0 : i32
    %c0_i32_1 = arith.constant 0 : i32
    return %c0_i32, %c0_i32_0 : i32, i32
  }
  func.func @transform_3(%arg0: i32) -> (i32, i32) {
    %c0_i32 = arith.constant 0 : i32
    %c0_i32_0 = arith.constant 0 : i32
    %c0_i32_1 = arith.constant 0 : i32
    return %c0_i32, %c0_i32_0 : i32, i32
  }
  func.func @transform_4(%arg0: i32) -> (i32, i32) {
    %c0_i32 = arith.constant 0 : i32
    %c0_i32_0 = arith.constant 0 : i32
    %c0_i32_1 = arith.constant 0 : i32
    return %c0_i32, %c0_i32_0 : i32, i32
  }
  func.func @transform_5(%arg0: i32) -> (i32, i32) {
    %c0_i32 = arith.constant 0 : i32
    %c0_i32_0 = arith.constant 0 : i32
    %c0_i32_1 = arith.constant 0 : i32
    return %c0_i32, %c0_i32_0 : i32, i32
  }
  func.func @transform_6(%arg0: i32) -> (i32, i32) {
    %c0_i32 = arith.constant 0 : i32
    %c0_i32_0 = arith.constant 0 : i32
    %c0_i32_1 = arith.constant 0 : i32
    return %c0_i32, %c0_i32_0 : i32, i32
  }
  func.func @transform_7(%arg0: i32) -> (i32, i32) {
    %c0_i32 = arith.constant 0 : i32
    %c0_i32_0 = arith.constant 0 : i32
    %c0_i32_1 = arith.constant 0 : i32
    return %c0_i32, %c0_i32_0 : i32, i32
  }
  func.func @transform_8(%arg0: i32) -> (i32, i32) {
    %c0_i32 = arith.constant 0 : i32
    %c0_i32_0 = arith.constant 0 : i32
    %c0_i32_1 = arith.constant 0 : i32
    return %c0_i32, %c0_i32_0 : i32, i32
  }
  func.func @transform_9(%arg0: i32) -> (i32, i32) {
    %c0_i32 = arith.constant 0 : i32
    %c0_i32_0 = arith.constant 0 : i32
    return %arg0, %c0_i32 : i32, i32
  }
}

</mosaic_0001>

<bundles_post_ra>
// kernel: tpu_custom_call.1
= control target key start
LH: loop header
LB: loop body
LE: loop exit
PB: predicated region body
PF: predicated region fallthrough
CT: control target
= control target key end

     0   :  { %14 = vsyncpa [#allocation3], 0  ;;  %s3011_s0 = inlined_call_operand.hbm [shape: bf16[512,128], index: 0, kind: input, shape index: {}]   ;;  %s3012_s1 = inlined_call_operand.vmem [shape: bf16[128,256], index: 1, kind: input, shape index: {}]   ;;  %s3013_s2 = inlined_call_operand.vmem [shape: f32[1,256], index: 2, kind: input, shape index: {}]   ;;  %s3014_s3 = inlined_call_operand.vmem [shape: bf16[256,64], index: 3, kind: input, shape index: {}]   ;;  %s3015_s4 = inlined_call_operand.vmem [shape: f32[1,64], index: 4, kind: input, shape index: {}]   ;;  %s3016_s5 = inlined_call_operand.vmem [shape: bf16[64,8], index: 5, kind: input, shape index: {}]   ;;  %s3017_s6 = inlined_call_operand.vmem [shape: f32[1,8], index: 6, kind: input, shape index: {}]   ;;  %s3018_s7 = inlined_call_operand.vmem [shape: bf16[8,128], index: 7, kind: input, shape index: {}]   ;;  %s3019_s8 = inlined_call_operand.vmem [shape: f32[1,128], index: 8, kind: input, shape index: {}]   ;;  %s3020_s9 = inlined_call_operand.hbm [shape: f32[512,128], index: 9, kind: output, shape index: {}]  }
   0x1   :  { %16 = vsyncpa [#allocation3 + $0x1], 0 }
   0x2   :  { %17 = vsyncpa [#allocation4], 0 }
   0x3   :  { %19 = vsyncpa [#allocation4 + $0x1], 0  ;;  %s2454_s30 = smov 0   ;;  %s2456_s10 = smov 0  }
   0x4   :  { %s2458_s11 = smov 0   ;;  %s2460_s12 = smov 0  }
   0x5 LB: > { %s2475_s13 = sadd.s32 4294967295, %s2395_s12   ;;  %s1861_s14 = sadd.s32 4294967294, %s2395_s12   ;;  %s2395_s12 = sphi %s2460_s12, %s3033_s12   ;;  %s2391_s11 = sphi %s2458_s11, %s3032_s11   ;;  %s2387_s10 = sphi %s2456_s10, %s3031_s10   ;;  %s2383_s30 = sphi %s2454_s30, %s3030_s30  }
   0x6   : > { %s2479_s15 = sadd.s32 1, %s2395_s12   ;;  %s32_s16 = sadd.s32 1, %s2391_s11 }
   0x7   : > { %s29_s17 = ssub.s32 %s2395_s12, %s2479_s15  ;;  %p39_p0 = scmp.ne.s32.totalorder %s2391_s11, %s2387_s10 }
   0x8   : > { %p30_p1 = scmp.eq.s32.totalorder %s29_s17, 0  ;;  %p40_p2 = scmp.eq.s32.totalorder %s2395_s12, 0 }
   0x9   : > { %p45_p3 = scmp.ne.s32.totalorder %s2387_s10, %s2383_s30  ;;  %p46_p4 = scmp.eq.s32.totalorder %s2475_s13, 0 }
   0xa   : > { %s2491_s18 = scalar_select %p30_p1, %s2391_s11, %s32_s16  }
   0xb   : > { %p2493_p5 = por %p40_p2, %p39_p0  ;;  %p2497_p6 = por %p46_p4, %p45_p3 }
   0xc   : > { %p237_p7 = scmp.eq.s32.totalorder %s2475_s13, 1  ;;  %p243_p8 = scmp.eq.s32.totalorder %s1861_s14, 1 }
   0xd   : > { %p2200_p10 = scmp.lt.s32.totalorder %s2395_s12, 2  ;;  %s287_s23 = sand.u32 1, %s2391_s11  }
   0xe   : > { %p2504_p11 = por %p237_p7, %p39_p0  ;;  %p2508_p12 = por %p243_p8, %p45_p3 }
   0xf   : > { %s1962_s24 = sshll.u32 %s2395_s12, 11  ;;  %s1864_s25 = sshll.u32 %s287_s23, 7 }
  0x10   : > { %s3024_s21 = scalar_select %p2504_p11, 1, 0 }
  0x11   : > { %s3025_s22 = scalar_select %p2508_p12, 1, 0 }
  0x12   : > { %s2517_s28 = scalar_lea.hbm %s3011_s0, %s1962_s24  ;;  %s291_s29 = scalar_lea.vmem [#allocation2], %s1864_s25 }
  0x13   : > { %s298_s14 = sshll.u32 %s291_s29, 4  ;;  %p2521_p13 = pnand %p2200_p10, %p2493_p5  ;;  %s2525_s14 = int_to_ptr.vmem [resolvable:$true] %s298_s14 }
  0x14   : > { %s2527_s17 = scalar_lea.sflag [#allocation3], %s287_s23  ;;  %s2299_s26 = scalar_lea.hbm %s2517_s28, 2048 }
  0x15   : > { %p2300_p0 = scmp.ne.s32.totalorder %s2517_s28, %s2299_s26  ;;  %p2301_p1 = pneg %p2521_p13 }
  0x16   : > { %s2304_s25 = scalar_lea.hbm %s3011_s0, 4096  ;;  %p2305_p4 = scmp.lt.u32.totalorder %s2517_s28, %s3011_s0 }
  0x17   : > { %p2302_p2 = pnand %p2301_p1, %p2300_p0  ;;  %p2306_p5 = scmp.lt.u32.totalorder %s2304_s25, %s2299_s26 }
  0x18   : > { %p2308_p8 = scmp.lt.u32.totalorder %s2299_s26, %s2517_s28 }
  0x19   : > { %p2303_p3 = pneg %p2302_p2  ;;  %p2307_p7 = por %p2306_p5, %p2305_p4 }
  0x1b   : > { %p2309_p10 = por %p2308_p8, %p2307_p7 }
  0x1d   : > { %p2310_p9 = pnand %p2309_p10, %p2303_p3 }
  0x1f   : > { %2313 = shalt.err (!%p2310_p9)
}
  0x20   : > { %s2314_s23 = scalar_lea.vmem %s2525_s14, 2048  ;;  %s2397_s24 = smov [#allocation2]  }
  0x21   : > { %p2315_p0 = scmp.ne.s32.totalorder %s2525_s14, %s2314_s23  ;;  %s2319_s19 = sshll.u32 %s2397_s24, 4  ;;  %s2320_s19 = int_to_ptr.vmem [resolvable:$false] %s2319_s19 }
  0x22   : > { %s2321_s27 = scalar_lea.vmem %s2320_s19, 4096  ;;  %p2322_p11 = scmp.lt.s32.totalorder %s2525_s14, %s2320_s19 }
  0x23   : > { %p2317_p2 = pnand %p2315_p0, %p2301_p1  ;;  %p2323_p4 = scmp.lt.s32.totalorder %s2321_s27, %s2314_s23 }
  0x25   : > { %p2318_p12 = pneg %p2317_p2  ;;  %p2324_p5 = por %p2323_p4, %p2322_p11 }
  0x27   : > { %p2325_p7 = pnand %p2324_p5, %p2318_p12 }
  0x29   : > { %2328 = shalt.err (!%p2325_p7)
}
  0x2a   : > { %s2398_s26 = smov 64   ;;  %s2399_s25 = smov 4  }
  0x2b   : > { %2195 = dma.hbm_to_vmem [thread:$0]  (!%p2521_p13), %s2517_s28, 2048, %s2525_s14, %s2527_s17, %s2398_s26, %s2398_s26, %s2399_s25  }
  0x2c   : > { %p1867_p9 = scmp.ge.s32.totalorder %s2395_s12, 1  ;;  %p306_p1 = scmp.lt.s32.totalorder %s2395_s12, 3 }
  0x2e   : > { %p307_p3 = pnand %p1867_p9, %p306_p1 }
  0x2f   : > { %s2558_s29 = sand.u32 (!%p307_p3), 1, %s2387_s10  }
  0x30   : > { %310 = sbr.rel (%p307_p3) target bundleno = 1108 (0x454), region = 56  ;;  %s1868_s23 = sshll.u32 (!%p307_p3), %s2558_s29, 7 }
  0x31   : > { %s313_s24 = scalar_lea.sflag (!%p307_p3), [#allocation3], %s2558_s29  ;;  %s2562_s19 = scalar_lea.vmem (!%p307_p3), [#allocation2], %s1868_s23 }
  0x37   : > { %2374 = dma.done.wait (%p2497_p6), %s313_s24, 2048  }
  0x38   : > { %2376 = vsyncadd (%p2497_p6), %s313_s24, 4294965248  ;;  %v2400_v0 = vmov 0   ;;  %v2239_v1 = vld [vmem:[%s3012_s1 + $0x4] ss:$8 sps:$4 sm:$0xff]   ;;  %v2241_v2 = vld [vmem:[%s3012_s1] ss:$8 sps:$4 sm:$0xff]   ;;  %v404_v49 = vlaneseq }
  0x39   : > { %622 = vmatprep.mubr.bf16.mxu0 %v2400_v0  ;;  %590 = vmatprep.subr.bf16.mxu0 %v2239_v1  ;;  %v2242_v3 = vld [vmem:[%s3012_s1 + $0x14] ss:$8 sps:$4 sm:$0xff]   ;;  %v2244_v4 = vld [vmem:[%s3012_s1 + $0x10] ss:$8 sps:$4 sm:$0xff]   ;;  %v2245_v5 = vld [vmem:[%s3012_s1 + $0x24] ss:$8 sps:$4 sm:$0xff]  }
  0x3a   : > { %591 = vmatpush1.bf16.msra.mxu0 %v2241_v2  ;;  %v2247_v6 = vld [vmem:[%s3012_s1 + $0x20] ss:$8 sps:$4 sm:$0xff]   ;;  %v2248_v7 = vld [vmem:[%s3012_s1 + $0x34] ss:$8 sps:$4 sm:$0xff]   ;;  %v2250_v8 = vld [vmem:[%s3012_s1 + $0x30] ss:$8 sps:$4 sm:$0xff]  }
  0x3b   : > { %592 = vmatprep.subr.bf16.mxu0 %v2242_v3  ;;  %v2251_v9 = vld [vmem:[%s3012_s1 + $0x44] ss:$8 sps:$4 sm:$0xff]   ;;  %v2253_v10 = vld [vmem:[%s3012_s1 + $0x40] ss:$8 sps:$4 sm:$0xff]   ;;  %v2254_v11 = vld [vmem:[%s3012_s1 + $0x54] ss:$8 sps:$4 sm:$0xff]  }
  0x3c   : > { %v2256_v12 = vld [vmem:[%s3012_s1 + $0x50] ss:$8 sps:$4 sm:$0xff]   ;;  %v2257_v13 = vld [vmem:[%s3012_s1 + $0x64] ss:$8 sps:$4 sm:$0xff]   ;;  %v2259_v14 = vld [vmem:[%s3012_s1 + $0x60] ss:$8 sps:$4 sm:$0xff]  }
  0x3d   : > { %v2260_v15 = vld [vmem:[%s3012_s1 + $0x74] ss:$8 sps:$4 sm:$0xff]   ;;  %v2262_v16 = vld [vmem:[%s3012_s1 + $0x70] ss:$8 sps:$4 sm:$0xff]   ;;  %v2279_v17 = vld [vmem:[%s3014_s3 + $0x40] sm:$0xff]   ;;  %v405_v50 = vshrl.u32 %v404_v49, 7 }
  0x3e   : > { %593 = vmatpush1.bf16.msra.mxu0 %v2244_v4  ;;  %v2263_v18 = vld [vmem:[%s2562_s19] sm:$0xff]   ;;  %1964 = vmatprep.subr.bf16.mxu1 %v2279_v17  ;;  %v2281_v20 = vld [vmem:[%s3014_s3 + $0x48] sm:$0xff]   ;;  %v2283_v22 = vld [vmem:[%s3014_s3 + $0x50] sm:$0xff]   ;;  %vm1577_vm0 = vcmask 1043456   ;;  %vm1262_vm1 = vcmask 523264   ;;  %vm1528_vm2 = vcmask 64512  }
  0x3f   : > { %594 = vmatprep.subr.bf16.mxu0 %v2245_v5  ;;  %v2280_v19 = vld [vmem:[%s3014_s3] sm:$0xff]   ;;  %v2282_v21 = vld [vmem:[%s3014_s3 + $0x8] sm:$0xff]   ;;  %v2284_v23 = vld [vmem:[%s3014_s3 + $0x10] sm:$0xff]   ;;  %v406_v51 = vsub.s32 0, %v405_v50  ;;  %v410_v53 = vsub.s32 1, %v405_v50  ;;  %s1869_s23 = sshll.u32 %s2558_s29, 8 }
  0x40   : > { %1965 = vmatpush3.bf16.msra.mxu1 %v2280_v19  ;;  %v2285_v24 = vld [vmem:[%s3014_s3 + $0x58] sm:$0xff]   ;;  %v2264_v25 = vld [vmem:[%s2562_s19 + $0x8] sm:$0xff]   ;;  %v2287_v27 = vld [vmem:[%s3014_s3 + $0x60] sm:$0xff]   ;;  %s2896_s14 = scalar_lea.vmem [#allocation5], %s1869_s23  ;;  %s1963_s16 = sshll.u32 %s2475_s13, 12 }
  0x41   : > { %1966 = vmatprep.subr.bf16.mxu1 %v2281_v20  ;;  %v2286_v26 = vld [vmem:[%s3014_s3 + $0x18] sm:$0xff]   ;;  %v2288_v28 = vld [vmem:[%s3014_s3 + $0x20] sm:$0xff]   ;;  %v2289_v29 = vld [vmem:[%s3014_s3 + $0x68] sm:$0xff]   ;;  %s1788_s17 = sshll.u32 %s2896_s14, 4  ;;  %s1775_s13 = scalar_lea.sflag [#allocation4], %s2558_s29  ;;  %s2963_s17 = int_to_ptr.vmem [resolvable:$true] %s1788_s17 }
  0x42   : > { %595 = vmatpush1.bf16.msra.mxu0 %v2247_v6  ;;  %v2265_v30 = vld [vmem:[%s2562_s19 + $0x10] sm:$0xff]   ;;  %v2266_v31 = vld [vmem:[%s2562_s19 + $0x18] sm:$0xff]   ;;  %v2267_v32 = vld [vmem:[%s2562_s19 + $0x20] sm:$0xff]   ;;  %s2329_s25 = scalar_lea.vmem %s2963_s17, 4096  ;;  %p3027_p11 = scmp.ne.s32.totalorder %s3024_s21, 0 }
  0x43   : > { %596 = vmatprep.subr.bf16.mxu0 %v2248_v7  ;;  %v2268_v33 = vld [vmem:[%s2562_s19 + $0x28] sm:$0xff]   ;;  %v2269_v34 = vld [vmem:[%s2562_s19 + $0x30] sm:$0xff]   ;;  %v2270_v35 = vld [vmem:[%s2562_s19 + $0x38] sm:$0xff]   ;;  %p2330_p6 = scmp.ne.s32.totalorder %s2963_s17, %s2329_s25  ;;  %s2401_s20 = smov [#allocation5]  }
  0x44   : > { %1967 = vmatpush3.bf16.msra.mxu1 %v2282_v21  ;;  %v2271_v36 = vld [vmem:[%s2562_s19 + $0x40] sm:$0xff]   ;;  %v2272_v37 = vld [vmem:[%s2562_s19 + $0x48] sm:$0xff]   ;;  %v2273_v38 = vld [vmem:[%s2562_s19 + $0x50] sm:$0xff]   ;;  %s2333_s23 = sshll.u32 %s2401_s20, 4  ;;  %s2334_s23 = int_to_ptr.vmem [resolvable:$false] %s2333_s23 }
  0x45   : > { %1968 = vmatprep.subr.bf16.mxu1 %v2283_v22  ;;  %v2290_v39 = vld [vmem:[%s3014_s3 + $0x28] sm:$0xff]   ;;  %v2274_v40 = vld [vmem:[%s2562_s19 + $0x58] sm:$0xff]   ;;  %v2291_v41 = vld [vmem:[%s3014_s3 + $0x70] sm:$0xff]   ;;  %p2331_p12 = pnand %p2330_p6, %p3027_p11  ;;  %s2335_s24 = scalar_lea.vmem %s2334_s23, 8192 }
  0x46   : > { %597 = vmatpush1.bf16.msra.mxu0 %v2250_v8  ;;  %v2292_v42 = vld [vmem:[%s3014_s3 + $0x30] sm:$0xff]   ;;  %v2293_v43 = vld [vmem:[%s3014_s3 + $0x78] sm:$0xff]   ;;  %v2275_v45 = vld [vmem:[%s2562_s19 + $0x60] sm:$0xff]   ;;  %p2336_p8 = scmp.lt.s32.totalorder %s2963_s17, %s2334_s23  ;;  %p2337_p10 = scmp.lt.s32.totalorder %s2335_s24, %s2329_s25 }
  0x47   : > { %598 = vmatprep.subr.bf16.mxu0 %v2251_v9  ;;  %v2294_v44 = vld [vmem:[%s3014_s3 + $0x38] sm:$0xff]   ;;  %v2276_v46 = vld [vmem:[%s2562_s19 + $0x68] sm:$0xff]   ;;  %v2277_v47 = vld [vmem:[%s2562_s19 + $0x70] sm:$0xff]   ;;  %p2332_p13 = pneg %p2331_p12 }
  0x48   : > { %1969 = vmatpush3.bf16.msra.mxu1 %v2284_v23  ;;  %v2278_v48 = vld [vmem:[%s2562_s19 + $0x78] sm:$0xff]   ;;  %v402_v52 = vld [vmem:[%s3013_s2] sm:$0x3]  ;;  %s2961_s19 = scalar_lea.hbm %s3020_s9, %s1963_s16  ;;  %p2338_p0 = por %p2337_p10, %p2336_p8 }
  0x49   : > { %1970 = vmatprep.subr.bf16.mxu1 %v2285_v24  ;;  %v2699_v54 = vrot.slane %v402_v52, %v406_v51  ;;  %v2701_v55 = vrot.slane %v402_v52, %v410_v53  ;;  %v2295_v63 = vld [vmem:[%s3016_s5] sm:$0xff]  }
  0x4a   : > { %599 = vmatpush1.bf16.msra.mxu0 %v2253_v10  ;;  %p2339_p2 = pnand %p2338_p0, %p2332_p13 }
  0x4b   : > { %600 = vmatprep.subr.bf16.mxu0 %v2254_v11 }
  0x4c   : > { %1971 = vmatpush3.bf16.msra.mxu1 %v2286_v26 }
  0x4d   : > { %1972 = vmatprep.subr.bf16.mxu1 %v2287_v27 }
  0x4e   : > { %601 = vmatpush1.bf16.msra.mxu0 %v2256_v12 }
  0x4f   : > { %602 = vmatprep.subr.bf16.mxu0 %v2257_v13 }
  0x50   : > { %1973 = vmatpush3.bf16.msra.mxu1 %v2288_v28 }
  0x51   : > { %1974 = vmatprep.subr.bf16.mxu1 %v2289_v29 }
  0x52   : > { %603 = vmatpush1.bf16.msra.mxu0 %v2259_v14 }
  0x53   : > { %604 = vmatprep.subr.bf16.mxu0 %v2260_v15 }
  0x54   : > { %1975 = vmatpush3.bf16.msra.mxu1 %v2290_v39 }
  0x55   : > { %1976 = vmatprep.subr.bf16.mxu1 %v2291_v41 }
  0x56   : > { %605 = vmatpush1.bf16.msra.mxu0 %v2262_v16 }
  0x57   : > { %2113 = vmatprep.subr.bf16.mxu0 %v2295_v63 }
  0x58   : > { %1977 = vmatpush3.bf16.msra.mxu1 %v2292_v42 }
  0x59   : > { %623 = vmatmul.mubr.bf16.vlgmr.msra.gmra.mrb[0].mxu0 %v2263_v18  ;;  %1978 = vmatprep.subr.bf16.mxu1 %v2293_v43 }
  0x5a   : > { %632 = vmatprep.mubr.bf16.mxu0 %v2400_v0  ;;  %2114 = vmatpush3.bf16.msra.mxu0 %v2295_v63 }
  0x5c   : > { %1979 = vmatpush3.bf16.msra.mxu1 %v2294_v44 }
  0x61   : > { %633 = vmatmul.mubr.bf16.gmra.mrb[4].mxu0 %v2264_v25 }
  0x62   : > { %642 = vmatprep.mubr.bf16.mxu0 %v2400_v0 }
  0x69   : > { %643 = vmatmul.mubr.bf16.gmra.mrb[8].mxu0 %v2265_v30 }
  0x6a   : > { %652 = vmatprep.mubr.bf16.mxu0 %v2400_v0 }
  0x71   : > { %653 = vmatmul.mubr.bf16.gmra.mrb[12].mxu0 %v2266_v31 }
  0x72   : > { %662 = vmatprep.mubr.bf16.mxu0 %v2400_v0 }
  0x79   : > { %663 = vmatmul.mubr.bf16.gmra.mrb[16].mxu0 %v2267_v32 }
  0x7a   : > { %672 = vmatprep.mubr.bf16.mxu0 %v2400_v0 }
  0x81   : > { %673 = vmatmul.mubr.bf16.gmra.mrb[20].mxu0 %v2268_v33 }
  0x82   : > { %682 = vmatprep.mubr.bf16.mxu0 %v2400_v0 }
  0x89   : > { %683 = vmatmul.mubr.bf16.gmra.mrb[24].mxu0 %v2269_v34 }
  0x8a   : > { %692 = vmatprep.mubr.bf16.mxu0 %v2400_v0 }
  0x91   : > { %693 = vmatmul.mubr.bf16.gmra.mrb[28].mxu0 %v2270_v35 }
  0x92   : > { %702 = vmatprep.mubr.bf16.mxu0 %v2400_v0 }
  0x99   : > { %703 = vmatmul.mubr.bf16.gmra.mrb[32].mxu0 %v2271_v36 }
  0x9a   : > { %712 = vmatprep.mubr.bf16.mxu0 %v2400_v0 }
  0xa1   : > { %713 = vmatmul.mubr.bf16.gmra.mrb[36].mxu0 %v2272_v37 }
  0xa2   : > { %722 = vmatprep.mubr.bf16.mxu0 %v2400_v0 }
  0xa9   : > { %723 = vmatmul.mubr.bf16.gmra.mrb[40].mxu0 %v2273_v38 }
  0xaa   : > { %732 = vmatprep.mubr.bf16.mxu0 %v2400_v0 }
  0xb1   : > { %733 = vmatmul.mubr.bf16.gmra.mrb[44].mxu0 %v2274_v40 }
  0xb2   : > { %742 = vmatprep.mubr.bf16.mxu0 %v2400_v0 }
  0xb9   : > { %743 = vmatmul.mubr.bf16.gmra.mrb[48].mxu0 %v2275_v45 }
  0xba   : > { %752 = vmatprep.mubr.bf16.mxu0 %v2400_v0 }
  0xc1   : > { %753 = vmatmul.mubr.bf16.gmra.mrb[52].mxu0 %v2276_v46 }
  0xc2   : > { %762 = vmatprep.mubr.bf16.mxu0 %v2400_v0 }
  0xc9   : > { %763 = vmatmul.mubr.bf16.gmra.mrb[56].mxu0 %v2277_v47 }
  0xca   : > { %772 = vmatprep.mubr.bf16.mxu0 %v2400_v0  ;;  %v2296_v0 = vld [vmem:[%s3016_s5 + $0x8] sm:$0xff]  }
  0xcb   : > { %2115 = vmatprep.subr.bf16.mxu0 %v2296_v0 }
  0xcc   : > { %2116 = vmatpush3.bf16.msra.mxu0 %v2296_v0 }
  0xd1   : > { %773 = vmatmul.mubr.bf16.gmra.mrb[60].mxu0 %v2278_v48 }
 0x12c   : > { %v624_v56 = vpop.f32.mrb[0].mxu0 }
 0x12d   : > { %v625_v57 = vadd.f32 %v624_v56, %v2699_v54  ;;  %v626_v58 = vpop.f32.mrb[1].mxu0 }
 0x12e   : > { %v627_v59 = vadd.f32 %v626_v58, %v2701_v55  ;;  %v628_v60 = vpop.f32.mrb[2].mxu0 }
 0x12f   : > { %v629_v61 = vadd.f32 %v628_v60, %v2699_v54  ;;  %v630_v62 = vpop.f32.mrb[3].mxu0  ;;  %v783_v2 = vmax.f32 %v625_v57, 0.0 }
 0x130   : > { %v631_v1 = vadd.f32 %v630_v62, %v2701_v55  ;;  %v784_v4 = vmax.f32 %v627_v59, 0.0 }
 0x131   : > { %v785_v3 = vmax.f32 %v629_v61, 0.0 }
 0x132   : > { %v786_v5 = vmax.f32 %v631_v1, 0.0 }
 0x133   : > { %v847_v6 = vpack.c.bf16 %v785_v3, %v783_v2 }
 0x134   : > { %v634_v7 = vpop.f32.mrb[4].mxu0  ;;  %v848_v8 = vpack.c.bf16 %v786_v5, %v784_v4 }
 0x135   : > { %v635_v9 = vadd.f32 %v634_v7, %v2699_v54  ;;  %v636_v10 = vpop.f32.mrb[5].mxu0 }
 0x136   : > { %v637_v11 = vadd.f32 %v636_v10, %v2701_v55  ;;  %v638_v12 = vpop.f32.mrb[6].mxu0  ;;  %1046 = vmatprep.mubr.bf16.mxu1 %v848_v8 }
 0x137   : > { %v639_v13 = vadd.f32 %v638_v12, %v2699_v54  ;;  %v640_v14 = vpop.f32.mrb[7].mxu0  ;;  %1047 = vmatmul.mubr.bf16.vlgmr.msra.gmra.mrb[0].mxu1 %v847_v6  ;;  %v787_v16 = vmax.f32 %v635_v9, 0.0 }
 0x138   : > { %v641_v15 = vadd.f32 %v640_v14, %v2701_v55  ;;  %v788_v18 = vmax.f32 %v637_v11, 0.0 }
 0x139   : > { %v789_v17 = vmax.f32 %v639_v13, 0.0 }
 0x13a   : > { %v790_v19 = vmax.f32 %v641_v15, 0.0 }
 0x13b   : > { %v849_v20 = vpack.c.bf16 %v789_v17, %v787_v16 }
 0x13c   : > { %v850_v21 = vpack.c.bf16 %v790_v19, %v788_v18  ;;  %v644_v22 = vpop.f32.mrb[8].mxu0 }
 0x13d   : > { %v645_v23 = vadd.f32 %v644_v22, %v2699_v54  ;;  %v646_v24 = vpop.f32.mrb[9].mxu0 }
 0x13e   : > { %v647_v25 = vadd.f32 %v646_v24, %v2701_v55  ;;  %v648_v26 = vpop.f32.mrb[10].mxu0  ;;  %1054 = vmatprep.mubr.bf16.mxu1 %v850_v21 }
 0x13f   : > { %v649_v27 = vadd.f32 %v648_v26, %v2699_v54  ;;  %v650_v28 = vpop.f32.mrb[11].mxu0  ;;  %1055 = vmatmul.mubr.bf16.gmra.mrb[4].mxu1 %v849_v20  ;;  %v791_v30 = vmax.f32 %v645_v23, 0.0 }
 0x140   : > { %v651_v29 = vadd.f32 %v650_v28, %v2701_v55  ;;  %v792_v32 = vmax.f32 %v647_v25, 0.0 }
 0x141   : > { %v793_v31 = vmax.f32 %v649_v27, 0.0 }
 0x142   : > { %v794_v33 = vmax.f32 %v651_v29, 0.0 }
 0x143   : > { %v851_v34 = vpack.c.bf16 %v793_v31, %v791_v30 }
 0x144   : > { %v852_v35 = vpack.c.bf16 %v794_v33, %v792_v32  ;;  %v654_v36 = vpop.f32.mrb[12].mxu0 }
 0x145   : > { %v655_v37 = vadd.f32 %v654_v36, %v2699_v54  ;;  %v656_v38 = vpop.f32.mrb[13].mxu0 }
 0x146   : > { %v657_v39 = vadd.f32 %v656_v38, %v2701_v55  ;;  %v658_v40 = vpop.f32.mrb[14].mxu0  ;;  %1062 = vmatprep.mubr.bf16.mxu1 %v852_v35 }
 0x147   : > { %v659_v41 = vadd.f32 %v658_v40, %v2699_v54  ;;  %v660_v42 = vpop.f32.mrb[15].mxu0  ;;  %1063 = vmatmul.mubr.bf16.gmra.mrb[8].mxu1 %v851_v34  ;;  %v795_v44 = vmax.f32 %v655_v37, 0.0 }
 0x148   : > { %v661_v43 = vadd.f32 %v660_v42, %v2701_v55  ;;  %v796_v46 = vmax.f32 %v657_v39, 0.0 }
 0x149   : > { %v797_v45 = vmax.f32 %v659_v41, 0.0 }
 0x14a   : > { %v798_v47 = vmax.f32 %v661_v43, 0.0 }
 0x14b   : > { %v853_v48 = vpack.c.bf16 %v797_v45, %v795_v44 }
 0x14c   : > { %v854_v49 = vpack.c.bf16 %v798_v47, %v796_v46  ;;  %v664_v50 = vpop.f32.mrb[16].mxu0 }
 0x14d   : > { %v665_v51 = vadd.f32 %v664_v50, %v2699_v54  ;;  %v666_v52 = vpop.f32.mrb[17].mxu0 }
 0x14e   : > { %v667_v53 = vadd.f32 %v666_v52, %v2701_v55  ;;  %v668_v56 = vpop.f32.mrb[18].mxu0  ;;  %1070 = vmatprep.mubr.bf16.mxu1 %v854_v49 }
 0x14f   : > { %v669_v57 = vadd.f32 %v668_v56, %v2699_v54  ;;  %v670_v58 = vpop.f32.mrb[19].mxu0  ;;  %1071 = vmatmul.mubr.bf16.gmra.mrb[12].mxu1 %v853_v48  ;;  %v799_v60 = vmax.f32 %v665_v51, 0.0 }
 0x150   : > { %v671_v59 = vadd.f32 %v670_v58, %v2701_v55  ;;  %v800_v62 = vmax.f32 %v667_v53, 0.0 }
 0x151   : > { %v801_v61 = vmax.f32 %v669_v57, 0.0 }
 0x152   : > { %v802_v63 = vmax.f32 %v671_v59, 0.0 }
 0x153   : > { %v855_v0 = vpack.c.bf16 %v801_v61, %v799_v60 }
 0x154   : > { %v856_v1 = vpack.c.bf16 %v802_v63, %v800_v62  ;;  %v674_v2 = vpop.f32.mrb[20].mxu0 }
 0x155   : > { %v675_v3 = vadd.f32 %v674_v2, %v2699_v54  ;;  %v676_v4 = vpop.f32.mrb[21].mxu0 }
 0x156   : > { %v677_v5 = vadd.f32 %v676_v4, %v2701_v55  ;;  %v678_v6 = vpop.f32.mrb[22].mxu0  ;;  %1078 = vmatprep.mubr.bf16.mxu1 %v856_v1 }
 0x157   : > { %v679_v7 = vadd.f32 %v678_v6, %v2699_v54  ;;  %v680_v8 = vpop.f32.mrb[23].mxu0  ;;  %1079 = vmatmul.mubr.bf16.gmra.mrb[16].mxu1 %v855_v0  ;;  %v803_v10 = vmax.f32 %v675_v3, 0.0 }
 0x158   : > { %v681_v9 = vadd.f32 %v680_v8, %v2701_v55  ;;  %v804_v12 = vmax.f32 %v677_v5, 0.0 }
 0x159   : > { %v805_v11 = vmax.f32 %v679_v7, 0.0 }
 0x15a   : > { %v806_v13 = vmax.f32 %v681_v9, 0.0 }
 0x15b   : > { %v857_v14 = vpack.c.bf16 %v805_v11, %v803_v10 }
 0x15c   : > { %v858_v15 = vpack.c.bf16 %v806_v13, %v804_v12  ;;  %v684_v16 = vpop.f32.mrb[24].mxu0 }
 0x15d   : > { %v685_v17 = vadd.f32 %v684_v16, %v2699_v54  ;;  %v686_v18 = vpop.f32.mrb[25].mxu0 }
 0x15e   : > { %v687_v19 = vadd.f32 %v686_v18, %v2701_v55  ;;  %v688_v20 = vpop.f32.mrb[26].mxu0  ;;  %1086 = vmatprep.mubr.bf16.mxu1 %v858_v15 }
 0x15f   : > { %v689_v21 = vadd.f32 %v688_v20, %v2699_v54  ;;  %v690_v22 = vpop.f32.mrb[27].mxu0  ;;  %1087 = vmatmul.mubr.bf16.gmra.mrb[20].mxu1 %v857_v14  ;;  %v807_v24 = vmax.f32 %v685_v17, 0.0 }
 0x160   : > { %v691_v23 = vadd.f32 %v690_v22, %v2701_v55  ;;  %v808_v26 = vmax.f32 %v687_v19, 0.0 }
 0x161   : > { %v809_v25 = vmax.f32 %v689_v21, 0.0 }
 0x162   : > { %v810_v27 = vmax.f32 %v691_v23, 0.0 }
 0x163   : > { %v859_v28 = vpack.c.bf16 %v809_v25, %v807_v24 }
 0x164   : > { %v860_v29 = vpack.c.bf16 %v810_v27, %v808_v26  ;;  %v694_v30 = vpop.f32.mrb[28].mxu0 }
 0x165   : > { %v695_v31 = vadd.f32 %v694_v30, %v2699_v54  ;;  %v696_v32 = vpop.f32.mrb[29].mxu0 }
 0x166   : > { %v697_v33 = vadd.f32 %v696_v32, %v2701_v55  ;;  %v698_v34 = vpop.f32.mrb[30].mxu0  ;;  %1094 = vmatprep.mubr.bf16.mxu1 %v860_v29 }
 0x167   : > { %v699_v35 = vadd.f32 %v698_v34, %v2699_v54  ;;  %v700_v36 = vpop.f32.mrb[31].mxu0  ;;  %1095 = vmatmul.mubr.bf16.gmra.mrb[24].mxu1 %v859_v28  ;;  %v811_v38 = vmax.f32 %v695_v31, 0.0 }
 0x168   : > { %v701_v37 = vadd.f32 %v700_v36, %v2701_v55  ;;  %v812_v40 = vmax.f32 %v697_v33, 0.0 }
 0x169   : > { %v813_v39 = vmax.f32 %v699_v35, 0.0 }
 0x16a   : > { %v814_v41 = vmax.f32 %v701_v37, 0.0 }
 0x16b   : > { %v861_v42 = vpack.c.bf16 %v813_v39, %v811_v38 }
 0x16c   : > { %v862_v43 = vpack.c.bf16 %v814_v41, %v812_v40  ;;  %v704_v44 = vpop.f32.mrb[32].mxu0 }
 0x16d   : > { %v705_v45 = vadd.f32 %v704_v44, %v2699_v54  ;;  %v706_v46 = vpop.f32.mrb[33].mxu0 }
 0x16e   : > { %v707_v47 = vadd.f32 %v706_v46, %v2701_v55  ;;  %v708_v48 = vpop.f32.mrb[34].mxu0  ;;  %1102 = vmatprep.mubr.bf16.mxu1 %v862_v43 }
 0x16f   : > { %v709_v49 = vadd.f32 %v708_v48, %v2699_v54  ;;  %v710_v50 = vpop.f32.mrb[35].mxu0  ;;  %1103 = vmatmul.mubr.bf16.gmra.mrb[28].mxu1 %v861_v42  ;;  %v815_v52 = vmax.f32 %v705_v45, 0.0 }
 0x170   : > { %v711_v51 = vadd.f32 %v710_v50, %v2701_v55  ;;  %v816_v56 = vmax.f32 %v707_v47, 0.0 }
 0x171   : > { %v817_v53 = vmax.f32 %v709_v49, 0.0 }
 0x172   : > { %v818_v57 = vmax.f32 %v711_v51, 0.0 }
 0x173   : > { %v863_v58 = vpack.c.bf16 %v817_v53, %v815_v52  ;;  %v2297_v53 = vld [vmem:[%s3016_s5 + $0x10] sm:$0xff]  }
 0x174   : > { %v864_v59 = vpack.c.bf16 %v818_v57, %v816_v56  ;;  %v714_v60 = vpop.f32.mrb[36].mxu0  ;;  %2117 = vmatprep.subr.bf16.mxu0 %v2297_v53 }
 0x175   : > { %v715_v61 = vadd.f32 %v714_v60, %v2699_v54  ;;  %v716_v62 = vpop.f32.mrb[37].mxu0  ;;  %2118 = vmatpush3.bf16.msra.mxu0 %v2297_v53 }
 0x176   : > { %v717_v63 = vadd.f32 %v716_v62, %v2701_v55  ;;  %v718_v0 = vpop.f32.mrb[38].mxu0  ;;  %1110 = vmatprep.mubr.bf16.mxu1 %v864_v59 }
 0x177   : > { %v719_v1 = vadd.f32 %v718_v0, %v2699_v54  ;;  %v720_v2 = vpop.f32.mrb[39].mxu0  ;;  %1111 = vmatmul.mubr.bf16.gmra.mrb[32].mxu1 %v863_v58  ;;  %v819_v4 = vmax.f32 %v715_v61, 0.0 }
 0x178   : > { %v721_v3 = vadd.f32 %v720_v2, %v2701_v55  ;;  %v820_v6 = vmax.f32 %v717_v63, 0.0  ;;  %v2298_v63 = vld [vmem:[%s3016_s5 + $0x18] sm:$0xff]  }
 0x179   : > { %v821_v5 = vmax.f32 %v719_v1, 0.0  ;;  %2119 = vmatprep.subr.bf16.mxu0 %v2298_v63 }
 0x17a   : > { %v822_v7 = vmax.f32 %v721_v3, 0.0  ;;  %2120 = vmatpush3.bf16.msra.mxu0 %v2298_v63 }
 0x17b   : > { %v865_v8 = vpack.c.bf16 %v821_v5, %v819_v4 }
 0x17c   : > { %v866_v9 = vpack.c.bf16 %v822_v7, %v820_v6  ;;  %v724_v10 = vpop.f32.mrb[40].mxu0 }
 0x17d   : > { %v725_v11 = vadd.f32 %v724_v10, %v2699_v54  ;;  %v726_v12 = vpop.f32.mrb[41].mxu0 }
 0x17e   : > { %v727_v13 = vadd.f32 %v726_v12, %v2701_v55  ;;  %v728_v14 = vpop.f32.mrb[42].mxu0  ;;  %1118 = vmatprep.mubr.bf16.mxu1 %v866_v9 }
 0x17f   : > { %v729_v15 = vadd.f32 %v728_v14, %v2699_v54  ;;  %v730_v16 = vpop.f32.mrb[43].mxu0  ;;  %1119 = vmatmul.mubr.bf16.gmra.mrb[36].mxu1 %v865_v8  ;;  %v823_v18 = vmax.f32 %v725_v11, 0.0 }
 0x180   : > { %v731_v17 = vadd.f32 %v730_v16, %v2701_v55  ;;  %v824_v20 = vmax.f32 %v727_v13, 0.0 }
 0x181   : > { %v825_v19 = vmax.f32 %v729_v15, 0.0 }
 0x182   : > { %v826_v21 = vmax.f32 %v731_v17, 0.0 }
 0x183   : > { %v867_v22 = vpack.c.bf16 %v825_v19, %v823_v18 }
 0x184   : > { %v868_v23 = vpack.c.bf16 %v826_v21, %v824_v20  ;;  %v734_v24 = vpop.f32.mrb[44].mxu0 }
 0x185   : > { %v735_v25 = vadd.f32 %v734_v24, %v2699_v54  ;;  %v736_v26 = vpop.f32.mrb[45].mxu0 }
 0x186   : > { %v737_v27 = vadd.f32 %v736_v26, %v2701_v55  ;;  %v738_v28 = vpop.f32.mrb[46].mxu0  ;;  %1126 = vmatprep.mubr.bf16.mxu1 %v868_v23 }
 0x187   : > { %v739_v29 = vadd.f32 %v738_v28, %v2699_v54  ;;  %v740_v30 = vpop.f32.mrb[47].mxu0  ;;  %1127 = vmatmul.mubr.bf16.gmra.mrb[40].mxu1 %v867_v22  ;;  %v827_v32 = vmax.f32 %v735_v25, 0.0 }
 0x188   : > { %v741_v31 = vadd.f32 %v740_v30, %v2701_v55  ;;  %v828_v34 = vmax.f32 %v737_v27, 0.0 }
 0x189   : > { %v829_v33 = vmax.f32 %v739_v29, 0.0 }
 0x18a   : > { %v830_v35 = vmax.f32 %v741_v31, 0.0 }
 0x18b   : > { %v869_v36 = vpack.c.bf16 %v829_v33, %v827_v32 }
 0x18c   : > { %v870_v37 = vpack.c.bf16 %v830_v35, %v828_v34  ;;  %v744_v38 = vpop.f32.mrb[48].mxu0  ;;  %v2782_v35 = vld [vmem:[%s3015_s4] ss:$0 sm:$0xff] }
 0x18d   : > { %v745_v39 = vadd.f32 %v744_v38, %v2699_v54  ;;  %v746_v40 = vpop.f32.mrb[49].mxu0 }
 0x18e   : > { %v747_v41 = vadd.f32 %v746_v40, %v2701_v55  ;;  %v748_v42 = vpop.f32.mrb[50].mxu0  ;;  %1134 = vmatprep.mubr.bf16.mxu1 %v870_v37  ;;  %v1520_v40 = vld [vmem:[%s3018_s7] sm:$0xf] }
 0x18f   : > { %v749_v43 = vadd.f32 %v748_v42, %v2699_v54  ;;  %v750_v44 = vpop.f32.mrb[51].mxu0  ;;  %1135 = vmatmul.mubr.bf16.gmra.mrb[44].mxu1 %v869_v36  ;;  %v831_v46 = vmax.f32 %v745_v39, 0.0  ;;  %2187 = vmatprep.subr.msk.bf16.mxu1 %vm1577_vm0, %v1520_v40 }
 0x190   : > { %v751_v45 = vadd.f32 %v750_v44, %v2701_v55  ;;  %v832_v48 = vmax.f32 %v747_v41, 0.0  ;;  %v1579_v41 = vsel %vm1577_vm0, %v1520_v40, 0 }
 0x191   : > { %v833_v47 = vmax.f32 %v749_v43, 0.0  ;;  %2154 = vmatpush3.bf16.msra.mxu1 %v1579_v41 }
 0x192   : > { %v834_v49 = vmax.f32 %v751_v45, 0.0 }
 0x193   : > { %v871_v50 = vpack.c.bf16 %v833_v47, %v831_v46 }
 0x194   : > { %v872_v51 = vpack.c.bf16 %v834_v49, %v832_v48  ;;  %v754_v52 = vpop.f32.mrb[52].mxu0 }
 0x195   : > { %v755_v56 = vadd.f32 %v754_v52, %v2699_v54  ;;  %v756_v57 = vpop.f32.mrb[53].mxu0 }
 0x196   : > { %v757_v58 = vadd.f32 %v756_v57, %v2701_v55  ;;  %v758_v59 = vpop.f32.mrb[54].mxu0  ;;  %1142 = vmatprep.mubr.bf16.mxu1 %v872_v51 }
 0x197   : > { %v759_v60 = vadd.f32 %v758_v59, %v2699_v54  ;;  %v760_v61 = vpop.f32.mrb[55].mxu0  ;;  %1143 = vmatmul.mubr.bf16.gmra.mrb[48].mxu1 %v871_v50  ;;  %v835_v0 = vmax.f32 %v755_v56, 0.0 }
 0x198   : > { %v761_v62 = vadd.f32 %v760_v61, %v2701_v55  ;;  %v836_v2 = vmax.f32 %v757_v58, 0.0 }
 0x199   : > { %v837_v1 = vmax.f32 %v759_v60, 0.0 }
 0x19a   : > { %v838_v3 = vmax.f32 %v761_v62, 0.0 }
 0x19b   : > { %v873_v4 = vpack.c.bf16 %v837_v1, %v835_v0 }
 0x19c   : > { %v874_v5 = vpack.c.bf16 %v838_v3, %v836_v2  ;;  %v764_v6 = vpop.f32.mrb[56].mxu0 }
 0x19d   : > { %v765_v7 = vadd.f32 %v764_v6, %v2699_v54  ;;  %v766_v8 = vpop.f32.mrb[57].mxu0 }
 0x19e   : > { %v767_v9 = vadd.f32 %v766_v8, %v2701_v55  ;;  %v768_v10 = vpop.f32.mrb[58].mxu0  ;;  %1150 = vmatprep.mubr.bf16.mxu1 %v874_v5 }
 0x19f   : > { %v769_v11 = vadd.f32 %v768_v10, %v2699_v54  ;;  %v770_v12 = vpop.f32.mrb[59].mxu0  ;;  %1151 = vmatmul.mubr.bf16.gmra.mrb[52].mxu1 %v873_v4  ;;  %v839_v14 = vmax.f32 %v765_v7, 0.0 }
 0x1a0   : > { %v771_v13 = vadd.f32 %v770_v12, %v2701_v55  ;;  %v840_v16 = vmax.f32 %v767_v9, 0.0 }
 0x1a1   : > { %v841_v15 = vmax.f32 %v769_v11, 0.0 }
 0x1a2   : > { %v842_v17 = vmax.f32 %v771_v13, 0.0 }
 0x1a3   : > { %v875_v18 = vpack.c.bf16 %v841_v15, %v839_v14 }
 0x1a4   : > { %v876_v19 = vpack.c.bf16 %v842_v17, %v840_v16  ;;  %v774_v20 = vpop.f32.mrb[60].mxu0 }
 0x1a5   : > { %v775_v21 = vadd.f32 %v774_v20, %v2699_v54  ;;  %v776_v22 = vpop.f32.mrb[61].mxu0 }
 0x1a6   : > { %v777_v23 = vadd.f32 %v776_v22, %v2701_v55  ;;  %v778_v24 = vpop.f32.mrb[62].mxu0  ;;  %1158 = vmatprep.mubr.bf16.mxu1 %v876_v19 }
 0x1a7   : > { %v779_v25 = vadd.f32 %v778_v24, %v2699_v54  ;;  %v780_v26 = vpop.f32.mrb[63].mxu0  ;;  %1159 = vmatmul.mubr.bf16.gmra.mrb[56].mxu1 %v875_v18  ;;  %v843_v28 = vmax.f32 %v775_v21, 0.0 }
 0x1a8   : > { %v781_v27 = vadd.f32 %v780_v26, %v2701_v55  ;;  %v844_v30 = vmax.f32 %v777_v23, 0.0 }
 0x1a9   : > { %v845_v29 = vmax.f32 %v779_v25, 0.0 }
 0x1aa   : > { %v846_v31 = vmax.f32 %v781_v27, 0.0 }
 0x1ab   : > { %v877_v32 = vpack.c.bf16 %v845_v29, %v843_v28 }
 0x1ac   : > { %v878_v33 = vpack.c.bf16 %v846_v31, %v844_v30 }
 0x1ae   : > { %1166 = vmatprep.mubr.bf16.mxu1 %v878_v33 }
 0x1af   : > { %1167 = vmatmul.mubr.bf16.gmra.mrb[60].mxu1 %v877_v32 }
 0x20a   : > { %v1980_v34 = vpop.f32.mrb[0].mxu1 }
 0x20b   : > { %v1981_v36 = vpop.f32.mrb[1].mxu1 }
 0x20c   : > { %v1982_v54 = vadd.f32 %v1981_v36, %v1980_v34  ;;  %v1983_v37 = vpop.f32.mrb[2].mxu1 }
 0x20d   : > { %v1984_v38 = vpop.f32.mrb[3].mxu1 }
 0x20e   : > { %v1049_v55 = vadd.f32 %v1982_v54, %v2782_v35  ;;  %v1985_v39 = vadd.f32 %v1984_v38, %v1983_v37 }
 0x210   : > { %v1052_v42 = vadd.f32 %v1985_v39, %v2782_v35  ;;  %v1175_v43 = vmax.f32 %v1049_v55, 0.0 }
 0x212   : > { %v1176_v44 = vmax.f32 %v1052_v42, 0.0  ;;  %v1986_v45 = vpop.f32.mrb[4].mxu1 }
 0x213   : > { %v1987_v46 = vpop.f32.mrb[5].mxu1 }
 0x214   : > { %v1207_v47 = vpack.c.bf16 %v1176_v44, %v1175_v43  ;;  %v1988_v48 = vadd.f32 %v1987_v46, %v1986_v45  ;;  %v1989_v49 = vpop.f32.mrb[6].mxu1 }
 0x215   : > { %v1990_v50 = vpop.f32.mrb[7].mxu1 }
 0x216   : > { %v1057_v51 = vadd.f32 %v1988_v48, %v2782_v35  ;;  %v1991_v52 = vadd.f32 %v1990_v50, %v1989_v49  ;;  %2121 = vmatprep.mubr.msk.bf16.mxu0 %vm1262_vm1, %v1207_v47 }
 0x218   : > { %v1060_v53 = vadd.f32 %v1991_v52, %v2782_v35  ;;  %v1177_v56 = vmax.f32 %v1057_v51, 0.0 }
 0x21a   : > { %v1178_v57 = vmax.f32 %v1060_v53, 0.0  ;;  %v1992_v58 = vpop.f32.mrb[8].mxu1 }
 0x21b   : > { %v1993_v59 = vpop.f32.mrb[9].mxu1 }
 0x21c   : > { %v1208_v60 = vpack.c.bf16 %v1178_v57, %v1177_v56  ;;  %v1994_v61 = vadd.f32 %v1993_v59, %v1992_v58  ;;  %v1995_v62 = vpop.f32.mrb[10].mxu1 }
 0x21d   : > { %v1996_v63 = vpop.f32.mrb[11].mxu1 }
 0x21e   : > { %v1065_v0 = vadd.f32 %v1994_v61, %v2782_v35  ;;  %v1997_v1 = vadd.f32 %v1996_v63, %v1995_v62  ;;  %2122 = vmatmul.mubr.msk.bf16.vlgmr.msra.gmra.mrb[64].mxu0 %vm1262_vm1, %v1208_v60 }
 0x220   : > { %v1068_v2 = vadd.f32 %v1997_v1, %v2782_v35  ;;  %v1179_v3 = vmax.f32 %v1065_v0, 0.0 }
 0x222   : > { %v1180_v4 = vmax.f32 %v1068_v2, 0.0  ;;  %v1998_v5 = vpop.f32.mrb[12].mxu1 }
 0x223   : > { %v1999_v6 = vpop.f32.mrb[13].mxu1 }
 0x224   : > { %v1209_v7 = vpack.c.bf16 %v1180_v4, %v1179_v3  ;;  %v2000_v8 = vadd.f32 %v1999_v6, %v1998_v5  ;;  %v2001_v9 = vpop.f32.mrb[14].mxu1 }
 0x225   : > { %v2002_v10 = vpop.f32.mrb[15].mxu1 }
 0x226   : > { %v1073_v11 = vadd.f32 %v2000_v8, %v2782_v35  ;;  %v2003_v12 = vadd.f32 %v2002_v10, %v2001_v9  ;;  %2125 = vmatprep.mubr.msk.bf16.mxu0 %vm1262_vm1, %v1209_v7 }
 0x228   : > { %v1076_v13 = vadd.f32 %v2003_v12, %v2782_v35  ;;  %v1181_v14 = vmax.f32 %v1073_v11, 0.0 }
 0x22a   : > { %v1182_v15 = vmax.f32 %v1076_v13, 0.0  ;;  %v2004_v16 = vpop.f32.mrb[16].mxu1 }
 0x22b   : > { %v2005_v17 = vpop.f32.mrb[17].mxu1 }
 0x22c   : > { %v1210_v18 = vpack.c.bf16 %v1182_v15, %v1181_v14  ;;  %v2006_v19 = vadd.f32 %v2005_v17, %v2004_v16  ;;  %v2007_v20 = vpop.f32.mrb[18].mxu1 }
 0x22d   : > { %v2008_v21 = vpop.f32.mrb[19].mxu1 }
 0x22e   : > { %v1081_v22 = vadd.f32 %v2006_v19, %v2782_v35  ;;  %v2009_v23 = vadd.f32 %v2008_v21, %v2007_v20  ;;  %2126 = vmatmul.mubr.msk.bf16.gmra.mrb[68].mxu0 %vm1262_vm1, %v1210_v18 }
 0x230   : > { %v1084_v24 = vadd.f32 %v2009_v23, %v2782_v35  ;;  %v1183_v25 = vmax.f32 %v1081_v22, 0.0 }
 0x232   : > { %v1184_v26 = vmax.f32 %v1084_v24, 0.0  ;;  %v2010_v27 = vpop.f32.mrb[20].mxu1 }
 0x233   : > { %v2011_v28 = vpop.f32.mrb[21].mxu1 }
 0x234   : > { %v1211_v29 = vpack.c.bf16 %v1184_v26, %v1183_v25  ;;  %v2012_v30 = vadd.f32 %v2011_v28, %v2010_v27  ;;  %v2013_v31 = vpop.f32.mrb[22].mxu1 }
 0x235   : > { %v2014_v32 = vpop.f32.mrb[23].mxu1 }
 0x236   : > { %v1089_v33 = vadd.f32 %v2012_v30, %v2782_v35  ;;  %v2015_v34 = vadd.f32 %v2014_v32, %v2013_v31  ;;  %2129 = vmatprep.mubr.msk.bf16.mxu0 %vm1262_vm1, %v1211_v29 }
 0x238   : > { %v1092_v36 = vadd.f32 %v2015_v34, %v2782_v35  ;;  %v1185_v54 = vmax.f32 %v1089_v33, 0.0 }
 0x23a   : > { %v1186_v37 = vmax.f32 %v1092_v36, 0.0  ;;  %v2016_v38 = vpop.f32.mrb[24].mxu1 }
 0x23b   : > { %v2017_v55 = vpop.f32.mrb[25].mxu1 }
 0x23c   : > { %v1212_v39 = vpack.c.bf16 %v1186_v37, %v1185_v54  ;;  %v2018_v40 = vadd.f32 %v2017_v55, %v2016_v38  ;;  %v2019_v41 = vpop.f32.mrb[26].mxu1 }
 0x23d   : > { %v2020_v42 = vpop.f32.mrb[27].mxu1 }
 0x23e   : > { %v1097_v43 = vadd.f32 %v2018_v40, %v2782_v35  ;;  %v2021_v44 = vadd.f32 %v2020_v42, %v2019_v41  ;;  %2130 = vmatmul.mubr.msk.bf16.gmra.mrb[72].mxu0 %vm1262_vm1, %v1212_v39 }
 0x240   : > { %v1100_v45 = vadd.f32 %v2021_v44, %v2782_v35  ;;  %v1187_v46 = vmax.f32 %v1097_v43, 0.0 }
 0x242   : > { %v1188_v47 = vmax.f32 %v1100_v45, 0.0  ;;  %v2022_v48 = vpop.f32.mrb[28].mxu1 }
 0x243   : > { %v2023_v49 = vpop.f32.mrb[29].mxu1 }
 0x244   : > { %v1213_v50 = vpack.c.bf16 %v1188_v47, %v1187_v46  ;;  %v2024_v51 = vadd.f32 %v2023_v49, %v2022_v48  ;;  %v2025_v52 = vpop.f32.mrb[30].mxu1 }
 0x245   : > { %v2026_v53 = vpop.f32.mrb[31].mxu1 }
 0x246   : > { %v1105_v56 = vadd.f32 %v2024_v51, %v2782_v35  ;;  %v2027_v57 = vadd.f32 %v2026_v53, %v2025_v52  ;;  %2133 = vmatprep.mubr.msk.bf16.mxu0 %vm1262_vm1, %v1213_v50 }
 0x248   : > { %v1108_v58 = vadd.f32 %v2027_v57, %v2782_v35  ;;  %v1189_v59 = vmax.f32 %v1105_v56, 0.0 }
 0x24a   : > { %v1190_v60 = vmax.f32 %v1108_v58, 0.0  ;;  %v2028_v61 = vpop.f32.mrb[32].mxu1 }
 0x24b   : > { %v2029_v62 = vpop.f32.mrb[33].mxu1 }
 0x24c   : > { %v1214_v63 = vpack.c.bf16 %v1190_v60, %v1189_v59  ;;  %v2030_v0 = vadd.f32 %v2029_v62, %v2028_v61  ;;  %v2031_v1 = vpop.f32.mrb[34].mxu1 }
 0x24d   : > { %v2032_v2 = vpop.f32.mrb[35].mxu1 }
 0x24e   : > { %v1113_v3 = vadd.f32 %v2030_v0, %v2782_v35  ;;  %v2033_v4 = vadd.f32 %v2032_v2, %v2031_v1  ;;  %2134 = vmatmul.mubr.msk.bf16.gmra.mrb[76].mxu0 %vm1262_vm1, %v1214_v63 }
 0x250   : > { %v1116_v5 = vadd.f32 %v2033_v4, %v2782_v35  ;;  %v1191_v6 = vmax.f32 %v1113_v3, 0.0 }
 0x252   : > { %v1192_v7 = vmax.f32 %v1116_v5, 0.0  ;;  %v2034_v8 = vpop.f32.mrb[36].mxu1 }
 0x253   : > { %v2035_v9 = vpop.f32.mrb[37].mxu1 }
 0x254   : > { %v1215_v10 = vpack.c.bf16 %v1192_v7, %v1191_v6  ;;  %v2036_v11 = vadd.f32 %v2035_v9, %v2034_v8  ;;  %v2037_v12 = vpop.f32.mrb[38].mxu1 }
 0x255   : > { %v2038_v13 = vpop.f32.mrb[39].mxu1 }
 0x256   : > { %v1121_v14 = vadd.f32 %v2036_v11, %v2782_v35  ;;  %v2039_v15 = vadd.f32 %v2038_v13, %v2037_v12  ;;  %2137 = vmatprep.mubr.msk.bf16.mxu0 %vm1262_vm1, %v1215_v10 }
 0x258   : > { %v1124_v16 = vadd.f32 %v2039_v15, %v2782_v35  ;;  %v1193_v17 = vmax.f32 %v1121_v14, 0.0 }
 0x25a   : > { %v1194_v18 = vmax.f32 %v1124_v16, 0.0  ;;  %v2040_v19 = vpop.f32.mrb[40].mxu1 }
 0x25b   : > { %v2041_v20 = vpop.f32.mrb[41].mxu1 }
 0x25c   : > { %v1216_v21 = vpack.c.bf16 %v1194_v18, %v1193_v17  ;;  %v2042_v22 = vadd.f32 %v2041_v20, %v2040_v19  ;;  %v2043_v23 = vpop.f32.mrb[42].mxu1 }
 0x25d   : > { %v2044_v24 = vpop.f32.mrb[43].mxu1 }
 0x25e   : > { %v1129_v25 = vadd.f32 %v2042_v22, %v2782_v35  ;;  %v2045_v26 = vadd.f32 %v2044_v24, %v2043_v23  ;;  %2138 = vmatmul.mubr.msk.bf16.gmra.mrb[80].mxu0 %vm1262_vm1, %v1216_v21  ;;  %v2838_v23 = vld [vmem:[%s3017_s6] ss:$0 sm:$0xff] }
 0x260   : > { %v1132_v27 = vadd.f32 %v2045_v26, %v2782_v35  ;;  %v1195_v28 = vmax.f32 %v1129_v25, 0.0 }
 0x262   : > { %v1196_v29 = vmax.f32 %v1132_v27, 0.0  ;;  %v2046_v30 = vpop.f32.mrb[44].mxu1 }
 0x263   : > { %v2047_v31 = vpop.f32.mrb[45].mxu1 }
 0x264   : > { %v1217_v32 = vpack.c.bf16 %v1196_v29, %v1195_v28  ;;  %v2048_v33 = vadd.f32 %v2047_v31, %v2046_v30  ;;  %v2049_v34 = vpop.f32.mrb[46].mxu1 }
 0x265   : > { %v2050_v36 = vpop.f32.mrb[47].mxu1 }
 0x266   : > { %v1137_v54 = vadd.f32 %v2048_v33, %v2782_v35  ;;  %v2051_v37 = vadd.f32 %v2050_v36, %v2049_v34  ;;  %2141 = vmatprep.mubr.msk.bf16.mxu0 %vm1262_vm1, %v1217_v32 }
 0x268   : > { %v1140_v38 = vadd.f32 %v2051_v37, %v2782_v35  ;;  %v1197_v55 = vmax.f32 %v1137_v54, 0.0 }
 0x26a   : > { %v1198_v39 = vmax.f32 %v1140_v38, 0.0  ;;  %v2052_v40 = vpop.f32.mrb[48].mxu1 }
 0x26b   : > { %v2053_v41 = vpop.f32.mrb[49].mxu1 }
 0x26c   : > { %v1218_v42 = vpack.c.bf16 %v1198_v39, %v1197_v55  ;;  %v2054_v43 = vadd.f32 %v2053_v41, %v2052_v40  ;;  %v2055_v44 = vpop.f32.mrb[50].mxu1 }
 0x26d   : > { %v2056_v45 = vpop.f32.mrb[51].mxu1 }
 0x26e   : > { %v1145_v46 = vadd.f32 %v2054_v43, %v2782_v35  ;;  %v2057_v47 = vadd.f32 %v2056_v45, %v2055_v44  ;;  %2142 = vmatmul.mubr.msk.bf16.gmra.mrb[84].mxu0 %vm1262_vm1, %v1218_v42 }
 0x270   : > { %v1148_v48 = vadd.f32 %v2057_v47, %v2782_v35  ;;  %v1199_v49 = vmax.f32 %v1145_v46, 0.0 }
 0x272   : > { %v1200_v50 = vmax.f32 %v1148_v48, 0.0  ;;  %v2058_v51 = vpop.f32.mrb[52].mxu1 }
 0x273   : > { %v2059_v52 = vpop.f32.mrb[53].mxu1 }
 0x274   : > { %v1219_v53 = vpack.c.bf16 %v1200_v50, %v1199_v49  ;;  %v2060_v56 = vadd.f32 %v2059_v52, %v2058_v51  ;;  %v2061_v57 = vpop.f32.mrb[54].mxu1 }
 0x275   : > { %v2062_v58 = vpop.f32.mrb[55].mxu1 }
 0x276   : > { %v1153_v59 = vadd.f32 %v2060_v56, %v2782_v35  ;;  %v2063_v60 = vadd.f32 %v2062_v58, %v2061_v57  ;;  %2145 = vmatprep.mubr.msk.bf16.mxu0 %vm1262_vm1, %v1219_v53 }
 0x278   : > { %v1156_v61 = vadd.f32 %v2063_v60, %v2782_v35  ;;  %v1201_v62 = vmax.f32 %v1153_v59, 0.0 }
 0x27a   : > { %v1202_v63 = vmax.f32 %v1156_v61, 0.0  ;;  %v2064_v0 = vpop.f32.mrb[56].mxu1 }
 0x27b   : > { %v2065_v1 = vpop.f32.mrb[57].mxu1 }
 0x27c   : > { %v1220_v2 = vpack.c.bf16 %v1202_v63, %v1201_v62  ;;  %v2066_v3 = vadd.f32 %v2065_v1, %v2064_v0  ;;  %v2067_v4 = vpop.f32.mrb[58].mxu1 }
 0x27d   : > { %v2068_v5 = vpop.f32.mrb[59].mxu1 }
 0x27e   : > { %v1161_v6 = vadd.f32 %v2066_v3, %v2782_v35  ;;  %v2069_v7 = vadd.f32 %v2068_v5, %v2067_v4  ;;  %2146 = vmatmul.mubr.msk.bf16.gmra.mrb[88].mxu0 %vm1262_vm1, %v1220_v2 }
 0x280   : > { %v1164_v8 = vadd.f32 %v2069_v7, %v2782_v35  ;;  %v1203_v9 = vmax.f32 %v1161_v6, 0.0 }
 0x282   : > { %v1204_v10 = vmax.f32 %v1164_v8, 0.0  ;;  %v2070_v11 = vpop.f32.mrb[60].mxu1 }
 0x283   : > { %v2071_v12 = vpop.f32.mrb[61].mxu1 }
 0x284   : > { %v1221_v13 = vpack.c.bf16 %v1204_v10, %v1203_v9  ;;  %v2072_v14 = vadd.f32 %v2071_v12, %v2070_v11  ;;  %v2073_v15 = vpop.f32.mrb[62].mxu1 }
 0x285   : > { %v2074_v16 = vpop.f32.mrb[63].mxu1 }
 0x286   : > { %v1169_v17 = vadd.f32 %v2072_v14, %v2782_v35  ;;  %v2075_v18 = vadd.f32 %v2074_v16, %v2073_v15  ;;  %2149 = vmatprep.mubr.msk.bf16.mxu0 %vm1262_vm1, %v1221_v13 }
 0x288   : > { %v1172_v19 = vadd.f32 %v2075_v18, %v2782_v35  ;;  %v1205_v20 = vmax.f32 %v1169_v17, 0.0 }
 0x28a   : > { %v1206_v21 = vmax.f32 %v1172_v19, 0.0 }
 0x28c   : > { %v1222_v22 = vpack.c.bf16 %v1206_v21, %v1205_v20 }
 0x28e   : > { %2150 = vmatmul.mubr.msk.bf16.gmra.mrb[92].mxu0 %vm1262_vm1, %v1222_v22 }
 0x2f1   : > { %v2123_v24 = vpop.f32.mrb[64].mxu0 }
 0x2f2   : > { %v1354_v25 = vadd.f32 %v2123_v24, %v2838_v23  ;;  %v1345_v26 = vpop.f32.mrb[65].mxu0 }
 0x2f3   : > { %v1346_v27 = vadd.f32 %v2838_v23, %v1345_v26  ;;  %v2124_v28 = vpop.f32.mrb[66].mxu0 }
 0x2f4   : > { %v1357_v29 = vadd.f32 %v2124_v28, %v2838_v23  ;;  %v1348_v35 = vpop.f32.mrb[67].mxu0  ;;  %v1474_v31 = vmax.f32 %v1354_v25, 0.0 }
 0x2f5   : > { %v1349_v30 = vadd.f32 %v2838_v23, %v1348_v35  ;;  %v1472_v33 = vmax.f32 %v1346_v27, 0.0 }
 0x2f6   : > { %v1475_v32 = vmax.f32 %v1357_v29, 0.0 }
 0x2f7   : > { %v1473_v34 = vmax.f32 %v1349_v30, 0.0 }
 0x2f8   : > { %v1505_v36 = vpack.c.bf16 %v1475_v32, %v1474_v31 }
 0x2f9   : > { %v1504_v54 = vpack.c.bf16 %v1473_v34, %v1472_v33 }
 0x2fb   : > { %2155 = vmatprep.mubr.msk.bf16.mxu1 %vm1528_vm2, %v1504_v54 }
 0x2fc   : > { %2156 = vmatmul.mubr.msk.bf16.vlgmr.msra.gmra.mrb[64].mxu1 %vm1528_vm2, %v1505_v36 }
 0x301   : > { %v2127_v37 = vpop.f32.mrb[68].mxu0 }
 0x302   : > { %v1370_v38 = vadd.f32 %v2127_v37, %v2838_v23  ;;  %v1361_v55 = vpop.f32.mrb[69].mxu0 }
 0x303   : > { %v1362_v39 = vadd.f32 %v2838_v23, %v1361_v55  ;;  %v2128_v40 = vpop.f32.mrb[70].mxu0 }
 0x304   : > { %v1373_v41 = vadd.f32 %v2128_v40, %v2838_v23  ;;  %v1364_v42 = vpop.f32.mrb[71].mxu0  ;;  %v1478_v44 = vmax.f32 %v1370_v38, 0.0 }
 0x305   : > { %v1365_v43 = vadd.f32 %v2838_v23, %v1364_v42  ;;  %v1476_v46 = vmax.f32 %v1362_v39, 0.0 }
 0x306   : > { %v1479_v45 = vmax.f32 %v1373_v41, 0.0 }
 0x307   : > { %v1477_v47 = vmax.f32 %v1365_v43, 0.0 }
 0x308   : > { %v1507_v48 = vpack.c.bf16 %v1479_v45, %v1478_v44 }
 0x309   : > { %v1506_v49 = vpack.c.bf16 %v1477_v47, %v1476_v46 }
 0x30b   : > { %2159 = vmatprep.mubr.msk.bf16.mxu1 %vm1528_vm2, %v1506_v49 }
 0x30c   : > { %2160 = vmatmul.mubr.msk.bf16.gmra.mrb[68].mxu1 %vm1528_vm2, %v1507_v48 }
 0x311   : > { %v2131_v50 = vpop.f32.mrb[72].mxu0 }
 0x312   : > { %v1386_v51 = vadd.f32 %v2131_v50, %v2838_v23  ;;  %v1377_v52 = vpop.f32.mrb[73].mxu0 }
 0x313   : > { %v1378_v53 = vadd.f32 %v2838_v23, %v1377_v52  ;;  %v2132_v56 = vpop.f32.mrb[74].mxu0 }
 0x314   : > { %v1389_v57 = vadd.f32 %v2132_v56, %v2838_v23  ;;  %v1380_v58 = vpop.f32.mrb[75].mxu0  ;;  %v1482_v60 = vmax.f32 %v1386_v51, 0.0 }
 0x315   : > { %v1381_v59 = vadd.f32 %v2838_v23, %v1380_v58  ;;  %v1480_v62 = vmax.f32 %v1378_v53, 0.0 }
 0x316   : > { %v1483_v61 = vmax.f32 %v1389_v57, 0.0 }
 0x317   : > { %v1481_v63 = vmax.f32 %v1381_v59, 0.0 }
 0x318   : > { %v1509_v0 = vpack.c.bf16 %v1483_v61, %v1482_v60 }
 0x319   : > { %v1508_v1 = vpack.c.bf16 %v1481_v63, %v1480_v62 }
 0x31b   : > { %2163 = vmatprep.mubr.msk.bf16.mxu1 %vm1528_vm2, %v1508_v1 }
 0x31c   : > { %2164 = vmatmul.mubr.msk.bf16.gmra.mrb[72].mxu1 %vm1528_vm2, %v1509_v0 }
 0x321   : > { %v2135_v2 = vpop.f32.mrb[76].mxu0 }
 0x322   : > { %v1402_v3 = vadd.f32 %v2135_v2, %v2838_v23  ;;  %v1393_v4 = vpop.f32.mrb[77].mxu0 }
 0x323   : > { %v1394_v5 = vadd.f32 %v2838_v23, %v1393_v4  ;;  %v2136_v6 = vpop.f32.mrb[78].mxu0 }
 0x324   : > { %v1405_v7 = vadd.f32 %v2136_v6, %v2838_v23  ;;  %v1396_v8 = vpop.f32.mrb[79].mxu0  ;;  %v1486_v10 = vmax.f32 %v1402_v3, 0.0 }
 0x325   : > { %v1397_v9 = vadd.f32 %v2838_v23, %v1396_v8  ;;  %v1484_v12 = vmax.f32 %v1394_v5, 0.0 }
 0x326   : > { %v1487_v11 = vmax.f32 %v1405_v7, 0.0 }
 0x327   : > { %v1485_v13 = vmax.f32 %v1397_v9, 0.0  ;;  %v2892_v9 = vld [vmem:[%s3019_s8] ss:$0 sm:$0xff] }
 0x328   : > { %v1511_v14 = vpack.c.bf16 %v1487_v11, %v1486_v10 }
 0x329   : > { %v1510_v15 = vpack.c.bf16 %v1485_v13, %v1484_v12 }
 0x32b   : > { %2167 = vmatprep.mubr.msk.bf16.mxu1 %vm1528_vm2, %v1510_v15 }
 0x32c   : > { %2168 = vmatmul.mubr.msk.bf16.gmra.mrb[76].mxu1 %vm1528_vm2, %v1511_v14 }
 0x331   : > { %v2139_v16 = vpop.f32.mrb[80].mxu0 }
 0x332   : > { %v1418_v17 = vadd.f32 %v2139_v16, %v2838_v23  ;;  %v1409_v18 = vpop.f32.mrb[81].mxu0 }
 0x333   : > { %v1410_v19 = vadd.f32 %v2838_v23, %v1409_v18  ;;  %v2140_v20 = vpop.f32.mrb[82].mxu0 }
 0x334   : > { %v1421_v21 = vadd.f32 %v2140_v20, %v2838_v23  ;;  %v1412_v22 = vpop.f32.mrb[83].mxu0  ;;  %v1490_v25 = vmax.f32 %v1418_v17, 0.0 }
 0x335   : > { %v1413_v24 = vadd.f32 %v2838_v23, %v1412_v22  ;;  %v1488_v27 = vmax.f32 %v1410_v19, 0.0 }
 0x336   : > { %v1491_v26 = vmax.f32 %v1421_v21, 0.0 }
 0x337   : > { %v1489_v28 = vmax.f32 %v1413_v24, 0.0 }
 0x338   : > { %v1513_v29 = vpack.c.bf16 %v1491_v26, %v1490_v25 }
 0x339   : > { %v1512_v35 = vpack.c.bf16 %v1489_v28, %v1488_v27 }
 0x33b   : > { %2171 = vmatprep.mubr.msk.bf16.mxu1 %vm1528_vm2, %v1512_v35 }
 0x33c   : > { %2172 = vmatmul.mubr.msk.bf16.gmra.mrb[80].mxu1 %vm1528_vm2, %v1513_v29 }
 0x341   : > { %v2143_v30 = vpop.f32.mrb[84].mxu0 }
 0x342   : > { %v1434_v31 = vadd.f32 %v2143_v30, %v2838_v23  ;;  %v1425_v32 = vpop.f32.mrb[85].mxu0 }
 0x343   : > { %v1426_v33 = vadd.f32 %v2838_v23, %v1425_v32  ;;  %v2144_v34 = vpop.f32.mrb[86].mxu0 }
 0x344   : > { %v1437_v36 = vadd.f32 %v2144_v34, %v2838_v23  ;;  %v1428_v54 = vpop.f32.mrb[87].mxu0  ;;  %v1494_v38 = vmax.f32 %v1434_v31, 0.0 }
 0x345   : > { %v1429_v37 = vadd.f32 %v2838_v23, %v1428_v54  ;;  %v1492_v39 = vmax.f32 %v1426_v33, 0.0 }
 0x346   : > { %v1495_v55 = vmax.f32 %v1437_v36, 0.0 }
 0x347   : > { %v1493_v40 = vmax.f32 %v1429_v37, 0.0 }
 0x348   : > { %v1515_v41 = vpack.c.bf16 %v1495_v55, %v1494_v38 }
 0x349   : > { %v1514_v42 = vpack.c.bf16 %v1493_v40, %v1492_v39 }
 0x34b   : > { %2175 = vmatprep.mubr.msk.bf16.mxu1 %vm1528_vm2, %v1514_v42 }
 0x34c   : > { %2176 = vmatmul.mubr.msk.bf16.gmra.mrb[84].mxu1 %vm1528_vm2, %v1515_v41 }
 0x351   : > { %v2147_v43 = vpop.f32.mrb[88].mxu0 }
 0x352   : > { %v1450_v44 = vadd.f32 %v2147_v43, %v2838_v23  ;;  %v1441_v45 = vpop.f32.mrb[89].mxu0 }
 0x353   : > { %v1442_v46 = vadd.f32 %v2838_v23, %v1441_v45  ;;  %v2148_v47 = vpop.f32.mrb[90].mxu0 }
 0x354   : > { %v1453_v48 = vadd.f32 %v2148_v47, %v2838_v23  ;;  %v1444_v49 = vpop.f32.mrb[91].mxu0  ;;  %v1498_v51 = vmax.f32 %v1450_v44, 0.0 }
 0x355   : > { %v1445_v50 = vadd.f32 %v2838_v23, %v1444_v49  ;;  %v1496_v53 = vmax.f32 %v1442_v46, 0.0 }
 0x356   : > { %v1499_v52 = vmax.f32 %v1453_v48, 0.0 }
 0x357   : > { %v1497_v56 = vmax.f32 %v1445_v50, 0.0 }
 0x358   : > { %v1517_v57 = vpack.c.bf16 %v1499_v52, %v1498_v51 }
 0x359   : > { %v1516_v58 = vpack.c.bf16 %v1497_v56, %v1496_v53 }
 0x35b   : > { %2179 = vmatprep.mubr.msk.bf16.mxu1 %vm1528_vm2, %v1516_v58 }
 0x35c   : > { %2180 = vmatmul.mubr.msk.bf16.gmra.mrb[88].mxu1 %vm1528_vm2, %v1517_v57 }
 0x361   : > { %v2151_v59 = vpop.f32.mrb[92].mxu0 }
 0x362   : > { %v1466_v60 = vadd.f32 %v2151_v59, %v2838_v23  ;;  %v1457_v61 = vpop.f32.mrb[93].mxu0 }
 0x363   : > { %v1458_v62 = vadd.f32 %v2838_v23, %v1457_v61  ;;  %v2152_v63 = vpop.f32.mrb[94].mxu0 }
 0x364   : > { %v1469_v0 = vadd.f32 %v2152_v63, %v2838_v23  ;;  %v1460_v1 = vpop.f32.mrb[95].mxu0  ;;  %v1502_v3 = vmax.f32 %v1466_v60, 0.0 }
 0x365   : > { %v1461_v2 = vadd.f32 %v2838_v23, %v1460_v1  ;;  %v1500_v5 = vmax.f32 %v1458_v62, 0.0 }
 0x366   : > { %v1503_v4 = vmax.f32 %v1469_v0, 0.0 }
 0x367   : > { %v1501_v6 = vmax.f32 %v1461_v2, 0.0 }
 0x368   : > { %v1519_v7 = vpack.c.bf16 %v1503_v4, %v1502_v3 }
 0x369   : > { %v1518_v8 = vpack.c.bf16 %v1501_v6, %v1500_v5 }
 0x36b   : > { %2183 = vmatprep.mubr.msk.bf16.mxu1 %vm1528_vm2, %v1518_v8 }
 0x36c   : > { %2184 = vmatmul.mubr.msk.bf16.gmra.mrb[92].mxu1 %vm1528_vm2, %v1519_v7 }
 0x3cf   : > { %v2157_v10 = vpop.f32.mrb[64].mxu1 }
 0x3d0   : > { %v1624_v11 = vadd.f32 %v2157_v10, %v2892_v9  ;;  %v1615_v23 = vpop.f32.mrb[65].mxu1 }
 0x3d1   : > { %v1616_v12 = vadd.f32 %v2892_v9, %v1615_v23  ;;  %v2158_v13 = vpop.f32.mrb[66].mxu1 }
 0x3d2   : > { %1744 = vst [vmem:[%s2896_s14 + $0x10] sm:$0xff] %v1624_v11  ;;  %v1627_v14 = vadd.f32 %v2158_v13, %v2892_v9  ;;  %v1618_v15 = vpop.f32.mrb[67].mxu1 }
 0x3d3   : > { %1742 = vst [vmem:[%s2896_s14] sm:$0xff] %v1616_v12  ;;  %v1619_v16 = vadd.f32 %v2892_v9, %v1618_v15 }
 0x3d4   : > { %1745 = vst [vmem:[%s2896_s14 + $0x18] sm:$0xff] %v1627_v14 }
 0x3d5   : > { %1743 = vst [vmem:[%s2896_s14 + $0x8] sm:$0xff] %v1619_v16 }
 0x3df   : > { %v2161_v17 = vpop.f32.mrb[68].mxu1 }
 0x3e0   : > { %v1640_v18 = vadd.f32 %v2161_v17, %v2892_v9  ;;  %v1631_v19 = vpop.f32.mrb[69].mxu1 }
 0x3e1   : > { %v1632_v20 = vadd.f32 %v2892_v9, %v1631_v19  ;;  %v2162_v21 = vpop.f32.mrb[70].mxu1 }
 0x3e2   : > { %1748 = vst [vmem:[%s2896_s14 + $0x30] sm:$0xff] %v1640_v18  ;;  %v1643_v22 = vadd.f32 %v2162_v21, %v2892_v9  ;;  %v1634_v24 = vpop.f32.mrb[71].mxu1 }
 0x3e3   : > { %1746 = vst [vmem:[%s2896_s14 + $0x20] sm:$0xff] %v1632_v20  ;;  %v1635_v25 = vadd.f32 %v2892_v9, %v1634_v24 }
 0x3e4   : > { %1749 = vst [vmem:[%s2896_s14 + $0x38] sm:$0xff] %v1643_v22 }
 0x3e5   : > { %1747 = vst [vmem:[%s2896_s14 + $0x28] sm:$0xff] %v1635_v25 }
 0x3ef   : > { %v2165_v26 = vpop.f32.mrb[72].mxu1 }
 0x3f0   : > { %v1656_v27 = vadd.f32 %v2165_v26, %v2892_v9  ;;  %v1647_v28 = vpop.f32.mrb[73].mxu1 }
 0x3f1   : > { %v1648_v29 = vadd.f32 %v2892_v9, %v1647_v28  ;;  %v2166_v35 = vpop.f32.mrb[74].mxu1 }
 0x3f2   : > { %1752 = vst [vmem:[%s2896_s14 + $0x50] sm:$0xff] %v1656_v27  ;;  %v1659_v30 = vadd.f32 %v2166_v35, %v2892_v9  ;;  %v1650_v31 = vpop.f32.mrb[75].mxu1 }
 0x3f3   : > { %1750 = vst [vmem:[%s2896_s14 + $0x40] sm:$0xff] %v1648_v29  ;;  %v1651_v32 = vadd.f32 %v2892_v9, %v1650_v31 }
 0x3f4   : > { %1753 = vst [vmem:[%s2896_s14 + $0x58] sm:$0xff] %v1659_v30 }
 0x3f5   : > { %1751 = vst [vmem:[%s2896_s14 + $0x48] sm:$0xff] %v1651_v32 }
 0x3ff   : > { %v2169_v33 = vpop.f32.mrb[76].mxu1 }
 0x400   : > { %v1672_v34 = vadd.f32 %v2169_v33, %v2892_v9  ;;  %v1663_v36 = vpop.f32.mrb[77].mxu1 }
 0x401   : > { %v1664_v54 = vadd.f32 %v2892_v9, %v1663_v36  ;;  %v2170_v37 = vpop.f32.mrb[78].mxu1 }
 0x402   : > { %1756 = vst [vmem:[%s2896_s14 + $0x70] sm:$0xff] %v1672_v34  ;;  %v1675_v38 = vadd.f32 %v2170_v37, %v2892_v9  ;;  %v1666_v55 = vpop.f32.mrb[79].mxu1 }
 0x403   : > { %1754 = vst [vmem:[%s2896_s14 + $0x60] sm:$0xff] %v1664_v54  ;;  %v1667_v39 = vadd.f32 %v2892_v9, %v1666_v55 }
 0x404   : > { %1757 = vst [vmem:[%s2896_s14 + $0x78] sm:$0xff] %v1675_v38 }
 0x405   : > { %1755 = vst [vmem:[%s2896_s14 + $0x68] sm:$0xff] %v1667_v39 }
 0x40f   : > { %v2173_v40 = vpop.f32.mrb[80].mxu1 }
 0x410   : > { %v1688_v41 = vadd.f32 %v2173_v40, %v2892_v9  ;;  %v1679_v42 = vpop.f32.mrb[81].mxu1 }
 0x411   : > { %v1680_v43 = vadd.f32 %v2892_v9, %v1679_v42  ;;  %v2174_v44 = vpop.f32.mrb[82].mxu1 }
 0x412   : > { %1760 = vst [vmem:[%s2896_s14 + $0x90] sm:$0xff] %v1688_v41  ;;  %v1691_v45 = vadd.f32 %v2174_v44, %v2892_v9  ;;  %v1682_v46 = vpop.f32.mrb[83].mxu1 }
 0x413   : > { %1758 = vst [vmem:[%s2896_s14 + $0x80] sm:$0xff] %v1680_v43  ;;  %v1683_v47 = vadd.f32 %v2892_v9, %v1682_v46 }
 0x414   : > { %1761 = vst [vmem:[%s2896_s14 + $0x98] sm:$0xff] %v1691_v45 }
 0x415   : > { %1759 = vst [vmem:[%s2896_s14 + $0x88] sm:$0xff] %v1683_v47 }
 0x41f   : > { %v2177_v48 = vpop.f32.mrb[84].mxu1 }
 0x420   : > { %v1704_v49 = vadd.f32 %v2177_v48, %v2892_v9  ;;  %v1695_v50 = vpop.f32.mrb[85].mxu1 }
 0x421   : > { %v1696_v51 = vadd.f32 %v2892_v9, %v1695_v50  ;;  %v2178_v52 = vpop.f32.mrb[86].mxu1 }
 0x422   : > { %1764 = vst [vmem:[%s2896_s14 + $0xb0] sm:$0xff] %v1704_v49  ;;  %v1707_v53 = vadd.f32 %v2178_v52, %v2892_v9  ;;  %v1698_v56 = vpop.f32.mrb[87].mxu1 }
 0x423   : > { %1762 = vst [vmem:[%s2896_s14 + $0xa0] sm:$0xff] %v1696_v51  ;;  %v1699_v57 = vadd.f32 %v2892_v9, %v1698_v56 }
 0x424   : > { %1765 = vst [vmem:[%s2896_s14 + $0xb8] sm:$0xff] %v1707_v53 }
 0x425   : > { %1763 = vst [vmem:[%s2896_s14 + $0xa8] sm:$0xff] %v1699_v57 }
 0x42f   : > { %v2181_v58 = vpop.f32.mrb[88].mxu1 }
 0x430   : > { %v1720_v59 = vadd.f32 %v2181_v58, %v2892_v9  ;;  %v1711_v60 = vpop.f32.mrb[89].mxu1 }
 0x431   : > { %v1712_v61 = vadd.f32 %v2892_v9, %v1711_v60  ;;  %v2182_v62 = vpop.f32.mrb[90].mxu1 }
 0x432   : > { %1768 = vst [vmem:[%s2896_s14 + $0xd0] sm:$0xff] %v1720_v59  ;;  %v1723_v63 = vadd.f32 %v2182_v62, %v2892_v9  ;;  %v1714_v0 = vpop.f32.mrb[91].mxu1 }
 0x433   : > { %1766 = vst [vmem:[%s2896_s14 + $0xc0] sm:$0xff] %v1712_v61  ;;  %v1715_v1 = vadd.f32 %v2892_v9, %v1714_v0 }
 0x434   : > { %1769 = vst [vmem:[%s2896_s14 + $0xd8] sm:$0xff] %v1723_v63 }
 0x435   : > { %1767 = vst [vmem:[%s2896_s14 + $0xc8] sm:$0xff] %v1715_v1 }
 0x43f   : > { %v2185_v2 = vpop.f32.mrb[92].mxu1 }
 0x440   : > { %v1736_v3 = vadd.f32 %v2185_v2, %v2892_v9  ;;  %v1727_v4 = vpop.f32.mrb[93].mxu1 }
 0x441   : > { %v1728_v5 = vadd.f32 %v2892_v9, %v1727_v4  ;;  %v2186_v6 = vpop.f32.mrb[94].mxu1 }
 0x442   : > { %1772 = vst [vmem:[%s2896_s14 + $0xf0] sm:$0xff] %v1736_v3  ;;  %v1739_v7 = vadd.f32 %v2186_v6, %v2892_v9  ;;  %v1730_v8 = vpop.f32.mrb[95].mxu1 }
 0x443   : > { %1770 = vst [vmem:[%s2896_s14 + $0xe0] sm:$0xff] %v1728_v5  ;;  %v1731_v10 = vadd.f32 %v2892_v9, %v1730_v8 }
 0x444   : > { %1773 = vst [vmem:[%s2896_s14 + $0xf8] sm:$0xff] %v1739_v7 }
 0x445   : > { %1771 = vst [vmem:[%s2896_s14 + $0xe8] sm:$0xff] %v1731_v10 }
 0x446   : > { %2342 = shalt.err (!%p2339_p2)
}
 0x447   : > { %s2343_s28 = scalar_lea.hbm %s2961_s19, 4096  ;;  %s2347_s27 = scalar_lea.hbm %s3020_s9, 8192 }
 0x448   : > { %p2344_p4 = scmp.ne.s32.totalorder %s2961_s19, %s2343_s28  ;;  %p2348_p9 = scmp.lt.u32.totalorder %s2961_s19, %s3020_s9 }
 0x449   : > { %p2349_p1 = scmp.lt.u32.totalorder %s2347_s27, %s2343_s28  ;;  %p2351_p6 = scmp.lt.u32.totalorder %s2343_s28, %s2961_s19 }
 0x44a   : > { %p2345_p5 = pnand %p2344_p4, %p3027_p11 }
 0x44b   : > { %p2350_p3 = por %p2349_p1, %p2348_p9 }
 0x44c   : > { %p2346_p7 = pneg %p2345_p5 }
 0x44d   : > { %p2352_p12 = por %p2351_p6, %p2350_p3 }
 0x44f   : > { %p2353_p13 = pnand %p2352_p12, %p2346_p7 }
 0x451   : > { %2356 = shalt.err (!%p2353_p13)
}
 0x452   : > { %s2402_s25 = smov 128   ;;  %s2403_s23 = smov 8  }
 0x453   : > { %2190 = dma.vmem_to_hbm [thread:$0]  (%p3027_p11), %s2963_s17, 4096, %s2961_s19, %s1775_s13, %s2402_s25, %s2402_s25, %s2403_s23  }
 0x454 PF: > { %s1803_s24 = sand.u32 1, %s2383_s30   ;;  %p3028_p8 = scmp.ne.s32.totalorder %s3025_s22, 0 }
 0x455   : > { %p3029_p10 = scmp.ge.s32.totalorder %s2395_s12, 2  ;;  %s1804_s28 = scalar_lea.sflag [#allocation4], %s1803_s24 }
 0x457   : > { %p2197_p0 = pnand %p3029_p10, %p3028_p8 }
 0x459   : > { %2378 = dma.done.wait (!%p2197_p0), %s1804_s28, 4096  }
 0x45a   : > { %2380 = vsyncadd (!%p2197_p0), %s1804_s28, 4294963200  ;;  %p22_p2 = scmp.ge.s32.totalorder %s2479_s15, 4   ;;  %s3030_s30 = smov %s2387_s10 }
 0x45b   : > { %s3031_s10 = smov %s2391_s11  ;;  %s3032_s11 = smov %s2491_s18 }
 0x45c   : > { %s3033_s12 = smov %s2479_s15  ;;  %24 = sbr.rel (!%p22_p2) target bundleno = 5 (0x5), region = 101 }
 0x463   :  { %1809 = vsyncpa [#allocation3], 1 }
 0x464   :  { %1811 = vsyncpa [#allocation3 + $0x1], 1 }
 0x465   :  { %1812 = vsyncpa [#allocation4], 1 }
 0x466   :  { %1814 = vsyncpa [#allocation4 + $0x1], 1 }

// kernel: tpu_custom_call.1
= control target key start
LH: loop header
LB: loop body
LE: loop exit
PB: predicated region body
PF: predicated region fallthrough
CT: control target
= control target key end

     0   :  { %14 = vsyncpa [#allocation3], 0  ;;  %s3011_s0 = inlined_call_operand.hbm [shape: bf16[512,128], index: 0, kind: input, shape index: {}]   ;;  %s3012_s1 = inlined_call_operand.vmem [shape: bf16[128,256], index: 1, kind: input, shape index: {}]   ;;  %s3013_s2 = inlined_call_operand.vmem [shape: f32[1,256], index: 2, kind: input, shape index: {}]   ;;  %s3014_s3 = inlined_call_operand.vmem [shape: bf16[256,64], index: 3, kind: input, shape index: {}]   ;;  %s3015_s4 = inlined_call_operand.vmem [shape: f32[1,64], index: 4, kind: input, shape index: {}]   ;;  %s3016_s5 = inlined_call_operand.vmem [shape: bf16[64,8], index: 5, kind: input, shape index: {}]   ;;  %s3017_s6 = inlined_call_operand.vmem [shape: f32[1,8], index: 6, kind: input, shape index: {}]   ;;  %s3018_s7 = inlined_call_operand.vmem [shape: bf16[8,128], index: 7, kind: input, shape index: {}]   ;;  %s3019_s8 = inlined_call_operand.vmem [shape: f32[1,128], index: 8, kind: input, shape index: {}]   ;;  %s3020_s9 = inlined_call_operand.hbm [shape: f32[512,128], index: 9, kind: output, shape index: {}]  }
   0x1   :  { %16 = vsyncpa [#allocation3 + $0x1], 0 }
   0x2   :  { %17 = vsyncpa [#allocation4], 0 }
   0x3   :  { %19 = vsyncpa [#allocation4 + $0x1], 0  ;;  %s2454_s30 = smov 0   ;;  %s2456_s10 = smov 0  }
   0x4   :  { %s2458_s11 = smov 0   ;;  %s2460_s12 = smov 0  }
   0x5 LB: > { %s2475_s13 = sadd.s32 4294967295, %s2395_s12   ;;  %s1861_s14 = sadd.s32 4294967294, %s2395_s12   ;;  %s2395_s12 = sphi %s2460_s12, %s3033_s12   ;;  %s2391_s11 = sphi %s2458_s11, %s3032_s11   ;;  %s2387_s10 = sphi %s2456_s10, %s3031_s10   ;;  %s2383_s30 = sphi %s2454_s30, %s3030_s30  }
   0x6   : > { %s2479_s15 = sadd.s32 1, %s2395_s12   ;;  %s32_s16 = sadd.s32 1, %s2391_s11 }
   0x7   : > { %s29_s17 = ssub.s32 %s2395_s12, %s2479_s15  ;;  %p39_p0 = scmp.ne.s32.totalorder %s2391_s11, %s2387_s10 }
   0x8   : > { %p30_p1 = scmp.eq.s32.totalorder %s29_s17, 0  ;;  %p40_p2 = scmp.eq.s32.totalorder %s2395_s12, 0 }
   0x9   : > { %p45_p3 = scmp.ne.s32.totalorder %s2387_s10, %s2383_s30  ;;  %p46_p4 = scmp.eq.s32.totalorder %s2475_s13, 0 }
   0xa   : > { %s2491_s18 = scalar_select %p30_p1, %s2391_s11, %s32_s16  }
   0xb   : > { %p2493_p5 = por %p40_p2, %p39_p0  ;;  %p2497_p6 = por %p46_p4, %p45_p3 }
   0xc   : > { %p237_p7 = scmp.eq.s32.totalorder %s2475_s13, 1  ;;  %p243_p8 = scmp.eq.s32.totalorder %s1861_s14, 1 }
   0xd   : > { %p2200_p10 = scmp.lt.s32.totalorder %s2395_s12, 2  ;;  %s287_s23 = sand.u32 1, %s2391_s11  }
   0xe   : > { %p2504_p11 = por %p237_p7, %p39_p0  ;;  %p2508_p12 = por %p243_p8, %p45_p3 }
   0xf   : > { %s1962_s24 = sshll.u32 %s2395_s12, 11  ;;  %s1864_s25 = sshll.u32 %s287_s23, 7 }
  0x10   : > { %s3024_s21 = scalar_select %p2504_p11, 1, 0 }
  0x11   : > { %s3025_s22 = scalar_select %p2508_p12, 1, 0 }
  0x12   : > { %s2517_s28 = scalar_lea.hbm %s3011_s0, %s1962_s24  ;;  %s291_s29 = scalar_lea.vmem [#allocation2], %s1864_s25 }
  0x13   : > { %s298_s14 = sshll.u32 %s291_s29, 4  ;;  %p2521_p13 = pnand %p2200_p10, %p2493_p5  ;;  %s2525_s14 = int_to_ptr.vmem [resolvable:$true] %s298_s14 }
  0x14   : > { %s2527_s17 = scalar_lea.sflag [#allocation3], %s287_s23  ;;  %s2299_s26 = scalar_lea.hbm %s2517_s28, 2048 }
  0x15   : > { %p2300_p0 = scmp.ne.s32.totalorder %s2517_s28, %s2299_s26  ;;  %p2301_p1 = pneg %p2521_p13 }
  0x16   : > { %s2304_s25 = scalar_lea.hbm %s3011_s0, 4096  ;;  %p2305_p4 = scmp.lt.u32.totalorder %s2517_s28, %s3011_s0 }
  0x17   : > { %p2302_p2 = pnand %p2301_p1, %p2300_p0  ;;  %p2306_p5 = scmp.lt.u32.totalorder %s2304_s25, %s2299_s26 }
  0x18   : > { %p2308_p8 = scmp.lt.u32.totalorder %s2299_s26, %s2517_s28 }
  0x19   : > { %p2303_p3 = pneg %p2302_p2  ;;  %p2307_p7 = por %p2306_p5, %p2305_p4 }
  0x1b   : > { %p2309_p10 = por %p2308_p8, %p2307_p7 }
  0x1d   : > { %p2310_p9 = pnand %p2309_p10, %p2303_p3 }
  0x1f   : > { %2313 = shalt.err (!%p2310_p9)
}
  0x20   : > { %s2314_s23 = scalar_lea.vmem %s2525_s14, 2048  ;;  %s2397_s24 = smov [#allocation2]  }
  0x21   : > { %p2315_p0 = scmp.ne.s32.totalorder %s2525_s14, %s2314_s23  ;;  %s2319_s19 = sshll.u32 %s2397_s24, 4  ;;  %s2320_s19 = int_to_ptr.vmem [resolvable:$false] %s2319_s19 }
  0x22   : > { %s2321_s27 = scalar_lea.vmem %s2320_s19, 4096  ;;  %p2322_p11 = scmp.lt.s32.totalorder %s2525_s14, %s2320_s19 }
  0x23   : > { %p2317_p2 = pnand %p2315_p0, %p2301_p1  ;;  %p2323_p4 = scmp.lt.s32.totalorder %s2321_s27, %s2314_s23 }
  0x25   : > { %p2318_p12 = pneg %p2317_p2  ;;  %p2324_p5 = por %p2323_p4, %p2322_p11 }
  0x27   : > { %p2325_p7 = pnand %p2324_p5, %p2318_p12 }
  0x29   : > { %2328 = shalt.err (!%p2325_p7)
}
  0x2a   : > { %s2398_s26 = smov 64   ;;  %s2399_s25 = smov 4  }
  0x2b   : > { %2195 = dma.hbm_to_vmem [thread:$0]  (!%p2521_p13), %s2517_s28, 2048, %s2525_s14, %s2527_s17, %s2398_s26, %s2398_s26, %s2399_s25  }
  0x2c   : > { %p1867_p9 = scmp.ge.s32.totalorder %s2395_s12, 1  ;;  %p306_p1 = scmp.lt.s32.totalorder %s2395_s12, 3 }
  0x2e   : > { %p307_p3 = pnand %p1867_p9, %p306_p1 }
  0x2f   : > { %s2558_s29 = sand.u32 (!%p307_p3), 1, %s2387_s10  }
  0x30   : > { %310 = sbr.rel (%p307_p3) target bundleno = 1108 (0x454), region = 56  ;;  %s1868_s23 = sshll.u32 (!%p307_p3), %s2558_s29, 7 }
  0x31   : > { %s313_s24 = scalar_lea.sflag (!%p307_p3), [#allocation3], %s2558_s29  ;;  %s2562_s19 = scalar_lea.vmem (!%p307_p3), [#allocation2], %s1868_s23 }
  0x37   : > { %2374 = dma.done.wait (%p2497_p6), %s313_s24, 2048  }
  0x38   : > { %2376 = vsyncadd (%p2497_p6), %s313_s24, 4294965248  ;;  %v2400_v0 = vmov 0   ;;  %v2239_v1 = vld [vmem:[%s3012_s1 + $0x4] ss:$8 sps:$4 sm:$0xff]   ;;  %v2241_v2 = vld [vmem:[%s3012_s1] ss:$8 sps:$4 sm:$0xff]   ;;  %v404_v49 = vlaneseq }
  0x39   : > { %622 = vmatprep.mubr.bf16.mxu0 %v2400_v0  ;;  %590 = vmatprep.subr.bf16.mxu0 %v2239_v1  ;;  %v2242_v3 = vld [vmem:[%s3012_s1 + $0x14] ss:$8 sps:$4 sm:$0xff]   ;;  %v2244_v4 = vld [vmem:[%s3012_s1 + $0x10] ss:$8 sps:$4 sm:$0xff]   ;;  %v2245_v5 = vld [vmem:[%s3012_s1 + $0x24] ss:$8 sps:$4 sm:$0xff]  }
  0x3a   : > { %591 = vmatpush1.bf16.msra.mxu0 %v2241_v2  ;;  %v2247_v6 = vld [vmem:[%s3012_s1 + $0x20] ss:$8 sps:$4 sm:$0xff]   ;;  %v2248_v7 = vld [vmem:[%s3012_s1 + $0x34] ss:$8 sps:$4 sm:$0xff]   ;;  %v2250_v8 = vld [vmem:[%s3012_s1 + $0x30] ss:$8 sps:$4 sm:$0xff]  }
  0x3b   : > { %592 = vmatprep.subr.bf16.mxu0 %v2242_v3  ;;  %v2251_v9 = vld [vmem:[%s3012_s1 + $0x44] ss:$8 sps:$4 sm:$0xff]   ;;  %v2253_v10 = vld [vmem:[%s3012_s1 + $0x40] ss:$8 sps:$4 sm:$0xff]   ;;  %v2254_v11 = vld [vmem:[%s3012_s1 + $0x54] ss:$8 sps:$4 sm:$0xff]  }
  0x3c   : > { %v2256_v12 = vld [vmem:[%s3012_s1 + $0x50] ss:$8 sps:$4 sm:$0xff]   ;;  %v2257_v13 = vld [vmem:[%s3012_s1 + $0x64] ss:$8 sps:$4 sm:$0xff]   ;;  %v2259_v14 = vld [vmem:[%s3012_s1 + $0x60] ss:$8 sps:$4 sm:$0xff]  }
  0x3d   : > { %v2260_v15 = vld [vmem:[%s3012_s1 + $0x74] ss:$8 sps:$4 sm:$0xff]   ;;  %v2262_v16 = vld [vmem:[%s3012_s1 + $0x70] ss:$8 sps:$4 sm:$0xff]   ;;  %v2279_v17 = vld [vmem:[%s3014_s3 + $0x40] sm:$0xff]   ;;  %v405_v50 = vshrl.u32 %v404_v49, 7 }
  0x3e   : > { %593 = vmatpush1.bf16.msra.mxu0 %v2244_v4  ;;  %v2263_v18 = vld [vmem:[%s2562_s19] sm:$0xff]   ;;  %1964 = vmatprep.subr.bf16.mxu1 %v2279_v17  ;;  %v2281_v20 = vld [vmem:[%s3014_s3 + $0x48] sm:$0xff]   ;;  %v2283_v22 = vld [vmem:[%s3014_s3 + $0x50] sm:$0xff]   ;;  %vm1577_vm0 = vcmask 1043456   ;;  %vm1262_vm1 = vcmask 523264   ;;  %vm1528_vm2 = vcmask 64512  }
  0x3f   : > { %594 = vmatprep.subr.bf16.mxu0 %v2245_v5  ;;  %v2280_v19 = vld [vmem:[%s3014_s3] sm:$0xff]   ;;  %v2282_v21 = vld [vmem:[%s3014_s3 + $0x8] sm:$0xff]   ;;  %v2284_v23 = vld [vmem:[%s3014_s3 + $0x10] sm:$0xff]   ;;  %v406_v51 = vsub.s32 0, %v405_v50  ;;  %v410_v53 = vsub.s32 1, %v405_v50  ;;  %s1869_s23 = sshll.u32 %s2558_s29, 8 }
  0x40   : > { %1965 = vmatpush3.bf16.msra.mxu1 %v2280_v19  ;;  %v2285_v24 = vld [vmem:[%s3014_s3 + $0x58] sm:$0xff]   ;;  %v2264_v25 = vld [vmem:[%s2562_s19 + $0x8] sm:$0xff]   ;;  %v2287_v27 = vld [vmem:[%s3014_s3 + $0x60] sm:$0xff]   ;;  %s2896_s14 = scalar_lea.vmem [#allocation5], %s1869_s23  ;;  %s1963_s16 = sshll.u32 %s2475_s13, 12 }
  0x41   : > { %1966 = vmatprep.subr.bf16.mxu1 %v2281_v20  ;;  %v2286_v26 = vld [vmem:[%s3014_s3 + $0x18] sm:$0xff]   ;;  %v2288_v28 = vld [vmem:[%s3014_s3 + $0x20] sm:$0xff]   ;;  %v2289_v29 = vld [vmem:[%s3014_s3 + $0x68] sm:$0xff]   ;;  %s1788_s17 = sshll.u32 %s2896_s14, 4  ;;  %s1775_s13 = scalar_lea.sflag [#allocation4], %s2558_s29  ;;  %s2963_s17 = int_to_ptr.vmem [resolvable:$true] %s1788_s17 }
  0x42   : > { %595 = vmatpush1.bf16.msra.mxu0 %v2247_v6  ;;  %v2265_v30 = vld [vmem:[%s2562_s19 + $0x10] sm:$0xff]   ;;  %v2266_v31 = vld [vmem:[%s2562_s19 + $0x18] sm:$0xff]   ;;  %v2267_v32 = vld [vmem:[%s2562_s19 + $0x20] sm:$0xff]   ;;  %s2329_s25 = scalar_lea.vmem %s2963_s17, 4096  ;;  %p3027_p11 = scmp.ne.s32.totalorder %s3024_s21, 0 }
  0x43   : > { %596 = vmatprep.subr.bf16.mxu0 %v2248_v7  ;;  %v2268_v33 = vld [vmem:[%s2562_s19 + $0x28] sm:$0xff]   ;;  %v2269_v34 = vld [vmem:[%s2562_s19 + $0x30] sm:$0xff]   ;;  %v2270_v35 = vld [vmem:[%s2562_s19 + $0x38] sm:$0xff]   ;;  %p2330_p6 = scmp.ne.s32.totalorder %s2963_s17, %s2329_s25  ;;  %s2401_s20 = smov [#allocation5]  }
  0x44   : > { %1967 = vmatpush3.bf16.msra.mxu1 %v2282_v21  ;;  %v2271_v36 = vld [vmem:[%s2562_s19 + $0x40] sm:$0xff]   ;;  %v2272_v37 = vld [vmem:[%s2562_s19 + $0x48] sm:$0xff]   ;;  %v2273_v38 = vld [vmem:[%s2562_s19 + $0x50] sm:$0xff]   ;;  %s2333_s23 = sshll.u32 %s2401_s20, 4  ;;  %s2334_s23 = int_to_ptr.vmem [resolvable:$false] %s2333_s23 }
  0x45   : > { %1968 = vmatprep.subr.bf16.mxu1 %v2283_v22  ;;  %v2290_v39 = vld [vmem:[%s3014_s3 + $0x28] sm:$0xff]   ;;  %v2274_v40 = vld [vmem:[%s2562_s19 + $0x58] sm:$0xff]   ;;  %v2291_v41 = vld [vmem:[%s3014_s3 + $0x70] sm:$0xff]   ;;  %p2331_p12 = pnand %p2330_p6, %p3027_p11  ;;  %s2335_s24 = scalar_lea.vmem %s2334_s23, 8192 }
  0x46   : > { %597 = vmatpush1.bf16.msra.mxu0 %v2250_v8  ;;  %v2292_v42 = vld [vmem:[%s3014_s3 + $0x30] sm:$0xff]   ;;  %v2293_v43 = vld [vmem:[%s3014_s3 + $0x78] sm:$0xff]   ;;  %v2275_v45 = vld [vmem:[%s2562_s19 + $0x60] sm:$0xff]   ;;  %p2336_p8 = scmp.lt.s32.totalorder %s2963_s17, %s2334_s23  ;;  %p2337_p10 = scmp.lt.s32.totalorder %s2335_s24, %s2329_s25 }
  0x47   : > { %598 = vmatprep.subr.bf16.mxu0 %v2251_v9  ;;  %v2294_v44 = vld [vmem:[%s3014_s3 + $0x38] sm:$0xff]   ;;  %v2276_v46 = vld [vmem:[%s2562_s19 + $0x68] sm:$0xff]   ;;  %v2277_v47 = vld [vmem:[%s2562_s19 + $0x70] sm:$0xff]   ;;  %p2332_p13 = pneg %p2331_p12 }
  0x48   : > { %1969 = vmatpush3.bf16.msra.mxu1 %v2284_v23  ;;  %v2278_v48 = vld [vmem:[%s2562_s19 + $0x78] sm:$0xff]   ;;  %v402_v52 = vld [vmem:[%s3013_s2] sm:$0x3]  ;;  %s2961_s19 = scalar_lea.hbm %s3020_s9, %s1963_s16  ;;  %p2338_p0 = por %p2337_p10, %p2336_p8 }
  0x49   : > { %1970 = vmatprep.subr.bf16.mxu1 %v2285_v24  ;;  %v2699_v54 = vrot.slane %v402_v52, %v406_v51  ;;  %v2701_v55 = vrot.slane %v402_v52, %v410_v53  ;;  %v2295_v63 = vld [vmem:[%s3016_s5] sm:$0xff]  }
  0x4a   : > { %599 = vmatpush1.bf16.msra.mxu0 %v2253_v10  ;;  %p2339_p2 = pnand %p2338_p0, %p2332_p13 }
  0x4b   : > { %600 = vmatprep.subr.bf16.mxu0 %v2254_v11 }
  0x4c   : > { %1971 = vmatpush3.bf16.msra.mxu1 %v2286_v26 }
  0x4d   : > { %1972 = vmatprep.subr.bf16.mxu1 %v2287_v27 }
  0x4e   : > { %601 = vmatpush1.bf16.msra.mxu0 %v2256_v12 }
  0x4f   : > { %602 = vmatprep.subr.bf16.mxu0 %v2257_v13 }
  0x50   : > { %1973 = vmatpush3.bf16.msra.mxu1 %v2288_v28 }
  0x51   : > { %1974 = vmatprep.subr.bf16.mxu1 %v2289_v29 }
  0x52   : > { %603 = vmatpush1.bf16.msra.mxu0 %v2259_v14 }
  0x53   : > { %604 = vmatprep.subr.bf16.mxu0 %v2260_v15 }
  0x54   : > { %1975 = vmatpush3.bf16.msra.mxu1 %v2290_v39 }
  0x55   : > { %1976 = vmatprep.subr.bf16.mxu1 %v2291_v41 }
  0x56   : > { %605 = vmatpush1.bf16.msra.mxu0 %v2262_v16 }
  0x57   : > { %2113 = vmatprep.subr.bf16.mxu0 %v2295_v63 }
  0x58   : > { %1977 = vmatpush3.bf16.msra.mxu1 %v2292_v42 }
  0x59   : > { %623 = vmatmul.mubr.bf16.vlgmr.msra.gmra.mrb[0].mxu0 %v2263_v18  ;;  %1978 = vmatprep.subr.bf16.mxu1 %v2293_v43 }
  0x5a   : > { %632 = vmatprep.mubr.bf16.mxu0 %v2400_v0  ;;  %2114 = vmatpush3.bf16.msra.mxu0 %v2295_v63 }
  0x5c   : > { %1979 = vmatpush3.bf16.msra.mxu1 %v2294_v44 }
  0x61   : > { %633 = vmatmul.mubr.bf16.gmra.mrb[4].mxu0 %v2264_v25 }
  0x62   : > { %642 = vmatprep.mubr.bf16.mxu0 %v2400_v0 }
  0x69   : > { %643 = vmatmul.mubr.bf16.gmra.mrb[8].mxu0 %v2265_v30 }
  0x6a   : > { %652 = vmatprep.mubr.bf16.mxu0 %v2400_v0 }
  0x71   : > { %653 = vmatmul.mubr.bf16.gmra.mrb[12].mxu0 %v2266_v31 }
  0x72   : > { %662 = vmatprep.mubr.bf16.mxu0 %v2400_v0 }
  0x79   : > { %663 = vmatmul.mubr.bf16.gmra.mrb[16].mxu0 %v2267_v32 }
  0x7a   : > { %672 = vmatprep.mubr.bf16.mxu0 %v2400_v0 }
  0x81   : > { %673 = vmatmul.mubr.bf16.gmra.mrb[20].mxu0 %v2268_v33 }
  0x82   : > { %682 = vmatprep.mubr.bf16.mxu0 %v2400_v0 }
  0x89   : > { %683 = vmatmul.mubr.bf16.gmra.mrb[24].mxu0 %v2269_v34 }
  0x8a   : > { %692 = vmatprep.mubr.bf16.mxu0 %v2400_v0 }
  0x91   : > { %693 = vmatmul.mubr.bf16.gmra.mrb[28].mxu0 %v2270_v35 }
  0x92   : > { %702 = vmatprep.mubr.bf16.mxu0 %v2400_v0 }
  0x99   : > { %703 = vmatmul.mubr.bf16.gmra.mrb[32].mxu0 %v2271_v36 }
  0x9a   : > { %712 = vmatprep.mubr.bf16.mxu0 %v2400_v0 }
  0xa1   : > { %713 = vmatmul.mubr.bf16.gmra.mrb[36].mxu0 %v2272_v37 }
  0xa2   : > { %722 = vmatprep.mubr.bf16.mxu0 %v2400_v0 }
  0xa9   : > { %723 = vmatmul.mubr.bf16.gmra.mrb[40].mxu0 %v2273_v38 }
  0xaa   : > { %732 = vmatprep.mubr.bf16.mxu0 %v2400_v0 }
  0xb1   : > { %733 = vmatmul.mubr.bf16.gmra.mrb[44].mxu0 %v2274_v40 }
  0xb2   : > { %742 = vmatprep.mubr.bf16.mxu0 %v2400_v0 }
  0xb9   : > { %743 = vmatmul.mubr.bf16.gmra.mrb[48].mxu0 %v2275_v45 }
  0xba   : > { %752 = vmatprep.mubr.bf16.mxu0 %v2400_v0 }
  0xc1   : > { %753 = vmatmul.mubr.bf16.gmra.mrb[52].mxu0 %v2276_v46 }
  0xc2   : > { %762 = vmatprep.mubr.bf16.mxu0 %v2400_v0 }
  0xc9   : > { %763 = vmatmul.mubr.bf16.gmra.mrb[56].mxu0 %v2277_v47 }
  0xca   : > { %772 = vmatprep.mubr.bf16.mxu0 %v2400_v0  ;;  %v2296_v0 = vld [vmem:[%s3016_s5 + $0x8] sm:$0xff]  }
  0xcb   : > { %2115 = vmatprep.subr.bf16.mxu0 %v2296_v0 }
  0xcc   : > { %2116 = vmatpush3.bf16.msra.mxu0 %v2296_v0 }
  0xd1   : > { %773 = vmatmul.mubr.bf16.gmra.mrb[60].mxu0 %v2278_v48 }
 0x12c   : > { %v624_v56 = vpop.f32.mrb[0].mxu0 }
 0x12d   : > { %v625_v57 = vadd.f32 %v624_v56, %v2699_v54  ;;  %v626_v58 = vpop.f32.mrb[1].mxu0 }
 0x12e   : > { %v627_v59 = vadd.f32 %v626_v58, %v2701_v55  ;;  %v628_v60 = vpop.f32.mrb[2].mxu0 }
 0x12f   : > { %v629_v61 = vadd.f32 %v628_v60, %v2699_v54  ;;  %v630_v62 = vpop.f32.mrb[3].mxu0  ;;  %v783_v2 = vmax.f32 %v625_v57, 0.0 }
 0x130   : > { %v631_v1 = vadd.f32 %v630_v62, %v2701_v55  ;;  %v784_v4 = vmax.f32 %v627_v59, 0.0 }
 0x131   : > { %v785_v3 = vmax.f32 %v629_v61, 0.0 }
 0x132   : > { %v786_v5 = vmax.f32 %v631_v1, 0.0 }
 0x133   : > { %v847_v6 = vpack.c.bf16 %v785_v3, %v783_v2 }
 0x134   : > { %v634_v7 = vpop.f32.mrb[4].mxu0  ;;  %v848_v8 = vpack.c.bf16 %v786_v5, %v784_v4 }
 0x135   : > { %v635_v9 = vadd.f32 %v634_v7, %v2699_v54  ;;  %v636_v10 = vpop.f32.mrb[5].mxu0 }
 0x136   : > { %v637_v11 = vadd.f32 %v636_v10, %v2701_v55  ;;  %v638_v12 = vpop.f32.mrb[6].mxu0  ;;  %1046 = vmatprep.mubr.bf16.mxu1 %v848_v8 }
 0x137   : > { %v639_v13 = vadd.f32 %v638_v12, %v2699_v54  ;;  %v640_v14 = vpop.f32.mrb[7].mxu0  ;;  %1047 = vmatmul.mubr.bf16.vlgmr.msra.gmra.mrb[0].mxu1 %v847_v6  ;;  %v787_v16 = vmax.f32 %v635_v9, 0.0 }
 0x138   : > { %v641_v15 = vadd.f32 %v640_v14, %v2701_v55  ;;  %v788_v18 = vmax.f32 %v637_v11, 0.0 }
 0x139   : > { %v789_v17 = vmax.f32 %v639_v13, 0.0 }
 0x13a   : > { %v790_v19 = vmax.f32 %v641_v15, 0.0 }
 0x13b   : > { %v849_v20 = vpack.c.bf16 %v789_v17, %v787_v16 }
 0x13c   : > { %v850_v21 = vpack.c.bf16 %v790_v19, %v788_v18  ;;  %v644_v22 = vpop.f32.mrb[8].mxu0 }
 0x13d   : > { %v645_v23 = vadd.f32 %v644_v22, %v2699_v54  ;;  %v646_v24 = vpop.f32.mrb[9].mxu0 }
 0x13e   : > { %v647_v25 = vadd.f32 %v646_v24, %v2701_v55  ;;  %v648_v26 = vpop.f32.mrb[10].mxu0  ;;  %1054 = vmatprep.mubr.bf16.mxu1 %v850_v21 }
 0x13f   : > { %v649_v27 = vadd.f32 %v648_v26, %v2699_v54  ;;  %v650_v28 = vpop.f32.mrb[11].mxu0  ;;  %1055 = vmatmul.mubr.bf16.gmra.mrb[4].mxu1 %v849_v20  ;;  %v791_v30 = vmax.f32 %v645_v23, 0.0 }
 0x140   : > { %v651_v29 = vadd.f32 %v650_v28, %v2701_v55  ;;  %v792_v32 = vmax.f32 %v647_v25, 0.0 }
 0x141   : > { %v793_v31 = vmax.f32 %v649_v27, 0.0 }
 0x142   : > { %v794_v33 = vmax.f32 %v651_v29, 0.0 }
 0x143   : > { %v851_v34 = vpack.c.bf16 %v793_v31, %v791_v30 }
 0x144   : > { %v852_v35 = vpack.c.bf16 %v794_v33, %v792_v32  ;;  %v654_v36 = vpop.f32.mrb[12].mxu0 }
 0x145   : > { %v655_v37 = vadd.f32 %v654_v36, %v2699_v54  ;;  %v656_v38 = vpop.f32.mrb[13].mxu0 }
 0x146   : > { %v657_v39 = vadd.f32 %v656_v38, %v2701_v55  ;;  %v658_v40 = vpop.f32.mrb[14].mxu0  ;;  %1062 = vmatprep.mubr.bf16.mxu1 %v852_v35 }
 0x147   : > { %v659_v41 = vadd.f32 %v658_v40, %v2699_v54  ;;  %v660_v42 = vpop.f32.mrb[15].mxu0  ;;  %1063 = vmatmul.mubr.bf16.gmra.mrb[8].mxu1 %v851_v34  ;;  %v795_v44 = vmax.f32 %v655_v37, 0.0 }
 0x148   : > { %v661_v43 = vadd.f32 %v660_v42, %v2701_v55  ;;  %v796_v46 = vmax.f32 %v657_v39, 0.0 }
 0x149   : > { %v797_v45 = vmax.f32 %v659_v41, 0.0 }
 0x14a   : > { %v798_v47 = vmax.f32 %v661_v43, 0.0 }
 0x14b   : > { %v853_v48 = vpack.c.bf16 %v797_v45, %v795_v44 }
 0x14c   : > { %v854_v49 = vpack.c.bf16 %v798_v47, %v796_v46  ;;  %v664_v50 = vpop.f32.mrb[16].mxu0 }
 0x14d   : > { %v665_v51 = vadd.f32 %v664_v50, %v2699_v54  ;;  %v666_v52 = vpop.f32.mrb[17].mxu0 }
 0x14e   : > { %v667_v53 = vadd.f32 %v666_v52, %v2701_v55  ;;  %v668_v56 = vpop.f32.mrb[18].mxu0  ;;  %1070 = vmatprep.mubr.bf16.mxu1 %v854_v49 }
 0x14f   : > { %v669_v57 = vadd.f32 %v668_v56, %v2699_v54  ;;  %v670_v58 = vpop.f32.mrb[19].mxu0  ;;  %1071 = vmatmul.mubr.bf16.gmra.mrb[12].mxu1 %v853_v48  ;;  %v799_v60 = vmax.f32 %v665_v51, 0.0 }
 0x150   : > { %v671_v59 = vadd.f32 %v670_v58, %v2701_v55  ;;  %v800_v62 = vmax.f32 %v667_v53, 0.0 }
 0x151   : > { %v801_v61 = vmax.f32 %v669_v57, 0.0 }
 0x152   : > { %v802_v63 = vmax.f32 %v671_v59, 0.0 }
 0x153   : > { %v855_v0 = vpack.c.bf16 %v801_v61, %v799_v60 }
 0x154   : > { %v856_v1 = vpack.c.bf16 %v802_v63, %v800_v62  ;;  %v674_v2 = vpop.f32.mrb[20].mxu0 }
 0x155   : > { %v675_v3 = vadd.f32 %v674_v2, %v2699_v54  ;;  %v676_v4 = vpop.f32.mrb[21].mxu0 }
 0x156   : > { %v677_v5 = vadd.f32 %v676_v4, %v2701_v55  ;;  %v678_v6 = vpop.f32.mrb[22].mxu0  ;;  %1078 = vmatprep.mubr.bf16.mxu1 %v856_v1 }
 0x157   : > { %v679_v7 = vadd.f32 %v678_v6, %v2699_v54  ;;  %v680_v8 = vpop.f32.mrb[23].mxu0  ;;  %1079 = vmatmul.mubr.bf16.gmra.mrb[16].mxu1 %v855_v0  ;;  %v803_v10 = vmax.f32 %v675_v3, 0.0 }
 0x158   : > { %v681_v9 = vadd.f32 %v680_v8, %v2701_v55  ;;  %v804_v12 = vmax.f32 %v677_v5, 0.0 }
 0x159   : > { %v805_v11 = vmax.f32 %v679_v7, 0.0 }
 0x15a   : > { %v806_v13 = vmax.f32 %v681_v9, 0.0 }
 0x15b   : > { %v857_v14 = vpack.c.bf16 %v805_v11, %v803_v10 }
 0x15c   : > { %v858_v15 = vpack.c.bf16 %v806_v13, %v804_v12  ;;  %v684_v16 = vpop.f32.mrb[24].mxu0 }
 0x15d   : > { %v685_v17 = vadd.f32 %v684_v16, %v2699_v54  ;;  %v686_v18 = vpop.f32.mrb[25].mxu0 }
 0x15e   : > { %v687_v19 = vadd.f32 %v686_v18, %v2701_v55  ;;  %v688_v20 = vpop.f32.mrb[26].mxu0  ;;  %1086 = vmatprep.mubr.bf16.mxu1 %v858_v15 }
 0x15f   : > { %v689_v21 = vadd.f32 %v688_v20, %v2699_v54  ;;  %v690_v22 = vpop.f32.mrb[27].mxu0  ;;  %1087 = vmatmul.mubr.bf16.gmra.mrb[20].mxu1 %v857_v14  ;;  %v807_v24 = vmax.f32 %v685_v17, 0.0 }
 0x160   : > { %v691_v23 = vadd.f32 %v690_v22, %v2701_v55  ;;  %v808_v26 = vmax.f32 %v687_v19, 0.0 }
 0x161   : > { %v809_v25 = vmax.f32 %v689_v21, 0.0 }
 0x162   : > { %v810_v27 = vmax.f32 %v691_v23, 0.0 }
 0x163   : > { %v859_v28 = vpack.c.bf16 %v809_v25, %v807_v24 }
 0x164   : > { %v860_v29 = vpack.c.bf16 %v810_v27, %v808_v26  ;;  %v694_v30 = vpop.f32.mrb[28].mxu0 }
 0x165   : > { %v695_v31 = vadd.f32 %v694_v30, %v2699_v54  ;;  %v696_v32 = vpop.f32.mrb[29].mxu0 }
 0x166   : > { %v697_v33 = vadd.f32 %v696_v32, %v2701_v55  ;;  %v698_v34 = vpop.f32.mrb[30].mxu0  ;;  %1094 = vmatprep.mubr.bf16.mxu1 %v860_v29 }
 0x167   : > { %v699_v35 = vadd.f32 %v698_v34, %v2699_v54  ;;  %v700_v36 = vpop.f32.mrb[31].mxu0  ;;  %1095 = vmatmul.mubr.bf16.gmra.mrb[24].mxu1 %v859_v28  ;;  %v811_v38 = vmax.f32 %v695_v31, 0.0 }
 0x168   : > { %v701_v37 = vadd.f32 %v700_v36, %v2701_v55  ;;  %v812_v40 = vmax.f32 %v697_v33, 0.0 }
 0x169   : > { %v813_v39 = vmax.f32 %v699_v35, 0.0 }
 0x16a   : > { %v814_v41 = vmax.f32 %v701_v37, 0.0 }
 0x16b   : > { %v861_v42 = vpack.c.bf16 %v813_v39, %v811_v38 }
 0x16c   : > { %v862_v43 = vpack.c.bf16 %v814_v41, %v812_v40  ;;  %v704_v44 = vpop.f32.mrb[32].mxu0 }
 0x16d   : > { %v705_v45 = vadd.f32 %v704_v44, %v2699_v54  ;;  %v706_v46 = vpop.f32.mrb[33].mxu0 }
 0x16e   : > { %v707_v47 = vadd.f32 %v706_v46, %v2701_v55  ;;  %v708_v48 = vpop.f32.mrb[34].mxu0  ;;  %1102 = vmatprep.mubr.bf16.mxu1 %v862_v43 }
 0x16f   : > { %v709_v49 = vadd.f32 %v708_v48, %v2699_v54  ;;  %v710_v50 = vpop.f32.mrb[35].mxu0  ;;  %1103 = vmatmul.mubr.bf16.gmra.mrb[28].mxu1 %v861_v42  ;;  %v815_v52 = vmax.f32 %v705_v45, 0.0 }
 0x170   : > { %v711_v51 = vadd.f32 %v710_v50, %v2701_v55  ;;  %v816_v56 = vmax.f32 %v707_v47, 0.0 }
 0x171   : > { %v817_v53 = vmax.f32 %v709_v49, 0.0 }
 0x172   : > { %v818_v57 = vmax.f32 %v711_v51, 0.0 }
 0x173   : > { %v863_v58 = vpack.c.bf16 %v817_v53, %v815_v52  ;;  %v2297_v53 = vld [vmem:[%s3016_s5 + $0x10] sm:$0xff]  }
 0x174   : > { %v864_v59 = vpack.c.bf16 %v818_v57, %v816_v56  ;;  %v714_v60 = vpop.f32.mrb[36].mxu0  ;;  %2117 = vmatprep.subr.bf16.mxu0 %v2297_v53 }
 0x175   : > { %v715_v61 = vadd.f32 %v714_v60, %v2699_v54  ;;  %v716_v62 = vpop.f32.mrb[37].mxu0  ;;  %2118 = vmatpush3.bf16.msra.mxu0 %v2297_v53 }
 0x176   : > { %v717_v63 = vadd.f32 %v716_v62, %v2701_v55  ;;  %v718_v0 = vpop.f32.mrb[38].mxu0  ;;  %1110 = vmatprep.mubr.bf16.mxu1 %v864_v59 }
 0x177   : > { %v719_v1 = vadd.f32 %v718_v0, %v2699_v54  ;;  %v720_v2 = vpop.f32.mrb[39].mxu0  ;;  %1111 = vmatmul.mubr.bf16.gmra.mrb[32].mxu1 %v863_v58  ;;  %v819_v4 = vmax.f32 %v715_v61, 0.0 }
 0x178   : > { %v721_v3 = vadd.f32 %v720_v2, %v2701_v55  ;;  %v820_v6 = vmax.f32 %v717_v63, 0.0  ;;  %v2298_v63 = vld [vmem:[%s3016_s5 + $0x18] sm:$0xff]  }
 0x179   : > { %v821_v5 = vmax.f32 %v719_v1, 0.0  ;;  %2119 = vmatprep.subr.bf16.mxu0 %v2298_v63 }
 0x17a   : > { %v822_v7 = vmax.f32 %v721_v3, 0.0  ;;  %2120 = vmatpush3.bf16.msra.mxu0 %v2298_v63 }
 0x17b   : > { %v865_v8 = vpack.c.bf16 %v821_v5, %v819_v4 }
 0x17c   : > { %v866_v9 = vpack.c.bf16 %v822_v7, %v820_v6  ;;  %v724_v10 = vpop.f32.mrb[40].mxu0 }
 0x17d   : > { %v725_v11 = vadd.f32 %v724_v10, %v2699_v54  ;;  %v726_v12 = vpop.f32.mrb[41].mxu0 }
 0x17e   : > { %v727_v13 = vadd.f32 %v726_v12, %v2701_v55  ;;  %v728_v14 = vpop.f32.mrb[42].mxu0  ;;  %1118 = vmatprep.mubr.bf16.mxu1 %v866_v9 }
 0x17f   : > { %v729_v15 = vadd.f32 %v728_v14, %v2699_v54  ;;  %v730_v16 = vpop.f32.mrb[43].mxu0  ;;  %1119 = vmatmul.mubr.bf16.gmra.mrb[36].mxu1 %v865_v8  ;;  %v823_v18 = vmax.f32 %v725_v11, 0.0 }
 0x180   : > { %v731_v17 = vadd.f32 %v730_v16, %v2701_v55  ;;  %v824_v20 = vmax.f32 %v727_v13, 0.0 }
 0x181   : > { %v825_v19 = vmax.f32 %v729_v15, 0.0 }
 0x182   : > { %v826_v21 = vmax.f32 %v731_v17, 0.0 }
 0x183   : > { %v867_v22 = vpack.c.bf16 %v825_v19, %v823_v18 }
 0x184   : > { %v868_v23 = vpack.c.bf16 %v826_v21, %v824_v20  ;;  %v734_v24 = vpop.f32.mrb[44].mxu0 }
 0x185   : > { %v735_v25 = vadd.f32 %v734_v24, %v2699_v54  ;;  %v736_v26 = vpop.f32.mrb[45].mxu0 }
 0x186   : > { %v737_v27 = vadd.f32 %v736_v26, %v2701_v55  ;;  %v738_v28 = vpop.f32.mrb[46].mxu0  ;;  %1126 = vmatprep.mubr.bf16.mxu1 %v868_v23 }
 0x187   : > { %v739_v29 = vadd.f32 %v738_v28, %v2699_v54  ;;  %v740_v30 = vpop.f32.mrb[47].mxu0  ;;  %1127 = vmatmul.mubr.bf16.gmra.mrb[40].mxu1 %v867_v22  ;;  %v827_v32 = vmax.f32 %v735_v25, 0.0 }
 0x188   : > { %v741_v31 = vadd.f32 %v740_v30, %v2701_v55  ;;  %v828_v34 = vmax.f32 %v737_v27, 0.0 }
 0x189   : > { %v829_v33 = vmax.f32 %v739_v29, 0.0 }
 0x18a   : > { %v830_v35 = vmax.f32 %v741_v31, 0.0 }
 0x18b   : > { %v869_v36 = vpack.c.bf16 %v829_v33, %v827_v32 }
 0x18c   : > { %v870_v37 = vpack.c.bf16 %v830_v35, %v828_v34  ;;  %v744_v38 = vpop.f32.mrb[48].mxu0  ;;  %v2782_v35 = vld [vmem:[%s3015_s4] ss:$0 sm:$0xff] }
 0x18d   : > { %v745_v39 = vadd.f32 %v744_v38, %v2699_v54  ;;  %v746_v40 = vpop.f32.mrb[49].mxu0 }
 0x18e   : > { %v747_v41 = vadd.f32 %v746_v40, %v2701_v55  ;;  %v748_v42 = vpop.f32.mrb[50].mxu0  ;;  %1134 = vmatprep.mubr.bf16.mxu1 %v870_v37  ;;  %v1520_v40 = vld [vmem:[%s3018_s7] sm:$0xf] }
 0x18f   : > { %v749_v43 = vadd.f32 %v748_v42, %v2699_v54  ;;  %v750_v44 = vpop.f32.mrb[51].mxu0  ;;  %1135 = vmatmul.mubr.bf16.gmra.mrb[44].mxu1 %v869_v36  ;;  %v831_v46 = vmax.f32 %v745_v39, 0.0  ;;  %2187 = vmatprep.subr.msk.bf16.mxu1 %vm1577_vm0, %v1520_v40 }
 0x190   : > { %v751_v45 = vadd.f32 %v750_v44, %v2701_v55  ;;  %v832_v48 = vmax.f32 %v747_v41, 0.0  ;;  %v1579_v41 = vsel %vm1577_vm0, %v1520_v40, 0 }
 0x191   : > { %v833_v47 = vmax.f32 %v749_v43, 0.0  ;;  %2154 = vmatpush3.bf16.msra.mxu1 %v1579_v41 }
 0x192   : > { %v834_v49 = vmax.f32 %v751_v45, 0.0 }
 0x193   : > { %v871_v50 = vpack.c.bf16 %v833_v47, %v831_v46 }
 0x194   : > { %v872_v51 = vpack.c.bf16 %v834_v49, %v832_v48  ;;  %v754_v52 = vpop.f32.mrb[52].mxu0 }
 0x195   : > { %v755_v56 = vadd.f32 %v754_v52, %v2699_v54  ;;  %v756_v57 = vpop.f32.mrb[53].mxu0 }
 0x196   : > { %v757_v58 = vadd.f32 %v756_v57, %v2701_v55  ;;  %v758_v59 = vpop.f32.mrb[54].mxu0  ;;  %1142 = vmatprep.mubr.bf16.mxu1 %v872_v51 }
 0x197   : > { %v759_v60 = vadd.f32 %v758_v59, %v2699_v54  ;;  %v760_v61 = vpop.f32.mrb[55].mxu0  ;;  %1143 = vmatmul.mubr.bf16.gmra.mrb[48].mxu1 %v871_v50  ;;  %v835_v0 = vmax.f32 %v755_v56, 0.0 }
 0x198   : > { %v761_v62 = vadd.f32 %v760_v61, %v2701_v55  ;;  %v836_v2 = vmax.f32 %v757_v58, 0.0 }
 0x199   : > { %v837_v1 = vmax.f32 %v759_v60, 0.0 }
 0x19a   : > { %v838_v3 = vmax.f32 %v761_v62, 0.0 }
 0x19b   : > { %v873_v4 = vpack.c.bf16 %v837_v1, %v835_v0 }
 0x19c   : > { %v874_v5 = vpack.c.bf16 %v838_v3, %v836_v2  ;;  %v764_v6 = vpop.f32.mrb[56].mxu0 }
 0x19d   : > { %v765_v7 = vadd.f32 %v764_v6, %v2699_v54  ;;  %v766_v8 = vpop.f32.mrb[57].mxu0 }
 0x19e   : > { %v767_v9 = vadd.f32 %v766_v8, %v2701_v55  ;;  %v768_v10 = vpop.f32.mrb[58].mxu0  ;;  %1150 = vmatprep.mubr.bf16.mxu1 %v874_v5 }
 0x19f   : > { %v769_v11 = vadd.f32 %v768_v10, %v2699_v54  ;;  %v770_v12 = vpop.f32.mrb[59].mxu0  ;;  %1151 = vmatmul.mubr.bf16.gmra.mrb[52].mxu1 %v873_v4  ;;  %v839_v14 = vmax.f32 %v765_v7, 0.0 }
 0x1a0   : > { %v771_v13 = vadd.f32 %v770_v12, %v2701_v55  ;;  %v840_v16 = vmax.f32 %v767_v9, 0.0 }
 0x1a1   : > { %v841_v15 = vmax.f32 %v769_v11, 0.0 }
 0x1a2   : > { %v842_v17 = vmax.f32 %v771_v13, 0.0 }
 0x1a3   : > { %v875_v18 = vpack.c.bf16 %v841_v15, %v839_v14 }
 0x1a4   : > { %v876_v19 = vpack.c.bf16 %v842_v17, %v840_v16  ;;  %v774_v20 = vpop.f32.mrb[60].mxu0 }
 0x1a5   : > { %v775_v21 = vadd.f32 %v774_v20, %v2699_v54  ;;  %v776_v22 = vpop.f32.mrb[61].mxu0 }
 0x1a6   : > { %v777_v23 = vadd.f32 %v776_v22, %v2701_v55  ;;  %v778_v24 = vpop.f32.mrb[62].mxu0  ;;  %1158 = vmatprep.mubr.bf16.mxu1 %v876_v19 }
 0x1a7   : > { %v779_v25 = vadd.f32 %v778_v24, %v2699_v54  ;;  %v780_v26 = vpop.f32.mrb[63].mxu0  ;;  %1159 = vmatmul.mubr.bf16.gmra.mrb[56].mxu1 %v875_v18  ;;  %v843_v28 = vmax.f32 %v775_v21, 0.0 }
 0x1a8   : > { %v781_v27 = vadd.f32 %v780_v26, %v2701_v55  ;;  %v844_v30 = vmax.f32 %v777_v23, 0.0 }
 0x1a9   : > { %v845_v29 = vmax.f32 %v779_v25, 0.0 }
 0x1aa   : > { %v846_v31 = vmax.f32 %v781_v27, 0.0 }
 0x1ab   : > { %v877_v32 = vpack.c.bf16 %v845_v29, %v843_v28 }
 0x1ac   : > { %v878_v33 = vpack.c.bf16 %v846_v31, %v844_v30 }
 0x1ae   : > { %1166 = vmatprep.mubr.bf16.mxu1 %v878_v33 }
 0x1af   : > { %1167 = vmatmul.mubr.bf16.gmra.mrb[60].mxu1 %v877_v32 }
 0x20a   : > { %v1980_v34 = vpop.f32.mrb[0].mxu1 }
 0x20b   : > { %v1981_v36 = vpop.f32.mrb[1].mxu1 }
 0x20c   : > { %v1982_v54 = vadd.f32 %v1981_v36, %v1980_v34  ;;  %v1983_v37 = vpop.f32.mrb[2].mxu1 }
 0x20d   : > { %v1984_v38 = vpop.f32.mrb[3].mxu1 }
 0x20e   : > { %v1049_v55 = vadd.f32 %v1982_v54, %v2782_v35  ;;  %v1985_v39 = vadd.f32 %v1984_v38, %v1983_v37 }
 0x210   : > { %v1052_v42 = vadd.f32 %v1985_v39, %v2782_v35  ;;  %v1175_v43 = vmax.f32 %v1049_v55, 0.0 }
 0x212   : > { %v1176_v44 = vmax.f32 %v1052_v42, 0.0  ;;  %v1986_v45 = vpop.f32.mrb[4].mxu1 }
 0x213   : > { %v1987_v46 = vpop.f32.mrb[5].mxu1 }
 0x214   : > { %v1207_v47 = vpack.c.bf16 %v1176_v44, %v1175_v43  ;;  %v1988_v48 = vadd.f32 %v1987_v46, %v1986_v45  ;;  %v1989_v49 = vpop.f32.mrb[6].mxu1 }
 0x215   : > { %v1990_v50 = vpop.f32.mrb[7].mxu1 }
 0x216   : > { %v1057_v51 = vadd.f32 %v1988_v48, %v2782_v35  ;;  %v1991_v52 = vadd.f32 %v1990_v50, %v1989_v49  ;;  %2121 = vmatprep.mubr.msk.bf16.mxu0 %vm1262_vm1, %v1207_v47 }
 0x218   : > { %v1060_v53 = vadd.f32 %v1991_v52, %v2782_v35  ;;  %v1177_v56 = vmax.f32 %v1057_v51, 0.0 }
 0x21a   : > { %v1178_v57 = vmax.f32 %v1060_v53, 0.0  ;;  %v1992_v58 = vpop.f32.mrb[8].mxu1 }
 0x21b   : > { %v1993_v59 = vpop.f32.mrb[9].mxu1 }
 0x21c   : > { %v1208_v60 = vpack.c.bf16 %v1178_v57, %v1177_v56  ;;  %v1994_v61 = vadd.f32 %v1993_v59, %v1992_v58  ;;  %v1995_v62 = vpop.f32.mrb[10].mxu1 }
 0x21d   : > { %v1996_v63 = vpop.f32.mrb[11].mxu1 }
 0x21e   : > { %v1065_v0 = vadd.f32 %v1994_v61, %v2782_v35  ;;  %v1997_v1 = vadd.f32 %v1996_v63, %v1995_v62  ;;  %2122 = vmatmul.mubr.msk.bf16.vlgmr.msra.gmra.mrb[64].mxu0 %vm1262_vm1, %v1208_v60 }
 0x220   : > { %v1068_v2 = vadd.f32 %v1997_v1, %v2782_v35  ;;  %v1179_v3 = vmax.f32 %v1065_v0, 0.0 }
 0x222   : > { %v1180_v4 = vmax.f32 %v1068_v2, 0.0  ;;  %v1998_v5 = vpop.f32.mrb[12].mxu1 }
 0x223   : > { %v1999_v6 = vpop.f32.mrb[13].mxu1 }
 0x224   : > { %v1209_v7 = vpack.c.bf16 %v1180_v4, %v1179_v3  ;;  %v2000_v8 = vadd.f32 %v1999_v6, %v1998_v5  ;;  %v2001_v9 = vpop.f32.mrb[14].mxu1 }
 0x225   : > { %v2002_v10 = vpop.f32.mrb[15].mxu1 }
 0x226   : > { %v1073_v11 = vadd.f32 %v2000_v8, %v2782_v35  ;;  %v2003_v12 = vadd.f32 %v2002_v10, %v2001_v9  ;;  %2125 = vmatprep.mubr.msk.bf16.mxu0 %vm1262_vm1, %v1209_v7 }
 0x228   : > { %v1076_v13 = vadd.f32 %v2003_v12, %v2782_v35  ;;  %v1181_v14 = vmax.f32 %v1073_v11, 0.0 }
 0x22a   : > { %v1182_v15 = vmax.f32 %v1076_v13, 0.0  ;;  %v2004_v16 = vpop.f32.mrb[16].mxu1 }
 0x22b   : > { %v2005_v17 = vpop.f32.mrb[17].mxu1 }
 0x22c   : > { %v1210_v18 = vpack.c.bf16 %v1182_v15, %v1181_v14  ;;  %v2006_v19 = vadd.f32 %v2005_v17, %v2004_v16  ;;  %v2007_v20 = vpop.f32.mrb[18].mxu1 }
 0x22d   : > { %v2008_v21 = vpop.f32.mrb[19].mxu1 }
 0x22e   : > { %v1081_v22 = vadd.f32 %v2006_v19, %v2782_v35  ;;  %v2009_v23 = vadd.f32 %v2008_v21, %v2007_v20  ;;  %2126 = vmatmul.mubr.msk.bf16.gmra.mrb[68].mxu0 %vm1262_vm1, %v1210_v18 }
 0x230   : > { %v1084_v24 = vadd.f32 %v2009_v23, %v2782_v35  ;;  %v1183_v25 = vmax.f32 %v1081_v22, 0.0 }
 0x232   : > { %v1184_v26 = vmax.f32 %v1084_v24, 0.0  ;;  %v2010_v27 = vpop.f32.mrb[20].mxu1 }
 0x233   : > { %v2011_v28 = vpop.f32.mrb[21].mxu1 }
 0x234   : > { %v1211_v29 = vpack.c.bf16 %v1184_v26, %v1183_v25  ;;  %v2012_v30 = vadd.f32 %v2011_v28, %v2010_v27  ;;  %v2013_v31 = vpop.f32.mrb[22].mxu1 }
 0x235   : > { %v2014_v32 = vpop.f32.mrb[23].mxu1 }
 0x236   : > { %v1089_v33 = vadd.f32 %v2012_v30, %v2782_v35  ;;  %v2015_v34 = vadd.f32 %v2014_v32, %v2013_v31  ;;  %2129 = vmatprep.mubr.msk.bf16.mxu0 %vm1262_vm1, %v1211_v29 }
 0x238   : > { %v1092_v36 = vadd.f32 %v2015_v34, %v2782_v35  ;;  %v1185_v54 = vmax.f32 %v1089_v33, 0.0 }
 0x23a   : > { %v1186_v37 = vmax.f32 %v1092_v36, 0.0  ;;  %v2016_v38 = vpop.f32.mrb[24].mxu1 }
 0x23b   : > { %v2017_v55 = vpop.f32.mrb[25].mxu1 }
 0x23c   : > { %v1212_v39 = vpack.c.bf16 %v1186_v37, %v1185_v54  ;;  %v2018_v40 = vadd.f32 %v2017_v55, %v2016_v38  ;;  %v2019_v41 = vpop.f32.mrb[26].mxu1 }
 0x23d   : > { %v2020_v42 = vpop.f32.mrb[27].mxu1 }
 0x23e   : > { %v1097_v43 = vadd.f32 %v2018_v40, %v2782_v35  ;;  %v2021_v44 = vadd.f32 %v2020_v42, %v2019_v41  ;;  %2130 = vmatmul.mubr.msk.bf16.gmra.mrb[72].mxu0 %vm1262_vm1, %v1212_v39 }
 0x240   : > { %v1100_v45 = vadd.f32 %v2021_v44, %v2782_v35  ;;  %v1187_v46 = vmax.f32 %v1097_v43, 0.0 }
 0x242   : > { %v1188_v47 = vmax.f32 %v1100_v45, 0.0  ;;  %v2022_v48 = vpop.f32.mrb[28].mxu1 }
 0x243   : > { %v2023_v49 = vpop.f32.mrb[29].mxu1 }
 0x244   : > { %v1213_v50 = vpack.c.bf16 %v1188_v47, %v1187_v46  ;;  %v2024_v51 = vadd.f32 %v2023_v49, %v2022_v48  ;;  %v2025_v52 = vpop.f32.mrb[30].mxu1 }
 0x245   : > { %v2026_v53 = vpop.f32.mrb[31].mxu1 }
 0x246   : > { %v1105_v56 = vadd.f32 %v2024_v51, %v2782_v35  ;;  %v2027_v57 = vadd.f32 %v2026_v53, %v2025_v52  ;;  %2133 = vmatprep.mubr.msk.bf16.mxu0 %vm1262_vm1, %v1213_v50 }
 0x248   : > { %v1108_v58 = vadd.f32 %v2027_v57, %v2782_v35  ;;  %v1189_v59 = vmax.f32 %v1105_v56, 0.0 }
 0x24a   : > { %v1190_v60 = vmax.f32 %v1108_v58, 0.0  ;;  %v2028_v61 = vpop.f32.mrb[32].mxu1 }
 0x24b   : > { %v2029_v62 = vpop.f32.mrb[33].mxu1 }
 0x24c   : > { %v1214_v63 = vpack.c.bf16 %v1190_v60, %v1189_v59  ;;  %v2030_v0 = vadd.f32 %v2029_v62, %v2028_v61  ;;  %v2031_v1 = vpop.f32.mrb[34].mxu1 }
 0x24d   : > { %v2032_v2 = vpop.f32.mrb[35].mxu1 }
 0x24e   : > { %v1113_v3 = vadd.f32 %v2030_v0, %v2782_v35  ;;  %v2033_v4 = vadd.f32 %v2032_v2, %v2031_v1  ;;  %2134 = vmatmul.mubr.msk.bf16.gmra.mrb[76].mxu0 %vm1262_vm1, %v1214_v63 }
 0x250   : > { %v1116_v5 = vadd.f32 %v2033_v4, %v2782_v35  ;;  %v1191_v6 = vmax.f32 %v1113_v3, 0.0 }
 0x252   : > { %v1192_v7 = vmax.f32 %v1116_v5, 0.0  ;;  %v2034_v8 = vpop.f32.mrb[36].mxu1 }
 0x253   : > { %v2035_v9 = vpop.f32.mrb[37].mxu1 }
 0x254   : > { %v1215_v10 = vpack.c.bf16 %v1192_v7, %v1191_v6  ;;  %v2036_v11 = vadd.f32 %v2035_v9, %v2034_v8  ;;  %v2037_v12 = vpop.f32.mrb[38].mxu1 }
 0x255   : > { %v2038_v13 = vpop.f32.mrb[39].mxu1 }
 0x256   : > { %v1121_v14 = vadd.f32 %v2036_v11, %v2782_v35  ;;  %v2039_v15 = vadd.f32 %v2038_v13, %v2037_v12  ;;  %2137 = vmatprep.mubr.msk.bf16.mxu0 %vm1262_vm1, %v1215_v10 }
 0x258   : > { %v1124_v16 = vadd.f32 %v2039_v15, %v2782_v35  ;;  %v1193_v17 = vmax.f32 %v1121_v14, 0.0 }
 0x25a   : > { %v1194_v18 = vmax.f32 %v1124_v16, 0.0  ;;  %v2040_v19 = vpop.f32.mrb[40].mxu1 }
 0x25b   : > { %v2041_v20 = vpop.f32.mrb[41].mxu1 }
 0x25c   : > { %v1216_v21 = vpack.c.bf16 %v1194_v18, %v1193_v17  ;;  %v2042_v22 = vadd.f32 %v2041_v20, %v2040_v19  ;;  %v2043_v23 = vpop.f32.mrb[42].mxu1 }
 0x25d   : > { %v2044_v24 = vpop.f32.mrb[43].mxu1 }
 0x25e   : > { %v1129_v25 = vadd.f32 %v2042_v22, %v2782_v35  ;;  %v2045_v26 = vadd.f32 %v2044_v24, %v2043_v23  ;;  %2138 = vmatmul.mubr.msk.bf16.gmra.mrb[80].mxu0 %vm1262_vm1, %v1216_v21  ;;  %v2838_v23 = vld [vmem:[%s3017_s6] ss:$0 sm:$0xff] }
 0x260   : > { %v1132_v27 = vadd.f32 %v2045_v26, %v2782_v35  ;;  %v1195_v28 = vmax.f32 %v1129_v25, 0.0 }
 0x262   : > { %v1196_v29 = vmax.f32 %v1132_v27, 0.0  ;;  %v2046_v30 = vpop.f32.mrb[44].mxu1 }
 0x263   : > { %v2047_v31 = vpop.f32.mrb[45].mxu1 }
 0x264   : > { %v1217_v32 = vpack.c.bf16 %v1196_v29, %v1195_v28  ;;  %v2048_v33 = vadd.f32 %v2047_v31, %v2046_v30  ;;  %v2049_v34 = vpop.f32.mrb[46].mxu1 }
 0x265   : > { %v2050_v36 = vpop.f32.mrb[47].mxu1 }
 0x266   : > { %v1137_v54 = vadd.f32 %v2048_v33, %v2782_v35  ;;  %v2051_v37 = vadd.f32 %v2050_v36, %v2049_v34  ;;  %2141 = vmatprep.mubr.msk.bf16.mxu0 %vm1262_vm1, %v1217_v32 }
 0x268   : > { %v1140_v38 = vadd.f32 %v2051_v37, %v2782_v35  ;;  %v1197_v55 = vmax.f32 %v1137_v54, 0.0 }
 0x26a   : > { %v1198_v39 = vmax.f32 %v1140_v38, 0.0  ;;  %v2052_v40 = vpop.f32.mrb[48].mxu1 }
 0x26b   : > { %v2053_v41 = vpop.f32.mrb[49].mxu1 }
 0x26c   : > { %v1218_v42 = vpack.c.bf16 %v1198_v39, %v1197_v55  ;;  %v2054_v43 = vadd.f32 %v2053_v41, %v2052_v40  ;;  %v2055_v44 = vpop.f32.mrb[50].mxu1 }
 0x26d   : > { %v2056_v45 = vpop.f32.mrb[51].mxu1 }
 0x26e   : > { %v1145_v46 = vadd.f32 %v2054_v43, %v2782_v35  ;;  %v2057_v47 = vadd.f32 %v2056_v45, %v2055_v44  ;;  %2142 = vmatmul.mubr.msk.bf16.gmra.mrb[84].mxu0 %vm1262_vm1, %v1218_v42 }
 0x270   : > { %v1148_v48 = vadd.f32 %v2057_v47, %v2782_v35  ;;  %v1199_v49 = vmax.f32 %v1145_v46, 0.0 }
 0x272   : > { %v1200_v50 = vmax.f32 %v1148_v48, 0.0  ;;  %v2058_v51 = vpop.f32.mrb[52].mxu1 }
 0x273   : > { %v2059_v52 = vpop.f32.mrb[53].mxu1 }
 0x274   : > { %v1219_v53 = vpack.c.bf16 %v1200_v50, %v1199_v49  ;;  %v2060_v56 = vadd.f32 %v2059_v52, %v2058_v51  ;;  %v2061_v57 = vpop.f32.mrb[54].mxu1 }
 0x275   : > { %v2062_v58 = vpop.f32.mrb[55].mxu1 }
 0x276   : > { %v1153_v59 = vadd.f32 %v2060_v56, %v2782_v35  ;;  %v2063_v60 = vadd.f32 %v2062_v58, %v2061_v57  ;;  %2145 = vmatprep.mubr.msk.bf16.mxu0 %vm1262_vm1, %v1219_v53 }
 0x278   : > { %v1156_v61 = vadd.f32 %v2063_v60, %v2782_v35  ;;  %v1201_v62 = vmax.f32 %v1153_v59, 0.0 }
 0x27a   : > { %v1202_v63 = vmax.f32 %v1156_v61, 0.0  ;;  %v2064_v0 = vpop.f32.mrb[56].mxu1 }
 0x27b   : > { %v2065_v1 = vpop.f32.mrb[57].mxu1 }
 0x27c   : > { %v1220_v2 = vpack.c.bf16 %v1202_v63, %v1201_v62  ;;  %v2066_v3 = vadd.f32 %v2065_v1, %v2064_v0  ;;  %v2067_v4 = vpop.f32.mrb[58].mxu1 }
 0x27d   : > { %v2068_v5 = vpop.f32.mrb[59].mxu1 }
 0x27e   : > { %v1161_v6 = vadd.f32 %v2066_v3, %v2782_v35  ;;  %v2069_v7 = vadd.f32 %v2068_v5, %v2067_v4  ;;  %2146 = vmatmul.mubr.msk.bf16.gmra.mrb[88].mxu0 %vm1262_vm1, %v1220_v2 }
 0x280   : > { %v1164_v8 = vadd.f32 %v2069_v7, %v2782_v35  ;;  %v1203_v9 = vmax.f32 %v1161_v6, 0.0 }
 0x282   : > { %v1204_v10 = vmax.f32 %v1164_v8, 0.0  ;;  %v2070_v11 = vpop.f32.mrb[60].mxu1 }
 0x283   : > { %v2071_v12 = vpop.f32.mrb[61].mxu1 }
 0x284   : > { %v1221_v13 = vpack.c.bf16 %v1204_v10, %v1203_v9  ;;  %v2072_v14 = vadd.f32 %v2071_v12, %v2070_v11  ;;  %v2073_v15 = vpop.f32.mrb[62].mxu1 }
 0x285   : > { %v2074_v16 = vpop.f32.mrb[63].mxu1 }
 0x286   : > { %v1169_v17 = vadd.f32 %v2072_v14, %v2782_v35  ;;  %v2075_v18 = vadd.f32 %v2074_v16, %v2073_v15  ;;  %2149 = vmatprep.mubr.msk.bf16.mxu0 %vm1262_vm1, %v1221_v13 }
 0x288   : > { %v1172_v19 = vadd.f32 %v2075_v18, %v2782_v35  ;;  %v1205_v20 = vmax.f32 %v1169_v17, 0.0 }
 0x28a   : > { %v1206_v21 = vmax.f32 %v1172_v19, 0.0 }
 0x28c   : > { %v1222_v22 = vpack.c.bf16 %v1206_v21, %v1205_v20 }
 0x28e   : > { %2150 = vmatmul.mubr.msk.bf16.gmra.mrb[92].mxu0 %vm1262_vm1, %v1222_v22 }
 0x2f1   : > { %v2123_v24 = vpop.f32.mrb[64].mxu0 }
 0x2f2   : > { %v1354_v25 = vadd.f32 %v2123_v24, %v2838_v23  ;;  %v1345_v26 = vpop.f32.mrb[65].mxu0 }
 0x2f3   : > { %v1346_v27 = vadd.f32 %v2838_v23, %v1345_v26  ;;  %v2124_v28 = vpop.f32.mrb[66].mxu0 }
 0x2f4   : > { %v1357_v29 = vadd.f32 %v2124_v28, %v2838_v23  ;;  %v1348_v35 = vpop.f32.mrb[67].mxu0  ;;  %v1474_v31 = vmax.f32 %v1354_v25, 0.0 }
 0x2f5   : > { %v1349_v30 = vadd.f32 %v2838_v23, %v1348_v35  ;;  %v1472_v33 = vmax.f32 %v1346_v27, 0.0 }
 0x2f6   : > { %v1475_v32 = vmax.f32 %v1357_v29, 0.0 }
 0x2f7   : > { %v1473_v34 = vmax.f32 %v1349_v30, 0.0 }
 0x2f8   : > { %v1505_v36 = vpack.c.bf16 %v1475_v32, %v1474_v31 }
 0x2f9   : > { %v1504_v54 = vpack.c.bf16 %v1473_v34, %v1472_v33 }
 0x2fb   : > { %2155 = vmatprep.mubr.msk.bf16.mxu1 %vm1528_vm2, %v1504_v54 }
 0x2fc   : > { %2156 = vmatmul.mubr.msk.bf16.vlgmr.msra.gmra.mrb[64].mxu1 %vm1528_vm2, %v1505_v36 }
 0x301   : > { %v2127_v37 = vpop.f32.mrb[68].mxu0 }
 0x302   : > { %v1370_v38 = vadd.f32 %v2127_v37, %v2838_v23  ;;  %v1361_v55 = vpop.f32.mrb[69].mxu0 }
 0x303   : > { %v1362_v39 = vadd.f32 %v2838_v23, %v1361_v55  ;;  %v2128_v40 = vpop.f32.mrb[70].mxu0 }
 0x304   : > { %v1373_v41 = vadd.f32 %v2128_v40, %v2838_v23  ;;  %v1364_v42 = vpop.f32.mrb[71].mxu0  ;;  %v1478_v44 = vmax.f32 %v1370_v38, 0.0 }
 0x305   : > { %v1365_v43 = vadd.f32 %v2838_v23, %v1364_v42  ;;  %v1476_v46 = vmax.f32 %v1362_v39, 0.0 }
 0x306   : > { %v1479_v45 = vmax.f32 %v1373_v41, 0.0 }
 0x307   : > { %v1477_v47 = vmax.f32 %v1365_v43, 0.0 }
 0x308   : > { %v1507_v48 = vpack.c.bf16 %v1479_v45, %v1478_v44 }
 0x309   : > { %v1506_v49 = vpack.c.bf16 %v1477_v47, %v1476_v46 }
 0x30b   : > { %2159 = vmatprep.mubr.msk.bf16.mxu1 %vm1528_vm2, %v1506_v49 }
 0x30c   : > { %2160 = vmatmul.mubr.msk.bf16.gmra.mrb[68].mxu1 %vm1528_vm2, %v1507_v48 }
 0x311   : > { %v2131_v50 = vpop.f32.mrb[72].mxu0 }
 0x312   : > { %v1386_v51 = vadd.f32 %v2131_v50, %v2838_v23  ;;  %v1377_v52 = vpop.f32.mrb[73].mxu0 }
 0x313   : > { %v1378_v53 = vadd.f32 %v2838_v23, %v1377_v52  ;;  %v2132_v56 = vpop.f32.mrb[74].mxu0 }
 0x314   : > { %v1389_v57 = vadd.f32 %v2132_v56, %v2838_v23  ;;  %v1380_v58 = vpop.f32.mrb[75].mxu0  ;;  %v1482_v60 = vmax.f32 %v1386_v51, 0.0 }
 0x315   : > { %v1381_v59 = vadd.f32 %v2838_v23, %v1380_v58  ;;  %v1480_v62 = vmax.f32 %v1378_v53, 0.0 }
 0x316   : > { %v1483_v61 = vmax.f32 %v1389_v57, 0.0 }
 0x317   : > { %v1481_v63 = vmax.f32 %v1381_v59, 0.0 }
 0x318   : > { %v1509_v0 = vpack.c.bf16 %v1483_v61, %v1482_v60 }
 0x319   : > { %v1508_v1 = vpack.c.bf16 %v1481_v63, %v1480_v62 }
 0x31b   : > { %2163 = vmatprep.mubr.msk.bf16.mxu1 %vm1528_vm2, %v1508_v1 }
 0x31c   : > { %2164 = vmatmul.mubr.msk.bf16.gmra.mrb[72].mxu1 %vm1528_vm2, %v1509_v0 }
 0x321   : > { %v2135_v2 = vpop.f32.mrb[76].mxu0 }
 0x322   : > { %v1402_v3 = vadd.f32 %v2135_v2, %v2838_v23  ;;  %v1393_v4 = vpop.f32.mrb[77].mxu0 }
 0x323   : > { %v1394_v5 = vadd.f32 %v2838_v23, %v1393_v4  ;;  %v2136_v6 = vpop.f32.mrb[78].mxu0 }
 0x324   : > { %v1405_v7 = vadd.f32 %v2136_v6, %v2838_v23  ;;  %v1396_v8 = vpop.f32.mrb[79].mxu0  ;;  %v1486_v10 = vmax.f32 %v1402_v3, 0.0 }
 0x325   : > { %v1397_v9 = vadd.f32 %v2838_v23, %v1396_v8  ;;  %v1484_v12 = vmax.f32 %v1394_v5, 0.0 }
 0x326   : > { %v1487_v11 = vmax.f32 %v1405_v7, 0.0 }
 0x327   : > { %v1485_v13 = vmax.f32 %v1397_v9, 0.0  ;;  %v2892_v9 = vld [vmem:[%s3019_s8] ss:$0 sm:$0xff] }
 0x328   : > { %v1511_v14 = vpack.c.bf16 %v1487_v11, %v1486_v10 }
 0x329   : > { %v1510_v15 = vpack.c.bf16 %v1485_v13, %v1484_v12 }
 0x32b   : > { %2167 = vmatprep.mubr.msk.bf16.mxu1 %vm1528_vm2, %v1510_v15 }
 0x32c   : > { %2168 = vmatmul.mubr.msk.bf16.gmra.mrb[76].mxu1 %vm1528_vm2, %v1511_v14 }
 0x331   : > { %v2139_v16 = vpop.f32.mrb[80].mxu0 }
 0x332   : > { %v1418_v17 = vadd.f32 %v2139_v16, %v2838_v23  ;;  %v1409_v18 = vpop.f32.mrb[81].mxu0 }
 0x333   : > { %v1410_v19 = vadd.f32 %v2838_v23, %v1409_v18  ;;  %v2140_v20 = vpop.f32.mrb[82].mxu0 }
 0x334   : > { %v1421_v21 = vadd.f32 %v2140_v20, %v2838_v23  ;;  %v1412_v22 = vpop.f32.mrb[83].mxu0  ;;  %v1490_v25 = vmax.f32 %v1418_v17, 0.0 }
 0x335   : > { %v1413_v24 = vadd.f32 %v2838_v23, %v1412_v22  ;;  %v1488_v27 = vmax.f32 %v1410_v19, 0.0 }
 0x336   : > { %v1491_v26 = vmax.f32 %v1421_v21, 0.0 }
 0x337   : > { %v1489_v28 = vmax.f32 %v1413_v24, 0.0 }
 0x338   : > { %v1513_v29 = vpack.c.bf16 %v1491_v26, %v1490_v25 }
 0x339   : > { %v1512_v35 = vpack.c.bf16 %v1489_v28, %v1488_v27 }
 0x33b   : > { %2171 = vmatprep.mubr.msk.bf16.mxu1 %vm1528_vm2, %v1512_v35 }
 0x33c   : > { %2172 = vmatmul.mubr.msk.bf16.gmra.mrb[80].mxu1 %vm1528_vm2, %v1513_v29 }
 0x341   : > { %v2143_v30 = vpop.f32.mrb[84].mxu0 }
 0x342   : > { %v1434_v31 = vadd.f32 %v2143_v30, %v2838_v23  ;;  %v1425_v32 = vpop.f32.mrb[85].mxu0 }
 0x343   : > { %v1426_v33 = vadd.f32 %v2838_v23, %v1425_v32  ;;  %v2144_v34 = vpop.f32.mrb[86].mxu0 }
 0x344   : > { %v1437_v36 = vadd.f32 %v2144_v34, %v2838_v23  ;;  %v1428_v54 = vpop.f32.mrb[87].mxu0  ;;  %v1494_v38 = vmax.f32 %v1434_v31, 0.0 }
 0x345   : > { %v1429_v37 = vadd.f32 %v2838_v23, %v1428_v54  ;;  %v1492_v39 = vmax.f32 %v1426_v33, 0.0 }
 0x346   : > { %v1495_v55 = vmax.f32 %v1437_v36, 0.0 }
 0x347   : > { %v1493_v40 = vmax.f32 %v1429_v37, 0.0 }
 0x348   : > { %v1515_v41 = vpack.c.bf16 %v1495_v55, %v1494_v38 }
 0x349   : > { %v1514_v42 = vpack.c.bf16 %v1493_v40, %v1492_v39 }
 0x34b   : > { %2175 = vmatprep.mubr.msk.bf16.mxu1 %vm1528_vm2, %v1514_v42 }
 0x34c   : > { %2176 = vmatmul.mubr.msk.bf16.gmra.mrb[84].mxu1 %vm1528_vm2, %v1515_v41 }
 0x351   : > { %v2147_v43 = vpop.f32.mrb[88].mxu0 }
 0x352   : > { %v1450_v44 = vadd.f32 %v2147_v43, %v2838_v23  ;;  %v1441_v45 = vpop.f32.mrb[89].mxu0 }
 0x353   : > { %v1442_v46 = vadd.f32 %v2838_v23, %v1441_v45  ;;  %v2148_v47 = vpop.f32.mrb[90].mxu0 }
 0x354   : > { %v1453_v48 = vadd.f32 %v2148_v47, %v2838_v23  ;;  %v1444_v49 = vpop.f32.mrb[91].mxu0  ;;  %v1498_v51 = vmax.f32 %v1450_v44, 0.0 }
 0x355   : > { %v1445_v50 = vadd.f32 %v2838_v23, %v1444_v49  ;;  %v1496_v53 = vmax.f32 %v1442_v46, 0.0 }
 0x356   : > { %v1499_v52 = vmax.f32 %v1453_v48, 0.0 }
 0x357   : > { %v1497_v56 = vmax.f32 %v1445_v50, 0.0 }
 0x358   : > { %v1517_v57 = vpack.c.bf16 %v1499_v52, %v1498_v51 }
 0x359   : > { %v1516_v58 = vpack.c.bf16 %v1497_v56, %v1496_v53 }
 0x35b   : > { %2179 = vmatprep.mubr.msk.bf16.mxu1 %vm1528_vm2, %v1516_v58 }
 0x35c   : > { %2180 = vmatmul.mubr.msk.bf16.gmra.mrb[88].mxu1 %vm1528_vm2, %v1517_v57 }
 0x361   : > { %v2151_v59 = vpop.f32.mrb[92].mxu0 }
 0x362   : > { %v1466_v60 = vadd.f32 %v2151_v59, %v2838_v23  ;;  %v1457_v61 = vpop.f32.mrb[93].mxu0 }
 0x363   : > { %v1458_v62 = vadd.f32 %v2838_v23, %v1457_v61  ;;  %v2152_v63 = vpop.f32.mrb[94].mxu0 }
 0x364   : > { %v1469_v0 = vadd.f32 %v2152_v63, %v2838_v23  ;;  %v1460_v1 = vpop.f32.mrb[95].mxu0  ;;  %v1502_v3 = vmax.f32 %v1466_v60, 0.0 }
 0x365   : > { %v1461_v2 = vadd.f32 %v2838_v23, %v1460_v1  ;;  %v1500_v5 = vmax.f32 %v1458_v62, 0.0 }
 0x366   : > { %v1503_v4 = vmax.f32 %v1469_v0, 0.0 }
 0x367   : > { %v1501_v6 = vmax.f32 %v1461_v2, 0.0 }
 0x368   : > { %v1519_v7 = vpack.c.bf16 %v1503_v4, %v1502_v3 }
 0x369   : > { %v1518_v8 = vpack.c.bf16 %v1501_v6, %v1500_v5 }
 0x36b   : > { %2183 = vmatprep.mubr.msk.bf16.mxu1 %vm1528_vm2, %v1518_v8 }
 0x36c   : > { %2184 = vmatmul.mubr.msk.bf16.gmra.mrb[92].mxu1 %vm1528_vm2, %v1519_v7 }
 0x3cf   : > { %v2157_v10 = vpop.f32.mrb[64].mxu1 }
 0x3d0   : > { %v1624_v11 = vadd.f32 %v2157_v10, %v2892_v9  ;;  %v1615_v23 = vpop.f32.mrb[65].mxu1 }
 0x3d1   : > { %v1616_v12 = vadd.f32 %v2892_v9, %v1615_v23  ;;  %v2158_v13 = vpop.f32.mrb[66].mxu1 }
 0x3d2   : > { %1744 = vst [vmem:[%s2896_s14 + $0x10] sm:$0xff] %v1624_v11  ;;  %v1627_v14 = vadd.f32 %v2158_v13, %v2892_v9  ;;  %v1618_v15 = vpop.f32.mrb[67].mxu1 }
 0x3d3   : > { %1742 = vst [vmem:[%s2896_s14] sm:$0xff] %v1616_v12  ;;  %v1619_v16 = vadd.f32 %v2892_v9, %v1618_v15 }
 0x3d4   : > { %1745 = vst [vmem:[%s2896_s14 + $0x18] sm:$0xff] %v1627_v14 }
 0x3d5   : > { %1743 = vst [vmem:[%s2896_s14 + $0x8] sm:$0xff] %v1619_v16 }
 0x3df   : > { %v2161_v17 = vpop.f32.mrb[68].mxu1 }
 0x3e0   : > { %v1640_v18 = vadd.f32 %v2161_v17, %v2892_v9  ;;  %v1631_v19 = vpop.f32.mrb[69].mxu1 }
 0x3e1   : > { %v1632_v20 = vadd.f32 %v2892_v9, %v1631_v19  ;;  %v2162_v21 = vpop.f32.mrb[70].mxu1 }
 0x3e2   : > { %1748 = vst [vmem:[%s2896_s14 + $0x30] sm:$0xff] %v1640_v18  ;;  %v1643_v22 = vadd.f32 %v2162_v21, %v2892_v9  ;;  %v1634_v24 = vpop.f32.mrb[71].mxu1 }
 0x3e3   : > { %1746 = vst [vmem:[%s2896_s14 + $0x20] sm:$0xff] %v1632_v20  ;;  %v1635_v25 = vadd.f32 %v2892_v9, %v1634_v24 }
 0x3e4   : > { %1749 = vst [vmem:[%s2896_s14 + $0x38] sm:$0xff] %v1643_v22 }
 0x3e5   : > { %1747 = vst [vmem:[%s2896_s14 + $0x28] sm:$0xff] %v1635_v25 }
 0x3ef   : > { %v2165_v26 = vpop.f32.mrb[72].mxu1 }
 0x3f0   : > { %v1656_v27 = vadd.f32 %v2165_v26, %v2892_v9  ;;  %v1647_v28 = vpop.f32.mrb[73].mxu1 }
 0x3f1   : > { %v1648_v29 = vadd.f32 %v2892_v9, %v1647_v28  ;;  %v2166_v35 = vpop.f32.mrb[74].mxu1 }
 0x3f2   : > { %1752 = vst [vmem:[%s2896_s14 + $0x50] sm:$0xff] %v1656_v27  ;;  %v1659_v30 = vadd.f32 %v2166_v35, %v2892_v9  ;;  %v1650_v31 = vpop.f32.mrb[75].mxu1 }
 0x3f3   : > { %1750 = vst [vmem:[%s2896_s14 + $0x40] sm:$0xff] %v1648_v29  ;;  %v1651_v32 = vadd.f32 %v2892_v9, %v1650_v31 }
 0x3f4   : > { %1753 = vst [vmem:[%s2896_s14 + $0x58] sm:$0xff] %v1659_v30 }
 0x3f5   : > { %1751 = vst [vmem:[%s2896_s14 + $0x48] sm:$0xff] %v1651_v32 }
 0x3ff   : > { %v2169_v33 = vpop.f32.mrb[76].mxu1 }
 0x400   : > { %v1672_v34 = vadd.f32 %v2169_v33, %v2892_v9  ;;  %v1663_v36 = vpop.f32.mrb[77].mxu1 }
 0x401   : > { %v1664_v54 = vadd.f32 %v2892_v9, %v1663_v36  ;;  %v2170_v37 = vpop.f32.mrb[78].mxu1 }
 0x402   : > { %1756 = vst [vmem:[%s2896_s14 + $0x70] sm:$0xff] %v1672_v34  ;;  %v1675_v38 = vadd.f32 %v2170_v37, %v2892_v9  ;;  %v1666_v55 = vpop.f32.mrb[79].mxu1 }
 0x403   : > { %1754 = vst [vmem:[%s2896_s14 + $0x60] sm:$0xff] %v1664_v54  ;;  %v1667_v39 = vadd.f32 %v2892_v9, %v1666_v55 }
 0x404   : > { %1757 = vst [vmem:[%s2896_s14 + $0x78] sm:$0xff] %v1675_v38 }
 0x405   : > { %1755 = vst [vmem:[%s2896_s14 + $0x68] sm:$0xff] %v1667_v39 }
 0x40f   : > { %v2173_v40 = vpop.f32.mrb[80].mxu1 }
 0x410   : > { %v1688_v41 = vadd.f32 %v2173_v40, %v2892_v9  ;;  %v1679_v42 = vpop.f32.mrb[81].mxu1 }
 0x411   : > { %v1680_v43 = vadd.f32 %v2892_v9, %v1679_v42  ;;  %v2174_v44 = vpop.f32.mrb[82].mxu1 }
 0x412   : > { %1760 = vst [vmem:[%s2896_s14 + $0x90] sm:$0xff] %v1688_v41  ;;  %v1691_v45 = vadd.f32 %v2174_v44, %v2892_v9  ;;  %v1682_v46 = vpop.f32.mrb[83].mxu1 }
 0x413   : > { %1758 = vst [vmem:[%s2896_s14 + $0x80] sm:$0xff] %v1680_v43  ;;  %v1683_v47 = vadd.f32 %v2892_v9, %v1682_v46 }
 0x414   : > { %1761 = vst [vmem:[%s2896_s14 + $0x98] sm:$0xff] %v1691_v45 }
 0x415   : > { %1759 = vst [vmem:[%s2896_s14 + $0x88] sm:$0xff] %v1683_v47 }
 0x41f   : > { %v2177_v48 = vpop.f32.mrb[84].mxu1 }
 0x420   : > { %v1704_v49 = vadd.f32 %v2177_v48, %v2892_v9  ;;  %v1695_v50 = vpop.f32.mrb[85].mxu1 }
 0x421   : > { %v1696_v51 = vadd.f32 %v2892_v9, %v1695_v50  ;;  %v2178_v52 = vpop.f32.mrb[86].mxu1 }
 0x422   : > { %1764 = vst [vmem:[%s2896_s14 + $0xb0] sm:$0xff] %v1704_v49  ;;  %v1707_v53 = vadd.f32 %v2178_v52, %v2892_v9  ;;  %v1698_v56 = vpop.f32.mrb[87].mxu1 }
 0x423   : > { %1762 = vst [vmem:[%s2896_s14 + $0xa0] sm:$0xff] %v1696_v51  ;;  %v1699_v57 = vadd.f32 %v2892_v9, %v1698_v56 }
 0x424   : > { %1765 = vst [vmem:[%s2896_s14 + $0xb8] sm:$0xff] %v1707_v53 }
 0x425   : > { %1763 = vst [vmem:[%s2896_s14 + $0xa8] sm:$0xff] %v1699_v57 }
 0x42f   : > { %v2181_v58 = vpop.f32.mrb[88].mxu1 }
 0x430   : > { %v1720_v59 = vadd.f32 %v2181_v58, %v2892_v9  ;;  %v1711_v60 = vpop.f32.mrb[89].mxu1 }
 0x431   : > { %v1712_v61 = vadd.f32 %v2892_v9, %v1711_v60  ;;  %v2182_v62 = vpop.f32.mrb[90].mxu1 }
 0x432   : > { %1768 = vst [vmem:[%s2896_s14 + $0xd0] sm:$0xff] %v1720_v59  ;;  %v1723_v63 = vadd.f32 %v2182_v62, %v2892_v9  ;;  %v1714_v0 = vpop.f32.mrb[91].mxu1 }
 0x433   : > { %1766 = vst [vmem:[%s2896_s14 + $0xc0] sm:$0xff] %v1712_v61  ;;  %v1715_v1 = vadd.f32 %v2892_v9, %v1714_v0 }
 0x434   : > { %1769 = vst [vmem:[%s2896_s14 + $0xd8] sm:$0xff] %v1723_v63 }
 0x435   : > { %1767 = vst [vmem:[%s2896_s14 + $0xc8] sm:$0xff] %v1715_v1 }
 0x43f   : > { %v2185_v2 = vpop.f32.mrb[92].mxu1 }
 0x440   : > { %v1736_v3 = vadd.f32 %v2185_v2, %v2892_v9  ;;  %v1727_v4 = vpop.f32.mrb[93].mxu1 }
 0x441   : > { %v1728_v5 = vadd.f32 %v2892_v9, %v1727_v4  ;;  %v2186_v6 = vpop.f32.mrb[94].mxu1 }
 0x442   : > { %1772 = vst [vmem:[%s2896_s14 + $0xf0] sm:$0xff] %v1736_v3  ;;  %v1739_v7 = vadd.f32 %v2186_v6, %v2892_v9  ;;  %v1730_v8 = vpop.f32.mrb[95].mxu1 }
 0x443   : > { %1770 = vst [vmem:[%s2896_s14 + $0xe0] sm:$0xff] %v1728_v5  ;;  %v1731_v10 = vadd.f32 %v2892_v9, %v1730_v8 }
 0x444   : > { %1773 = vst [vmem:[%s2896_s14 + $0xf8] sm:$0xff] %v1739_v7 }
 0x445   : > { %1771 = vst [vmem:[%s2896_s14 + $0xe8] sm:$0xff] %v1731_v10 }
 0x446   : > { %2342 = shalt.err (!%p2339_p2)
}
 0x447   : > { %s2343_s28 = scalar_lea.hbm %s2961_s19, 4096  ;;  %s2347_s27 = scalar_lea.hbm %s3020_s9, 8192 }
 0x448   : > { %p2344_p4 = scmp.ne.s32.totalorder %s2961_s19, %s2343_s28  ;;  %p2348_p9 = scmp.lt.u32.totalorder %s2961_s19, %s3020_s9 }
 0x449   : > { %p2349_p1 = scmp.lt.u32.totalorder %s2347_s27, %s2343_s28  ;;  %p2351_p6 = scmp.lt.u32.totalorder %s2343_s28, %s2961_s19 }
 0x44a   : > { %p2345_p5 = pnand %p2344_p4, %p3027_p11 }
 0x44b   : > { %p2350_p3 = por %p2349_p1, %p2348_p9 }
 0x44c   : > { %p2346_p7 = pneg %p2345_p5 }
 0x44d   : > { %p2352_p12 = por %p2351_p6, %p2350_p3 }
 0x44f   : > { %p2353_p13 = pnand %p2352_p12, %p2346_p7 }
 0x451   : > { %2356 = shalt.err (!%p2353_p13)
}
 0x452   : > { %s2402_s25 = smov 128   ;;  %s2403_s23 = smov 8  }
 0x453   : > { %2190 = dma.vmem_to_hbm [thread:$0]  (%p3027_p11), %s2963_s17, 4096, %s2961_s19, %s1775_s13, %s2402_s25, %s2402_s25, %s2403_s23  }
 0x454 PF: > { %s1803_s24 = sand.u32 1, %s2383_s30   ;;  %p3028_p8 = scmp.ne.s32.totalorder %s3025_s22, 0 }
 0x455   : > { %p3029_p10 = scmp.ge.s32.totalorder %s2395_s12, 2  ;;  %s1804_s28 = scalar_lea.sflag [#allocation4], %s1803_s24 }
 0x457   : > { %p2197_p0 = pnand %p3029_p10, %p3028_p8 }
 0x459   : > { %2378 = dma.done.wait (!%p2197_p0), %s1804_s28, 4096  }
 0x45a   : > { %2380 = vsyncadd (!%p2197_p0), %s1804_s28, 4294963200  ;;  %p22_p2 = scmp.ge.s32.totalorder %s2479_s15, 4   ;;  %s3030_s30 = smov %s2387_s10 }
 0x45b   : > { %s3031_s10 = smov %s2391_s11  ;;  %s3032_s11 = smov %s2491_s18 }
 0x45c   : > { %s3033_s12 = smov %s2479_s15  ;;  %24 = sbr.rel (!%p22_p2) target bundleno = 5 (0x5), region = 101 }
 0x463   :  { %1809 = vsyncpa [#allocation3], 1 }
 0x464   :  { %1811 = vsyncpa [#allocation3 + $0x1], 1 }
 0x465   :  { %1812 = vsyncpa [#allocation4], 1 }
 0x466   :  { %1814 = vsyncpa [#allocation4 + $0x1], 1 }

</bundles_post_ra>
